<compile_context>
chip_gen: v5e
topology: v5e:2x2
jax: 0.10.0
libtpu: 0.0.40
codegen_flags: <defaults>
</compile_context>

<pallas_src>
import functools
import math

import jax
import jax.numpy as jnp
from jax.experimental import pallas as pl
from jax.experimental.pallas import tpu as pltpu


def _round_up(x, m):
    return ((x + m - 1) // m) * m


# ------------------------------ Pallas kernel -------------------------------

def _freq_encoding_kernel(mask_ref, x_ref, o_ref, feat_ref, *,
                          n_freqs, in_channels, out_dim, use_recurrence):
    # mask_ref: (F,) f32 resident in SMEM (scalar reads).
    # x_ref:    (C, block_n) input tile -- batch on the 128-lane axis.
    # o_ref:    (block_n, out_dim) output tile -- batch-major (PyTorch layout).
    # feat_ref: (feat_rows, block_n) f32 VMEM scratch, feat_rows = roundup(out_dim, 128)
    #           so the single transpose below is fully vreg-aligned on both sides.
    c_dim = in_channels
    feat_rows = feat_ref.shape[0]
    block_n = feat_ref.shape[1]

    # One-time hygiene: zero the padding rows of the scratch (they are sliced
    # off after the transpose, but keep them deterministic).
    if out_dim < feat_rows:
        @pl.when(pl.program_id(0) == 0)
        def _():
            feat_ref[out_dim:, :] = jnp.zeros(
                (feat_rows - out_dim, block_n), jnp.float32)

    x = x_ref[...].astype(jnp.float32)                       # (C, block_n)

    if use_recurrence:
        # freq bands are exactly 2^f: sin/cos once, then double-angle updates
        # (2 transcendentals per scalar instead of 2F; relieves the single EUP
        # slot on compute-bound chips). Error grows ~2^f per band.
        s = jnp.sin(x)
        c = jnp.cos(x)
        for f in range(n_freqs):                              # static unroll
            if f > 0:
                s_new = 2.0 * s * c
                c_new = 1.0 - 2.0 * s * s
                s, c = s_new, c_new
            m = mask_ref[f]                                   # SMEM scalar
            feat_ref[(2 * f) * c_dim:(2 * f + 1) * c_dim, :] = s * m
            feat_ref[(2 * f + 1) * c_dim:(2 * f + 2) * c_dim, :] = c * m
    else:
        for f in range(n_freqs):                              # static unroll
            a = (2.0 ** f) * x                                # constant freq band
            m = mask_ref[f]
            feat_ref[(2 * f) * c_dim:(2 * f + 1) * c_dim, :] = jnp.sin(a) * m
            feat_ref[(2 * f + 1) * c_dim:(2 * f + 2) * c_dim, :] = jnp.cos(a) * m

    # Single aligned transpose (XLU, idle in this kernel) + ONE store.  The
    # store is lane-masked (out_dim of 128 lanes) but the HBM destination of
    # the whole (block_n, out_dim) tile is contiguous, so the DMA is dense.
    y = feat_ref[...].T                                       # (block_n, feat_rows)
    o_ref[...] = y[:, :out_dim].astype(o_ref.dtype)


# ------------------------------- host wrapper --------------------------------

def progressive_band_frequency_forward(x, mask, *, n_freqs, block_n=2048,
                                        out_dtype=None, use_recurrence=True):
    """x: (..., C).  mask: (n_freqs,) float32.  Returns (..., C * 2 * n_freqs)."""
    *lead, c = x.shape
    n = math.prod(lead) if lead else 1
    out_dim = c * 2 * n_freqs
    out_dtype = x.dtype if out_dtype is None else jnp.dtype(out_dtype)

    block_n = max(128, _round_up(block_n, 128))
    n_pad = _round_up(max(n, 1), block_n)                    # ragged-batch safe

    # Feature-major input: batch on the lane axis inside the kernel.  This
    # wrapper transpose touches only the small input (1/(2F) of the output).
    xt = x.reshape(n, c).T                                   # (C, N)
    if n_pad != n:
        xt = jnp.pad(xt, ((0, 0), (0, n_pad - n)))

    feat_rows = _round_up(out_dim, 128)
    grid = (n_pad // block_n,)

    kernel = functools.partial(
        _freq_encoding_kernel, n_freqs=n_freqs, in_channels=c,
        out_dim=out_dim, use_recurrence=use_recurrence)

    n_trans = 2 if use_recurrence else 2 * n_freqs
    cost = pl.CostEstimate(
        flops=int(10 * n_freqs * n * c),
        transcendentals=int(n_trans * n * c),
        bytes_accessed=int(n * c * jnp.dtype(x.dtype).itemsize
                           + n * out_dim * out_dtype.itemsize
                           + n_freqs * 4))

    out = pl.pallas_call(
        kernel,
        out_shape=jax.ShapeDtypeStruct((n_pad, out_dim), out_dtype),
        grid_spec=pltpu.PrefetchScalarGridSpec(
            num_scalar_prefetch=0,
            grid=grid,
            in_specs=[
                # tiny mask stays resident in SMEM (no per-step DMA)
                pl.BlockSpec(memory_space=pltpu.MemorySpace.SMEM),
                # x tile: (C, block_n), batch tiled along the lane axis
                pl.BlockSpec((c, block_n), lambda i: (0, i)),
            ],
            # batch-major 2D output block covering the full feature dim:
            # contiguous HBM writeback, one store per tile in the kernel.
            out_specs=pl.BlockSpec((block_n, out_dim), lambda i: (i, 0)),
            scratch_shapes=[pltpu.VMEM((feat_rows, block_n), jnp.float32)],
        ),
        compiler_params=pltpu.CompilerParams(
            dimension_semantics=("parallel",)),
        cost_estimate=cost,
    )(mask.astype(jnp.float32), xt)

    out = out[:n]                                            # drop batch padding
    return out.reshape(*lead, out_dim)


# ------------------------- module-equivalent wrapper -------------------------

class ProgressiveBandFrequency:
    """JAX/Pallas equivalent of the PyTorch module (forward + update_step)."""

    def __init__(self, in_channels, config):
        self.N_freqs = config["n_frequencies"]
        self.in_channels = self.n_input_dims = in_channels
        self.n_output_dims = in_channels * 2 * self.N_freqs
        self.n_masking_step = config.get("n_masking_step", 0)
        self.update_step(None, None)

    def update_step(self, epoch, global_step, on_load_weights=False):
        if self.n_masking_step <= 0 or global_step is None:
            self.mask = jnp.ones((self.N_freqs,), jnp.float32)
        else:
            t = (global_step / self.n_masking_step * self.N_freqs
                 - jnp.arange(self.N_freqs))
            self.mask = ((1.0 - jnp.cos(jnp.pi * jnp.clip(t, 0.0, 1.0)))
                         / 2.0).astype(jnp.float32)

    def __call__(self, x, *, block_n=2048, out_dtype=None, use_recurrence=True):
        return progressive_band_frequency_forward(
            x, self.mask, n_freqs=self.N_freqs, block_n=block_n,
            out_dtype=out_dtype, use_recurrence=use_recurrence)


# ------------------------------ JAX reference --------------------------------

def reference_forward(x, mask, n_freqs):
    freq_bands = 2.0 ** jnp.linspace(0.0, n_freqs - 1, n_freqs)
    out = []
    for f in range(n_freqs):
        for func in (jnp.sin, jnp.cos):
            out.append(func(freq_bands[f] * x) * mask[f])
    return jnp.concatenate(out, axis=-1)


# ---------------------------------- main -------------------------------------

if __name__ == "__main__":
    in_channels = 3
    config = {"n_frequencies": 6, "n_masking_step": 10}
    enc = ProgressiveBandFrequency(in_channels, config)

    key = jax.random.PRNGKey(0)
    N = 4500   # ragged (not a block_n multiple) -> 3 grid steps at block_n=2048
    x = jax.random.normal(key, (N, in_channels), jnp.float32)

    # 1) ones mask, default path (double-angle recurrence, F=6 -> small error)
    out0 = jax.block_until_ready(enc(x))
    ref0 = reference_forward(x, enc.mask, enc.N_freqs)
    assert out0.shape == (N, enc.n_output_dims)
    assert jnp.allclose(out0, ref0, atol=5e-4, rtol=0), "mismatch (recurrence)"

    # 2) progressive mask mid-schedule, exact sin/cos path (tight tolerance)
    enc.update_step(None, global_step=4)
    out1 = jax.block_until_ready(enc(x, use_recurrence=False))
    ref1 = reference_forward(x, enc.mask, enc.N_freqs)
    assert jnp.allclose(out1, ref1, atol=1e-5, rtol=1e-5), "mismatch (exact)"

    # 3) ragged leading dims + bf16 output path (halves write traffic on v5e)
    x2 = jax.random.normal(jax.random.PRNGKey(1), (2, 100, in_channels),
                           jnp.float32)
    out2 = jax.block_until_ready(enc(x2, out_dtype=jnp.bfloat16))
    ref2 = reference_forward(x2, enc.mask, enc.N_freqs)
    assert out2.shape == (2, 100, enc.n_output_dims)
    assert out2.dtype == jnp.bfloat16
    assert jnp.allclose(out2.astype(jnp.float32), ref2, atol=1e-2, rtol=0), \
        "mismatch (bf16/ragged)"

    print("KERNEL_OK")
</pallas_src>

<mosaic_0001>
module attributes {stable_mosaic.version = 11 : i64} {
  func.func @_freq_encoding_kernel(%arg0: i32, %arg1: memref<6xf32, #tpu.memory_space<smem>>, %arg2: memref<3x2048xf32, #tpu.memory_space<vmem>>, %arg3: memref<2048x36xf32, #tpu.memory_space<vmem>>, %arg4: memref<128x2048xf32, #tpu.memory_space<vmem>>) attributes {dimension_semantics = [#tpu.dimension_semantics<parallel>], iteration_bounds = array<i64: 3>, scalar_prefetch = 0 : i64, scratch_operands = 1 : i64, tpu.core_type = #tpu.core_type<tc>, window_params = [{transform_indices = @transform_0, window_bounds = array<i64: 6>}, {transform_indices = @transform_1, window_bounds = array<i64: 3, 2048>}, {transform_indices = @transform_2, window_bounds = array<i64: 2048, 36>}]} {
    %c0_i32 = arith.constant 0 : i32
    %0 = arith.cmpi eq, %arg0, %c0_i32 : i32
    %1 = arith.extui %0 : i1 to i32
    %c0_i32_0 = arith.constant 0 : i32
    %2 = arith.cmpi ne, %1, %c0_i32_0 : i32
    scf.if %2 {
      %cst_35 = arith.constant 0.000000e+00 : f32
      %92 = vector.broadcast %cst_35 : f32 to vector<92x2048xf32>
      %c36 = arith.constant 36 : index
      %c0_36 = arith.constant 0 : index
      %93 = vector.load %arg4[%c36, %c0_36] : memref<128x2048xf32, #tpu.memory_space<vmem>>, vector<92x2048xf32>
      tpu.vector_store %arg4[%c36, %c0_36], %92 {strides = array<i32>} : memref<128x2048xf32, #tpu.memory_space<vmem>>, vector<92x2048xf32>,
    } else {
    }
    %c0 = arith.constant 0 : index
    %c0_1 = arith.constant 0 : index
    %3 = vector.load %arg2[%c0, %c0_1] : memref<3x2048xf32, #tpu.memory_space<vmem>>, vector<3x2048xf32>
    %4 = math.sin %3 : vector<3x2048xf32>
    %5 = math.cos %3 : vector<3x2048xf32>
    %c0_2 = arith.constant 0 : index
    %6 = memref.load %arg1[%c0_2] : memref<6xf32, #tpu.memory_space<smem>>
    %7 = vector.broadcast %6 : f32 to vector<3x2048xf32>
    %8 = arith.mulf %4, %7 : vector<3x2048xf32>
    %c0_3 = arith.constant 0 : index
    %c0_4 = arith.constant 0 : index
    %9 = vector.load %arg4[%c0_3, %c0_4] : memref<128x2048xf32, #tpu.memory_space<vmem>>, vector<3x2048xf32>
    tpu.vector_store %arg4[%c0_3, %c0_4], %8 {strides = array<i32>} : memref<128x2048xf32, #tpu.memory_space<vmem>>, vector<3x2048xf32>,
    %10 = vector.broadcast %6 : f32 to vector<3x2048xf32>
    %11 = arith.mulf %5, %10 : vector<3x2048xf32>
    %c3 = arith.constant 3 : index
    %c0_5 = arith.constant 0 : index
    %12 = vector.load %arg4[%c3, %c0_5] : memref<128x2048xf32, #tpu.memory_space<vmem>>, vector<3x2048xf32>
    tpu.vector_store %arg4[%c3, %c0_5], %11 {strides = array<i32>} : memref<128x2048xf32, #tpu.memory_space<vmem>>, vector<3x2048xf32>,
    %cst = arith.constant 2.000000e+00 : f32
    %13 = vector.broadcast %cst : f32 to vector<3x2048xf32>
    %14 = arith.mulf %13, %4 : vector<3x2048xf32>
    %15 = arith.mulf %14, %5 : vector<3x2048xf32>
    %cst_6 = arith.constant 2.000000e+00 : f32
    %16 = vector.broadcast %cst_6 : f32 to vector<3x2048xf32>
    %17 = arith.mulf %16, %4 : vector<3x2048xf32>
    %18 = arith.mulf %17, %4 : vector<3x2048xf32>
    %cst_7 = arith.constant 1.000000e+00 : f32
    %19 = vector.broadcast %cst_7 : f32 to vector<3x2048xf32>
    %20 = arith.subf %19, %18 : vector<3x2048xf32>
    %c1 = arith.constant 1 : index
    %21 = memref.load %arg1[%c1] : memref<6xf32, #tpu.memory_space<smem>>
    %22 = vector.broadcast %21 : f32 to vector<3x2048xf32>
    %23 = arith.mulf %15, %22 : vector<3x2048xf32>
    %c6 = arith.constant 6 : index
    %c0_8 = arith.constant 0 : index
    %24 = vector.load %arg4[%c6, %c0_8] : memref<128x2048xf32, #tpu.memory_space<vmem>>, vector<3x2048xf32>
    tpu.vector_store %arg4[%c6, %c0_8], %23 {strides = array<i32>} : memref<128x2048xf32, #tpu.memory_space<vmem>>, vector<3x2048xf32>,
    %25 = vector.broadcast %21 : f32 to vector<3x2048xf32>
    %26 = arith.mulf %20, %25 : vector<3x2048xf32>
    %c9 = arith.constant 9 : index
    %c0_9 = arith.constant 0 : index
    %27 = vector.load %arg4[%c9, %c0_9] : memref<128x2048xf32, #tpu.memory_space<vmem>>, vector<3x2048xf32>
    tpu.vector_store %arg4[%c9, %c0_9], %26 {strides = array<i32>} : memref<128x2048xf32, #tpu.memory_space<vmem>>, vector<3x2048xf32>,
    %cst_10 = arith.constant 2.000000e+00 : f32
    %28 = vector.broadcast %cst_10 : f32 to vector<3x2048xf32>
    %29 = arith.mulf %28, %15 : vector<3x2048xf32>
    %30 = arith.mulf %29, %20 : vector<3x2048xf32>
    %cst_11 = arith.constant 2.000000e+00 : f32
    %31 = vector.broadcast %cst_11 : f32 to vector<3x2048xf32>
    %32 = arith.mulf %31, %15 : vector<3x2048xf32>
    %33 = arith.mulf %32, %15 : vector<3x2048xf32>
    %cst_12 = arith.constant 1.000000e+00 : f32
    %34 = vector.broadcast %cst_12 : f32 to vector<3x2048xf32>
    %35 = arith.subf %34, %33 : vector<3x2048xf32>
    %c2 = arith.constant 2 : index
    %36 = memref.load %arg1[%c2] : memref<6xf32, #tpu.memory_space<smem>>
    %37 = vector.broadcast %36 : f32 to vector<3x2048xf32>
    %38 = arith.mulf %30, %37 : vector<3x2048xf32>
    %c12 = arith.constant 12 : index
    %c0_13 = arith.constant 0 : index
    %39 = vector.load %arg4[%c12, %c0_13] : memref<128x2048xf32, #tpu.memory_space<vmem>>, vector<3x2048xf32>
    tpu.vector_store %arg4[%c12, %c0_13], %38 {strides = array<i32>} : memref<128x2048xf32, #tpu.memory_space<vmem>>, vector<3x2048xf32>,
    %40 = vector.broadcast %36 : f32 to vector<3x2048xf32>
    %41 = arith.mulf %35, %40 : vector<3x2048xf32>
    %c15 = arith.constant 15 : index
    %c0_14 = arith.constant 0 : index
    %42 = vector.load %arg4[%c15, %c0_14] : memref<128x2048xf32, #tpu.memory_space<vmem>>, vector<3x2048xf32>
    tpu.vector_store %arg4[%c15, %c0_14], %41 {strides = array<i32>} : memref<128x2048xf32, #tpu.memory_space<vmem>>, vector<3x2048xf32>,
    %cst_15 = arith.constant 2.000000e+00 : f32
    %43 = vector.broadcast %cst_15 : f32 to vector<3x2048xf32>
    %44 = arith.mulf %43, %30 : vector<3x2048xf32>
    %45 = arith.mulf %44, %35 : vector<3x2048xf32>
    %cst_16 = arith.constant 2.000000e+00 : f32
    %46 = vector.broadcast %cst_16 : f32 to vector<3x2048xf32>
    %47 = arith.mulf %46, %30 : vector<3x2048xf32>
    %48 = arith.mulf %47, %30 : vector<3x2048xf32>
    %cst_17 = arith.constant 1.000000e+00 : f32
    %49 = vector.broadcast %cst_17 : f32 to vector<3x2048xf32>
    %50 = arith.subf %49, %48 : vector<3x2048xf32>
    %c3_18 = arith.constant 3 : index
    %51 = memref.load %arg1[%c3_18] : memref<6xf32, #tpu.memory_space<smem>>
    %52 = vector.broadcast %51 : f32 to vector<3x2048xf32>
    %53 = arith.mulf %45, %52 : vector<3x2048xf32>
    %c18 = arith.constant 18 : index
    %c0_19 = arith.constant 0 : index
    %54 = vector.load %arg4[%c18, %c0_19] : memref<128x2048xf32, #tpu.memory_space<vmem>>, vector<3x2048xf32>
    tpu.vector_store %arg4[%c18, %c0_19], %53 {strides = array<i32>} : memref<128x2048xf32, #tpu.memory_space<vmem>>, vector<3x2048xf32>,
    %55 = vector.broadcast %51 : f32 to vector<3x2048xf32>
    %56 = arith.mulf %50, %55 : vector<3x2048xf32>
    %c21 = arith.constant 21 : index
    %c0_20 = arith.constant 0 : index
    %57 = vector.load %arg4[%c21, %c0_20] : memref<128x2048xf32, #tpu.memory_space<vmem>>, vector<3x2048xf32>
    tpu.vector_store %arg4[%c21, %c0_20], %56 {strides = array<i32>} : memref<128x2048xf32, #tpu.memory_space<vmem>>, vector<3x2048xf32>,
    %cst_21 = arith.constant 2.000000e+00 : f32
    %58 = vector.broadcast %cst_21 : f32 to vector<3x2048xf32>
    %59 = arith.mulf %58, %45 : vector<3x2048xf32>
    %60 = arith.mulf %59, %50 : vector<3x2048xf32>
    %cst_22 = arith.constant 2.000000e+00 : f32
    %61 = vector.broadcast %cst_22 : f32 to vector<3x2048xf32>
    %62 = arith.mulf %61, %45 : vector<3x2048xf32>
    %63 = arith.mulf %62, %45 : vector<3x2048xf32>
    %cst_23 = arith.constant 1.000000e+00 : f32
    %64 = vector.broadcast %cst_23 : f32 to vector<3x2048xf32>
    %65 = arith.subf %64, %63 : vector<3x2048xf32>
    %c4 = arith.constant 4 : index
    %66 = memref.load %arg1[%c4] : memref<6xf32, #tpu.memory_space<smem>>
    %67 = vector.broadcast %66 : f32 to vector<3x2048xf32>
    %68 = arith.mulf %60, %67 : vector<3x2048xf32>
    %c24 = arith.constant 24 : index
    %c0_24 = arith.constant 0 : index
    %69 = vector.load %arg4[%c24, %c0_24] : memref<128x2048xf32, #tpu.memory_space<vmem>>, vector<3x2048xf32>
    tpu.vector_store %arg4[%c24, %c0_24], %68 {strides = array<i32>} : memref<128x2048xf32, #tpu.memory_space<vmem>>, vector<3x2048xf32>,
    %70 = vector.broadcast %66 : f32 to vector<3x2048xf32>
    %71 = arith.mulf %65, %70 : vector<3x2048xf32>
    %c27 = arith.constant 27 : index
    %c0_25 = arith.constant 0 : index
    %72 = vector.load %arg4[%c27, %c0_25] : memref<128x2048xf32, #tpu.memory_space<vmem>>, vector<3x2048xf32>
    tpu.vector_store %arg4[%c27, %c0_25], %71 {strides = array<i32>} : memref<128x2048xf32, #tpu.memory_space<vmem>>, vector<3x2048xf32>,
    %cst_26 = arith.constant 2.000000e+00 : f32
    %73 = vector.broadcast %cst_26 : f32 to vector<3x2048xf32>
    %74 = arith.mulf %73, %60 : vector<3x2048xf32>
    %75 = arith.mulf %74, %65 : vector<3x2048xf32>
    %cst_27 = arith.constant 2.000000e+00 : f32
    %76 = vector.broadcast %cst_27 : f32 to vector<3x2048xf32>
    %77 = arith.mulf %76, %60 : vector<3x2048xf32>
    %78 = arith.mulf %77, %60 : vector<3x2048xf32>
    %cst_28 = arith.constant 1.000000e+00 : f32
    %79 = vector.broadcast %cst_28 : f32 to vector<3x2048xf32>
    %80 = arith.subf %79, %78 : vector<3x2048xf32>
    %c5 = arith.constant 5 : index
    %81 = memref.load %arg1[%c5] : memref<6xf32, #tpu.memory_space<smem>>
    %82 = vector.broadcast %81 : f32 to vector<3x2048xf32>
    %83 = arith.mulf %75, %82 : vector<3x2048xf32>
    %c30 = arith.constant 30 : index
    %c0_29 = arith.constant 0 : index
    %84 = vector.load %arg4[%c30, %c0_29] : memref<128x2048xf32, #tpu.memory_space<vmem>>, vector<3x2048xf32>
    tpu.vector_store %arg4[%c30, %c0_29], %83 {strides = array<i32>} : memref<128x2048xf32, #tpu.memory_space<vmem>>, vector<3x2048xf32>,
    %85 = vector.broadcast %81 : f32 to vector<3x2048xf32>
    %86 = arith.mulf %80, %85 : vector<3x2048xf32>
    %c33 = arith.constant 33 : index
    %c0_30 = arith.constant 0 : index
    %87 = vector.load %arg4[%c33, %c0_30] : memref<128x2048xf32, #tpu.memory_space<vmem>>, vector<3x2048xf32>
    tpu.vector_store %arg4[%c33, %c0_30], %86 {strides = array<i32>} : memref<128x2048xf32, #tpu.memory_space<vmem>>, vector<3x2048xf32>,
    %c0_31 = arith.constant 0 : index
    %c0_32 = arith.constant 0 : index
    %88 = vector.load %arg4[%c0_31, %c0_32] : memref<128x2048xf32, #tpu.memory_space<vmem>>, vector<128x2048xf32>
    %89 = tpu.transpose %88, [1, 0] : vector<128x2048xf32> -> vector<2048x128xf32>
    %90 = vector.extract_strided_slice %89 {offsets = [0, 0], sizes = [2048, 36], strides = [1, 1]} : vector<2048x128xf32> to vector<2048x36xf32>
    %c0_33 = arith.constant 0 : index
    %c0_34 = arith.constant 0 : index
    %91 = vector.load %arg3[%c0_33, %c0_34] : memref<2048x36xf32, #tpu.memory_space<vmem>>, vector<2048x36xf32>
    tpu.vector_store %arg3[%c0_33, %c0_34], %90 {strides = array<i32>} : memref<2048x36xf32, #tpu.memory_space<vmem>>, vector<2048x36xf32>,
    return
  }
  func.func @transform_0(%arg0: i32) -> i32 {
    %c0_i32 = arith.constant 0 : i32
    %c0_i32_0 = arith.constant 0 : i32
    return %c0_i32 : i32
  }
  func.func @transform_1(%arg0: i32) -> (i32, i32) {
    %c0_i32 = arith.constant 0 : i32
    %c0_i32_0 = arith.constant 0 : i32
    return %c0_i32, %arg0 : i32, i32
  }
  func.func @transform_2(%arg0: i32) -> (i32, i32) {
    %c0_i32 = arith.constant 0 : i32
    %c0_i32_0 = arith.constant 0 : i32
    return %arg0, %c0_i32 : i32, i32
  }
}

</mosaic_0001>

<bundles_post_ra>
// kernel: tpu_custom_call.1
= control target key start
LH: loop header
LB: loop body
LE: loop exit
PB: predicated region body
PF: predicated region fallthrough
CT: control target
= control target key end

     0   :  { %7 = vsyncpa [#allocation5], 0  ;;  %s8156_s0 = inlined_call_operand.hbm [shape: f32[6], index: 0, kind: input, shape index: {}]   ;;  %s8157_s1 = inlined_call_operand.hbm [shape: f32[3,6144], index: 1, kind: input, shape index: {}]   ;;  %s8158_s2 = inlined_call_operand.vmem [shape: f32[6144,36], index: 2, kind: output, shape index: {}]  }
   0x1   :  { %8 = vsyncpa [#allocation4], 0 }
   0x2   :  { %10 = vsyncpa [#allocation4 + $0x1], 0  ;;  %s5463_s9 = smov 0   ;;  %s5465_s10 = smov 0  }
   0x3   :  { %s5467_s11 = smov 0   ;;  %s5469_s12 = smov 0  }
   0x4 LB: > { %s5482_s13 = sadd.s32 4294967295, %s5437_s12   ;;  %p57_p0 = scmp.ne.s32.totalorder %s5429_s10, %s5425_s9  ;;  %s5437_s12 = sphi %s5469_s12, %s8312_s12   ;;  %s5433_s11 = sphi %s5467_s11, %s8311_s11   ;;  %s5429_s10 = sphi %s5465_s10, %s8310_s10   ;;  %s5425_s9 = sphi %s5463_s9, %s8309_s9  }
   0x5   : > { %p58_p1 = scmp.eq.s32.totalorder %s5482_s13, 0  ;;  %p5227_p2 = scmp.ge.s32.totalorder %s5437_s12, 1 }
   0x6   : > { %p94_p3 = scmp.lt.s32.totalorder %s5437_s12, 4  ;;  %p5228_p4 = scmp.ne.s32.totalorder %s5482_s13, 0 }
   0x7   : > { %p5491_p5 = por %p58_p1, %p57_p0  ;;  %s106_s17 = sshll.u32 %s8156_s0, 4  ;;  %s107_s17 = int_to_ptr.hbm [resolvable:$true] %s106_s17 }
   0x8   : > { %p5498_p6 = pnand %p5227_p2, %p94_p3  ;;  %s5505_s19 = sadd.s32 1, %s5437_s12  }
   0x9   : > { %s41_s20 = ssub.s32 %s5437_s12, %s5505_s19  ;;  %s44_s21 = sadd.s32 1, %s5433_s11 }
   0xa   : > { %p5301_p7 = pneg %p5498_p6  ;;  %p42_p9 = scmp.eq.s32.totalorder %s41_s20, 0 }
   0xb   : > { %p51_p10 = scmp.ne.s32.totalorder %s5433_s11, %s5429_s10  ;;  %s5439_s22 = smov [#allocation3]  }
   0xc   : > { %p5302_p8 = pnand %p5301_p7, %p58_p1  ;;  %p52_p11 = scmp.eq.s32.totalorder %s5437_s12, 0 }
   0xd   : > { %s5515_s23 = scalar_select %p42_p9, %s5433_s11, %s44_s21  }
   0xe   : > { %5304 = dma.hbm_to_smem (!%p5302_p8), %s107_s17, 16, %s5439_s22, [#allocation5]  }
   0xf   : > { %p5310_p12 = scmp.lt.s32.totalorder %s5437_s12, 3  ;;  %s117_s24 = sand.u32 1, %s5433_s11  }
  0x10   : > { %s5294_s25 = sshll.u32 %s5437_s12, 6  ;;  %p53_p13 = por %p52_p11, %p51_p10 }
  0x11   : > { %s5230_s26 = sshll.u32 %s117_s24, 6  ;;  %s126_s29 = scalar_lea.hbm %s8157_s1, %s5294_s25 }
  0x12   : > { %s128_s30 = sshll.u32 %s126_s29, 4  ;;  %s121_s3 = scalar_lea.vmem [#allocation6], %s5230_s26  ;;  %s129_s30 = int_to_ptr.hbm [resolvable:$true] %s128_s30 }
  0x13   : > { %s130_s4 = sshll.u32 %s121_s3, 4  ;;  %p5524_p0 = pnand %p5310_p12, %p53_p13  ;;  %s131_s4 = int_to_ptr.vmem [resolvable:$true] %s130_s4 }
  0x14   : > { %s118_s6 = scalar_lea.sflag [#allocation4], %s117_s24  ;;  %s5369_s7 = sshra.s32 %s129_s30, 4  ;;  %s5370_s7 = int_to_ptr.hbm [resolvable:$true] %s5369_s7 }
  0x15   : > { %s5371_s8 = scalar_lea.hbm %s5370_s7, 64  ;;  %p5373_p3 = pneg %p5524_p0 }
  0x16   : > { %p5372_p2 = scmp.ne.s32.totalorder %s5370_s7, %s5371_s8  ;;  %s5376_s15 = scalar_lea.hbm %s8157_s1, 192 }
  0x17   : > { %p5377_p9 = scmp.lt.s32.totalorder %s5370_s7, %s8157_s1  ;;  %p5378_p10 = scmp.lt.s32.totalorder %s5376_s15, %s5371_s8 }
  0x18   : > { %p5374_p7 = pnand %p5373_p3, %p5372_p2 }
  0x19   : > { %p5379_p11 = por %p5378_p10, %p5377_p9 }
  0x1a   : > { %p5375_p8 = pneg %p5374_p7 }
  0x1c   : > { %p5380_p12 = pnand %p5379_p11, %p5375_p8 }
  0x1e   : > { %5383 = shalt.err (!%p5380_p12)
}
  0x1f   : > { %5308 = dma.hbm_to_vmem [thread:$0]  (!%p5524_p0), %s129_s30, 1024, %s131_s4, %s118_s6  }
  0x20   : > { %139 = sbr.rel (%p5498_p6) target bundleno = 1599 (0x63f), region = 28 }
  0x25   : > { %5416 = dma.done.wait (%p58_p1), [#allocation5], 16  }
  0x26   : > { %5418 = vsyncadd (%p58_p1), [#allocation5], 4294967280  ;;  %s146_s20 = sand.u32 1, %s5429_s10  }
  0x27   : > { %s5235_s21 = sshll.u32 %s146_s20, 6  ;;  %s147_s22 = scalar_lea.sflag [#allocation4], %s146_s20 }
  0x28   : > { %s5545_s24 = scalar_lea.vmem [#allocation6], %s5235_s21 }
  0x29   : > { %5420 = dma.done.wait (%p5491_p5), %s147_s22, 1024  }
  0x2a   : > { %5422 = vsyncadd (%p5491_p5), %s147_s22, 4294966272 }
  0x2b   : > { %156 = sfence }
  0x2c   : > { %s5236_s18 = sshll.u32 %s5482_s13, 8 }
  0x2d   : > { %p175_p6 = scmp.lt.s32.totalorder %s5236_s18, 767  ;;  %183 = sbr.rel (%p5228_p4) target bundleno = 243 (0xf3), region = 40 }
  0x2f   : > { %s8314_s18 = smov (!%p175_p6, %s5236_s18), 767 }
  0x30   : > { %s5237_s25 = sshll.u32 %s8314_s18, 3 }
  0x31   : > { %s5555_s28 = scalar_lea.vmem %s8158_s2, %s5237_s25 }
  0x32   : > { %v5440_v0 = vmov 0.0  }
  0x33   : > { %184 = vst [vmem:[#allocation2 + $0x4b0] sm:$0xf0] %v5440_v0 }
  0x34   : > { %185 = vst [vmem:[#allocation2 + $0x5b0] sm:$0xf0] %v5440_v0 }
  0x35   : > { %186 = vst [vmem:[#allocation2 + $0x6d8] sm:$0xf0] %v5440_v0 }
  0x36   : > { %187 = vst [vmem:[#allocation2 + $0x218] sm:$0xf0] %v5440_v0 }
  0x37   : > { %188 = vst [vmem:[#allocation2 + $0x650] sm:$0xf0] %v5440_v0 }
  0x38   : > { %189 = vst [vmem:[#allocation2 + $0x168] sm:$0xf0] %v5440_v0 }
  0x39   : > { %190 = vst [vmem:[#allocation2 + $0x530] sm:$0xf0] %v5440_v0 }
  0x3a   : > { %191 = vst [vmem:[#allocation2 + $0x648] sm:$0xf0] %v5440_v0 }
  0x3b   : > { %192 = vst [vmem:[#allocation2 + $0x580] sm:$0xf0] %v5440_v0 }
  0x3c   : > { %193 = vst [vmem:[#allocation2 + $0x310] sm:$0xf0] %v5440_v0 }
  0x3d   : > { %194 = vst [vmem:[#allocation2 + $0x718] sm:$0xf0] %v5440_v0 }
  0x3e   : > { %195 = vst [vmem:[#allocation2 + $0x698] sm:$0xf0] %v5440_v0 }
  0x3f   : > { %196 = vst [vmem:[#allocation2 + $0x520] sm:$0xf0] %v5440_v0 }
  0x40   : > { %197 = vst [vmem:[#allocation2 + $0x750] sm:$0xf0] %v5440_v0 }
  0x41   : > { %198 = vst [vmem:[#allocation2 + $0x708] sm:$0xf0] %v5440_v0 }
  0x42   : > { %199 = vst [vmem:[#allocation2 + $0x120] sm:$0xf0] %v5440_v0 }
  0x43   : > { %200 = vst [vmem:[#allocation2 + $0xe0] sm:$0xff] %v5440_v0 }
  0x44   : > { %201 = vst [vmem:[#allocation2 + $0x188] sm:$0xff] %v5440_v0 }
  0x45   : > { %202 = vst [vmem:[#allocation2 + $0x538] sm:$0xff] %v5440_v0 }
  0x46   : > { %203 = vst [vmem:[#allocation2 + $0x140] sm:$0xff] %v5440_v0 }
  0x47   : > { %204 = vst [vmem:[#allocation2 + $0x4e0] sm:$0xff] %v5440_v0 }
  0x48   : > { %205 = vst [vmem:[#allocation2 + $0x7a8] sm:$0xff] %v5440_v0 }
  0x49   : > { %206 = vst [vmem:[#allocation2 + $0x7b8] sm:$0xff] %v5440_v0 }
  0x4a   : > { %207 = vst [vmem:[#allocation2 + $0x768] sm:$0xff] %v5440_v0 }
  0x4b   : > { %208 = vst [vmem:[#allocation2 + $0x5e8] sm:$0xff] %v5440_v0 }
  0x4c   : > { %209 = vst [vmem:[#allocation2 + $0xf8] sm:$0xff] %v5440_v0 }
  0x4d   : > { %210 = vst [vmem:[#allocation2 + $0x90] sm:$0xff] %v5440_v0 }
  0x4e   : > { %211 = vst [vmem:[#allocation2 + $0x568] sm:$0xff] %v5440_v0 }
  0x4f   : > { %212 = vst [vmem:[#allocation2 + $0x338] sm:$0xff] %v5440_v0 }
  0x50   : > { %213 = vst [vmem:[#allocation2 + $0x2c0] sm:$0xff] %v5440_v0 }
  0x51   : > { %214 = vst [vmem:[#allocation2 + $0x3c0] sm:$0xff] %v5440_v0 }
  0x52   : > { %215 = vst [vmem:[#allocation2 + $0x480] sm:$0xff] %v5440_v0 }
  0x53   : > { %216 = vst [vmem:[#allocation2 + $0x300] sm:$0xff] %v5440_v0 }
  0x54   : > { %217 = vst [vmem:[#allocation2 + $0x5c0] sm:$0xff] %v5440_v0 }
  0x55   : > { %218 = vst [vmem:[#allocation2 + $0x758] sm:$0xff] %v5440_v0 }
  0x56   : > { %219 = vst [vmem:[#allocation2 + $0x5e0] sm:$0xff] %v5440_v0 }
  0x57   : > { %220 = vst [vmem:[#allocation2 + $0x18] sm:$0xff] %v5440_v0 }
  0x58   : > { %221 = vst [vmem:[#allocation2 + $0x6c0] sm:$0xff] %v5440_v0 }
  0x59   : > { %222 = vst [vmem:[#allocation2 + $0x270] sm:$0xff] %v5440_v0 }
  0x5a   : > { %223 = vst [vmem:[#allocation2 + $0x1b8] sm:$0xff] %v5440_v0 }
  0x5b   : > { %224 = vst [vmem:[#allocation2 + $0x600] sm:$0xff] %v5440_v0 }
  0x5c   : > { %225 = vst [vmem:[#allocation2 + $0xa8] sm:$0xff] %v5440_v0 }
  0x5d   : > { %226 = vst [vmem:[#allocation2 + $0x5f8] sm:$0xff] %v5440_v0 }
  0x5e   : > { %227 = vst [vmem:[#allocation2 + $0x4e8] sm:$0xff] %v5440_v0 }
  0x5f   : > { %228 = vst [vmem:[#allocation2 + $0xc8] sm:$0xff] %v5440_v0 }
  0x60   : > { %229 = vst [vmem:[#allocation2 + $0x7c0] sm:$0xff] %v5440_v0 }
  0x61   : > { %230 = vst [vmem:[#allocation2 + $0x7e8] sm:$0xff] %v5440_v0 }
  0x62   : > { %231 = vst [vmem:[#allocation2 + $0x7f8] sm:$0xff] %v5440_v0 }
  0x63   : > { %232 = vst [vmem:[#allocation2 + $0x170] sm:$0xff] %v5440_v0 }
  0x64   : > { %233 = vst [vmem:[#allocation2 + $0x720] sm:$0xff] %v5440_v0 }
  0x65   : > { %234 = vst [vmem:[#allocation2 + $0x40] sm:$0xff] %v5440_v0 }
  0x66   : > { %235 = vst [vmem:[#allocation2 + $0x450] sm:$0xff] %v5440_v0 }
  0x67   : > { %236 = vst [vmem:[#allocation2 + $0x548] sm:$0xff] %v5440_v0 }
  0x68   : > { %237 = vst [vmem:[#allocation2 + $0x620] sm:$0xff] %v5440_v0 }
  0x69   : > { %238 = vst [vmem:[#allocation2 + $0x2e0] sm:$0xff] %v5440_v0 }
  0x6a   : > { %239 = vst [vmem:[#allocation2 + $0x20] sm:$0xff] %v5440_v0 }
  0x6b   : > { %240 = vst [vmem:[#allocation2 + $0x348] sm:$0xff] %v5440_v0 }
  0x6c   : > { %241 = vst [vmem:[#allocation2 + $0x5a0] sm:$0xff] %v5440_v0 }
  0x6d   : > { %242 = vst [vmem:[#allocation2 + $0x6e8] sm:$0xff] %v5440_v0 }
  0x6e   : > { %243 = vst [vmem:[#allocation2 + $0x510] sm:$0xff] %v5440_v0 }
  0x6f   : > { %244 = vst [vmem:[#allocation2 + $0x238] sm:$0xff] %v5440_v0 }
  0x70   : > { %245 = vst [vmem:[#allocation2 + $0x640] sm:$0xff] %v5440_v0 }
  0x71   : > { %246 = vst [vmem:[#allocation2 + $0x250] sm:$0xff] %v5440_v0 }
  0x72   : > { %247 = vst [vmem:[#allocation2 + $0x590] sm:$0xff] %v5440_v0 }
  0x73   : > { %248 = vst [vmem:[#allocation2 + $0x738] sm:$0xff] %v5440_v0 }
  0x74   : > { %249 = vst [vmem:[#allocation2 + $0x2f0] sm:$0xff] %v5440_v0 }
  0x75   : > { %250 = vst [vmem:[#allocation2 + $0x190] sm:$0xff] %v5440_v0 }
  0x76   : > { %251 = vst [vmem:[#allocation2 + $0x80] sm:$0xff] %v5440_v0 }
  0x77   : > { %252 = vst [vmem:[#allocation2 + $0x2b8] sm:$0xff] %v5440_v0 }
  0x78   : > { %253 = vst [vmem:[#allocation2 + $0x320] sm:$0xff] %v5440_v0 }
  0x79   : > { %254 = vst [vmem:[#allocation2 + $0x2d0] sm:$0xff] %v5440_v0 }
  0x7a   : > { %255 = vst [vmem:[#allocation2 + $0x240] sm:$0xff] %v5440_v0 }
  0x7b   : > { %256 = vst [vmem:[#allocation2 + $0xf0] sm:$0xff] %v5440_v0 }
  0x7c   : > { %257 = vst [vmem:[#allocation2 + $0x4f8] sm:$0xff] %v5440_v0 }
  0x7d   : > { %258 = vst [vmem:[#allocation2 + $0x158] sm:$0xff] %v5440_v0 }
  0x7e   : > { %259 = vst [vmem:[#allocation2 + $0x378] sm:$0xff] %v5440_v0 }
  0x7f   : > { %260 = vst [vmem:[#allocation2 + $0x138] sm:$0xff] %v5440_v0 }
  0x80   : > { %261 = vst [vmem:[#allocation2 + $0x798] sm:$0xff] %v5440_v0 }
  0x81   : > { %262 = vst [vmem:[#allocation2 + $0x1d8] sm:$0xff] %v5440_v0 }
  0x82   : > { %263 = vst [vmem:[#allocation2 + $0xd8] sm:$0xff] %v5440_v0 }
  0x83   : > { %264 = vst [vmem:[#allocation2 + $0x598] sm:$0xff] %v5440_v0 }
  0x84   : > { %265 = vst [vmem:[#allocation2 + $0x3a8] sm:$0xff] %v5440_v0 }
  0x85   : > { %266 = vst [vmem:[#allocation2 + $0x98] sm:$0xff] %v5440_v0 }
  0x86   : > { %267 = vst [vmem:[#allocation2 + $0x5b8] sm:$0xff] %v5440_v0 }
  0x87   : > { %268 = vst [vmem:[#allocation2 + $0x7d8] sm:$0xff] %v5440_v0 }
  0x88   : > { %269 = vst [vmem:[#allocation2 + $0x10] sm:$0xff] %v5440_v0 }
  0x89   : > { %270 = vst [vmem:[#allocation2 + $0x418] sm:$0xff] %v5440_v0 }
  0x8a   : > { %271 = vst [vmem:[#allocation2 + $0x3d8] sm:$0xff] %v5440_v0 }
  0x8b   : > { %272 = vst [vmem:[#allocation2 + $0x28] sm:$0xff] %v5440_v0 }
  0x8c   : > { %273 = vst [vmem:[#allocation2 + $0x3f8] sm:$0xff] %v5440_v0 }
  0x8d   : > { %274 = vst [vmem:[#allocation2 + $0x588] sm:$0xff] %v5440_v0 }
  0x8e   : > { %275 = vst [vmem:[#allocation2 + $0x478] sm:$0xff] %v5440_v0 }
  0x8f   : > { %276 = vst [vmem:[#allocation2 + $0x678] sm:$0xff] %v5440_v0 }
  0x90   : > { %277 = vst [vmem:[#allocation2 + $0x4c0] sm:$0xff] %v5440_v0 }
  0x91   : > { %278 = vst [vmem:[#allocation2 + $0x3c8] sm:$0xff] %v5440_v0 }
  0x92   : > { %279 = vst [vmem:[#allocation2 + $0x1c0] sm:$0xff] %v5440_v0 }
  0x93   : > { %280 = vst [vmem:[#allocation2 + $0x618] sm:$0xff] %v5440_v0 }
  0x94   : > { %281 = vst [vmem:[#allocation2 + $0x1f0] sm:$0xff] %v5440_v0 }
  0x95   : > { %282 = vst [vmem:[#allocation2 + $0x6b0] sm:$0xff] %v5440_v0 }
  0x96   : > { %283 = vst [vmem:[#allocation2 + $0x518] sm:$0xff] %v5440_v0 }
  0x97   : > { %284 = vst [vmem:[#allocation2 + $0x290] sm:$0xff] %v5440_v0 }
  0x98   : > { %285 = vst [vmem:[#allocation2 + $0x740] sm:$0xff] %v5440_v0 }
  0x99   : > { %286 = vst [vmem:[#allocation2 + $0x788] sm:$0xff] %v5440_v0 }
  0x9a   : > { %287 = vst [vmem:[#allocation2 + $0x48] sm:$0xff] %v5440_v0 }
  0x9b   : > { %288 = vst [vmem:[#allocation2 + $0x258] sm:$0xff] %v5440_v0 }
  0x9c   : > { %289 = vst [vmem:[#allocation2 + $0x398] sm:$0xff] %v5440_v0 }
  0x9d   : > { %290 = vst [vmem:[#allocation2 + $0x268] sm:$0xff] %v5440_v0 }
  0x9e   : > { %291 = vst [vmem:[#allocation2] sm:$0xff] %v5440_v0 }
  0x9f   : > { %292 = vst [vmem:[#allocation2 + $0x5a8] sm:$0xff] %v5440_v0 }
  0xa0   : > { %293 = vst [vmem:[#allocation2 + $0x2b0] sm:$0xff] %v5440_v0 }
  0xa1   : > { %294 = vst [vmem:[#allocation2 + $0x30] sm:$0xff] %v5440_v0 }
  0xa2   : > { %295 = vst [vmem:[#allocation2 + $0x358] sm:$0xff] %v5440_v0 }
  0xa3   : > { %296 = vst [vmem:[#allocation2 + $0x570] sm:$0xff] %v5440_v0 }
  0xa4   : > { %297 = vst [vmem:[#allocation2 + $0x3e0] sm:$0xff] %v5440_v0 }
  0xa5   : > { %298 = vst [vmem:[#allocation2 + $0x1b0] sm:$0xff] %v5440_v0 }
  0xa6   : > { %299 = vst [vmem:[#allocation2 + $0xc0] sm:$0xff] %v5440_v0 }
  0xa7   : > { %300 = vst [vmem:[#allocation2 + $0x2d8] sm:$0xff] %v5440_v0 }
  0xa8   : > { %301 = vst [vmem:[#allocation2 + $0xb8] sm:$0xff] %v5440_v0 }
  0xa9   : > { %302 = vst [vmem:[#allocation2 + $0x340] sm:$0xff] %v5440_v0 }
  0xaa   : > { %303 = vst [vmem:[#allocation2 + $0x7b0] sm:$0xff] %v5440_v0 }
  0xab   : > { %304 = vst [vmem:[#allocation2 + $0x230] sm:$0xff] %v5440_v0 }
  0xac   : > { %305 = vst [vmem:[#allocation2 + $0x328] sm:$0xff] %v5440_v0 }
  0xad   : > { %306 = vst [vmem:[#allocation2 + $0x3a0] sm:$0xff] %v5440_v0 }
  0xae   : > { %307 = vst [vmem:[#allocation2 + $0x7f0] sm:$0xff] %v5440_v0 }
  0xaf   : > { %308 = vst [vmem:[#allocation2 + $0x70] sm:$0xff] %v5440_v0 }
  0xb0   : > { %309 = vst [vmem:[#allocation2 + $0x440] sm:$0xff] %v5440_v0 }
  0xb1   : > { %310 = vst [vmem:[#allocation2 + $0x318] sm:$0xff] %v5440_v0 }
  0xb2   : > { %311 = vst [vmem:[#allocation2 + $0x468] sm:$0xff] %v5440_v0 }
  0xb3   : > { %312 = vst [vmem:[#allocation2 + $0x6a8] sm:$0xff] %v5440_v0 }
  0xb4   : > { %313 = vst [vmem:[#allocation2 + $0x7c8] sm:$0xff] %v5440_v0 }
  0xb5   : > { %314 = vst [vmem:[#allocation2 + $0x638] sm:$0xff] %v5440_v0 }
  0xb6   : > { %315 = vst [vmem:[#allocation2 + $0x550] sm:$0xff] %v5440_v0 }
  0xb7   : > { %316 = vst [vmem:[#allocation2 + $0x4c8] sm:$0xff] %v5440_v0 }
  0xb8   : > { %317 = vst [vmem:[#allocation2 + $0x2f8] sm:$0xff] %v5440_v0 }
  0xb9   : > { %318 = vst [vmem:[#allocation2 + $0x688] sm:$0xff] %v5440_v0 }
  0xba   : > { %319 = vst [vmem:[#allocation2 + $0xa0] sm:$0xff] %v5440_v0 }
  0xbb   : > { %320 = vst [vmem:[#allocation2 + $0x5c8] sm:$0xff] %v5440_v0 }
  0xbc   : > { %321 = vst [vmem:[#allocation2 + $0x3e8] sm:$0xff] %v5440_v0 }
  0xbd   : > { %322 = vst [vmem:[#allocation2 + $0xd0] sm:$0xff] %v5440_v0 }
  0xbe   : > { %323 = vst [vmem:[#allocation2 + $0x88] sm:$0xff] %v5440_v0 }
  0xbf   : > { %324 = vst [vmem:[#allocation2 + $0x130] sm:$0xff] %v5440_v0 }
  0xc0   : > { %325 = vst [vmem:[#allocation2 + $0x58] sm:$0xff] %v5440_v0 }
  0xc1   : > { %326 = vst [vmem:[#allocation2 + $0x658] sm:$0xff] %v5440_v0 }
  0xc2   : > { %327 = vst [vmem:[#allocation2 + $0x3b8] sm:$0xff] %v5440_v0 }
  0xc3   : > { %328 = vst [vmem:[#allocation2 + $0x660] sm:$0xff] %v5440_v0 }
  0xc4   : > { %329 = vst [vmem:[#allocation2 + $0x6f0] sm:$0xff] %v5440_v0 }
  0xc5   : > { %330 = vst [vmem:[#allocation2 + $0x728] sm:$0xff] %v5440_v0 }
  0xc6   : > { %331 = vst [vmem:[#allocation2 + $0x458] sm:$0xff] %v5440_v0 }
  0xc7   : > { %332 = vst [vmem:[#allocation2 + $0x6d0] sm:$0xff] %v5440_v0 }
  0xc8   : > { %333 = vst [vmem:[#allocation2 + $0x6f8] sm:$0xff] %v5440_v0 }
  0xc9   : > { %334 = vst [vmem:[#allocation2 + $0x278] sm:$0xff] %v5440_v0 }
  0xca   : > { %335 = vst [vmem:[#allocation2 + $0x4a0] sm:$0xff] %v5440_v0 }
  0xcb   : > { %336 = vst [vmem:[#allocation2 + $0x210] sm:$0xff] %v5440_v0 }
  0xcc   : > { %337 = vst [vmem:[#allocation2 + $0x178] sm:$0xff] %v5440_v0 }
  0xcd   : > { %338 = vst [vmem:[#allocation2 + $0x1a8] sm:$0xff] %v5440_v0 }
  0xce   : > { %339 = vst [vmem:[#allocation2 + $0x730] sm:$0xff] %v5440_v0 }
  0xcf   : > { %340 = vst [vmem:[#allocation2 + $0x790] sm:$0xff] %v5440_v0 }
  0xd0   : > { %341 = vst [vmem:[#allocation2 + $0x60] sm:$0xff] %v5440_v0 }
  0xd1   : > { %342 = vst [vmem:[#allocation2 + $0x558] sm:$0xff] %v5440_v0 }
  0xd2   : > { %343 = vst [vmem:[#allocation2 + $0x100] sm:$0xff] %v5440_v0 }
  0xd3   : > { %344 = vst [vmem:[#allocation2 + $0x540] sm:$0xff] %v5440_v0 }
  0xd4   : > { %345 = vst [vmem:[#allocation2 + $0x7a0] sm:$0xff] %v5440_v0 }
  0xd5   : > { %346 = vst [vmem:[#allocation2 + $0x5d0] sm:$0xff] %v5440_v0 }
  0xd6   : > { %347 = vst [vmem:[#allocation2 + $0x430] sm:$0xff] %v5440_v0 }
  0xd7   : > { %348 = vst [vmem:[#allocation2 + $0x760] sm:$0xff] %v5440_v0 }
  0xd8   : > { %349 = vst [vmem:[#allocation2 + $0x1f8] sm:$0xff] %v5440_v0 }
  0xd9   : > { %350 = vst [vmem:[#allocation2 + $0x6e0] sm:$0xff] %v5440_v0 }
  0xda   : > { %351 = vst [vmem:[#allocation2 + $0x400] sm:$0xff] %v5440_v0 }
  0xdb   : > { %352 = vst [vmem:[#allocation2 + $0x668] sm:$0xff] %v5440_v0 }
  0xdc   : > { %353 = vst [vmem:[#allocation2 + $0x4a8] sm:$0xff] %v5440_v0 }
  0xdd   : > { %354 = vst [vmem:[#allocation2 + $0x3d0] sm:$0xff] %v5440_v0 }
  0xde   : > { %355 = vst [vmem:[#allocation2 + $0x710] sm:$0xff] %v5440_v0 }
  0xdf   : > { %356 = vst [vmem:[#allocation2 + $0x150] sm:$0xff] %v5440_v0 }
  0xe0   : > { %357 = vst [vmem:[#allocation2 + $0x330] sm:$0xff] %v5440_v0 }
  0xe1   : > { %358 = vst [vmem:[#allocation2 + $0x228] sm:$0xff] %v5440_v0 }
  0xe2   : > { %359 = vst [vmem:[#allocation2 + $0x160] sm:$0xff] %v5440_v0 }
  0xe3   : > { %360 = vst [vmem:[#allocation2 + $0x7d0] sm:$0xff] %v5440_v0 }
  0xe4   : > { %361 = vst [vmem:[#allocation2 + $0x428] sm:$0xff] %v5440_v0 }
  0xe5   : > { %362 = vst [vmem:[#allocation2 + $0x408] sm:$0xff] %v5440_v0 }
  0xe6   : > { %363 = vst [vmem:[#allocation2 + $0x490] sm:$0xff] %v5440_v0 }
  0xe7   : > { %364 = vst [vmem:[#allocation2 + $0x1a0] sm:$0xff] %v5440_v0 }
  0xe8   : > { %365 = vst [vmem:[#allocation2 + $0x280] sm:$0xff] %v5440_v0 }
  0xe9   : > { %366 = vst [vmem:[#allocation2 + $0x6c8] sm:$0xff] %v5440_v0 }
  0xea   : > { %367 = vst [vmem:[#allocation2 + $0x5f0] sm:$0xff] %v5440_v0 }
  0xeb   : > { %368 = vst [vmem:[#allocation2 + $0x198] sm:$0xff] %v5440_v0 }
  0xec   : > { %369 = vst [vmem:[#allocation2 + $0x578] sm:$0xff] %v5440_v0 }
  0xed   : > { %370 = vst [vmem:[#allocation2 + $0x360] sm:$0xff] %v5440_v0 }
  0xee   : > { %371 = vst [vmem:[#allocation2 + $0x460] sm:$0xff] %v5440_v0 }
  0xef   : > { %372 = vst [vmem:[#allocation2 + $0x128] sm:$0xff] %v5440_v0 }
  0xf0   : > { %373 = vst [vmem:[#allocation2 + $0x488] sm:$0xff] %v5440_v0 }
  0xf1   : > { %374 = vst [vmem:[#allocation2 + $0x388] sm:$0xff] %v5440_v0 }
  0xf2   : > { %375 = vst [vmem:[#allocation2 + $0x608] sm:$0xff] %v5440_v0 }
  0xf3 PF: > { %v5752_v1 = vld [vmem:[%s5545_s24] sm:$0x77]  ;;  %v8167_v23 = vmov 683565275   ;;  %v8165_v25 = vmov 2475754826  }
  0xf4   : > { %v5755_v2 = vld [vmem:[%s5545_s24 + $0x20] sm:$0x77]  ;;  %v384_v3 = vand.u32 2147483647, %v5752_v1  ;;  %v387_v4 = vand.u32 2139095040, %v5752_v1  ;;  %s2856_s13 = sld [smem:[#allocation3]] }
  0xf5   : > { %v1004_v7 = vand.u32 2147483647, %v5755_v2  ;;  %v1007_v8 = vand.u32 2139095040, %v5755_v2  ;;  %v8163_v27 = vmov 2131351028   ;;  %s5287_s14 = sld [smem:[#allocation3 + $0x1]] }
  0xf6   : > { %v388_v5 = vshrl.u32 %v387_v4, 23  ;;  %v391_v6 = vand.u32 8388607, %v384_v3  ;;  %v8169_v29 = vmov 2102212464   ;;  %s6070_s29 = sld [smem:[#allocation3 + $0x2]] }
  0xf7   : > { %v1008_v11 = vshrl.u32 %v1007_v8, 23  ;;  %v1011_v15 = vand.u32 8388607, %v1004_v7  ;;  %v8161_v31 = vmov 920167782   ;;  %s5289_s30 = sld [smem:[#allocation3 + $0x3]] }
  0xf8   : > { %v5239_v9 = vadd.s32 4294967169, %v388_v5  ;;  %v392_v10 = vor.u32 8388608, %v391_v6  ;;  %v8159_v38 = vmov 1326507024   ;;  %s5290_s3 = sld [smem:[#allocation3 + $0x4]] }
  0xf9   : > { %v5251_v14 = vadd.s32 4294967169, %v1008_v11  ;;  %v1012_v21 = vor.u32 8388608, %v1011_v15  ;;  %s5291_s4 = sld [smem:[#allocation3 + $0x5]] }
  0xfa   : > { %v394_v12 = vadd.s32 1, %v5239_v9  ;;  %v5763_v13 = vshll.u32 %v392_v10, 8 }
  0xfb   : > { %v1014_v17 = vadd.s32 1, %v5251_v14  ;;  %v5788_v58 = vshll.u32 %v1012_v21, 8 }
  0xfc   : > { %vm395_vm0 = vcmp.gt.s32.totalorder %v394_v12, 0  ;;  %v433_v20 = vand.u32 65535, %v5763_v13  ;;  %v434_v57 = vshrl.u32 %v5763_v13, 16 }
  0xfd   : > { %v396_v16 = vsel %vm395_vm0, %v394_v12, 0  ;;  %vm1015_vm2 = vcmp.gt.s32.totalorder %v1014_v17, 0 }
  0xfe   : > { %v397_v18 = vshrl.u32 %v396_v16, 5  ;;  %v398_v19 = vand.u32 31, %v396_v16  ;;  %v1016_v43 = vsel %vm1015_vm2, %v1014_v17, 0 }
  0xff   : > { %v5779_v46 = vand.u32 31, %v1016_v43  ;;  %v5795_v62 = vshrl.u32 %v1016_v43, 5 }
 0x100   : > { %v399_v22 = vsub.s32 32, %v398_v19  ;;  %v401_v24 = vshll.u32 %v8167_v23, %v398_v19  ;;  %v404_v26 = vshll.u32 %v8165_v25, %v398_v19  ;;  %v407_v28 = vshll.u32 %v8163_v27, %v398_v19 }
 0x101   : > { %v410_v30 = vshll.u32 %v8169_v29, %v398_v19  ;;  %v413_v32 = vshll.u32 %v8161_v31, %v398_v19  ;;  %vm416_vm1 = vcmp.lt.s32.totalorder %v397_v18, 1  ;;  %vm417_vm3 = vcmp.lt.s32.totalorder %v397_v18, 2 }
 0x102   : > { %v400_v33 = vshrl.u32 %v8167_v23, %v399_v22  ;;  %v402_v34 = vshrl.u32 %v8165_v25, %v399_v22  ;;  %v405_v35 = vshrl.u32 %v8163_v27, %v399_v22  ;;  %v408_v36 = vshrl.u32 %v8169_v29, %v399_v22 }
 0x103   : > { %v411_v37 = vshrl.u32 %v8161_v31, %v399_v22  ;;  %v414_v39 = vshrl.u32 %v8159_v38, %v399_v22  ;;  %vm419_vm4 = vcmp.lt.s32.totalorder %v397_v18, 4  ;;  %vm418_vm5 = vcmp.lt.s32.totalorder %v397_v18, 3 }
 0x104   : > { %v403_v40 = vor.u32 %v402_v34, %v401_v24  ;;  %v406_v41 = vor.u32 %v405_v35, %v404_v26  ;;  %v409_v42 = vor.u32 %v408_v36, %v407_v28  ;;  %v5785_v54 = vsub.s32 32, %v5779_v46 }
 0x105   : > { %v412_v44 = vor.u32 %v411_v37, %v410_v30  ;;  %v415_v45 = vor.u32 %v414_v39, %v413_v32  ;;  %v1021_v6 = vshll.u32 %v8167_v23, %v5779_v46  ;;  %v1024_v9 = vshll.u32 %v8165_v25, %v5779_v46 }
 0x106   : > { %v420_v47 = vsel %vm416_vm1, %v400_v33, %v403_v40  ;;  %v421_v48 = vsel %vm419_vm4, %v409_v42, 2102212464  ;;  %v424_v49 = vsel %vm416_vm1, %v403_v40, %v406_v41  ;;  %v428_v50 = vsel %vm416_vm1, %v406_v41, %v409_v42 }
 0x107   : > { %v422_v51 = vsel %vm418_vm5, %v406_v41, %v421_v48  ;;  %v425_v52 = vsel %vm419_vm4, %v412_v44, 920167782  ;;  %v429_v53 = vsel %vm419_vm4, %v415_v45, 1326507024  ;;  %v1022_v8 = vshrl.u32 %v8165_v25, %v5785_v54 }
 0x108   : > { %v426_v55 = vsel %vm418_vm5, %v409_v42, %v425_v52  ;;  %v430_v56 = vsel %vm418_vm5, %v412_v44, %v429_v53  ;;  %v5791_v59 = vsel %vm417_vm3, %v420_v47, %v422_v51  ;;  %v1025_v10 = vshrl.u32 %v8163_v27, %v5785_v54 }
 0x109   : > { %v427_v60 = vsel %vm417_vm3, %v424_v49, %v426_v55  ;;  %v431_v61 = vsel %vm417_vm3, %v428_v50, %v430_v56  ;;  %v1027_v15 = vshll.u32 %v8163_v27, %v5779_v46  ;;  %v5807_v36 = vor.u32 %v1022_v8, %v1021_v6 }
 0x10a   : > { %v435_v63 = vand.u32 65535, %v431_v61  ;;  %v436_v0 = vshrl.u32 %v431_v61, 16  ;;  %v457_v4 = vand.u32 65535, %v427_v60  ;;  %v458_v5 = vshrl.u32 %v427_v60, 16 }
 0x10b   : > { %v8172_v37 = vmov 0   ;;  %v1030_v43 = vshll.u32 %v8169_v29, %v5779_v46  ;;  %v5816_v47 = vor.u32 %v1025_v10, %v1024_v9  ;;  %v1031_v51 = vshrl.u32 %v8161_v31, %v5785_v54 }
 0x10c   : > { %v437_v11 = vmul.u32 %v435_v63, %v433_v20  ;;  %v438_v12 = vmul.u32 %v436_v0, %v433_v20  ;;  %v439_v14 = vmul.u32 %v435_v63, %v434_v57  ;;  %v440_v16 = vmul.u32 %v436_v0, %v434_v57 }
 0x10d   : > { %v459_v17 = vmul.u32 %v457_v4, %v433_v20  ;;  %v460_v18 = vmul.u32 %v458_v5, %v433_v20  ;;  %v461_v19 = vmul.u32 %v457_v4, %v434_v57  ;;  %v462_v26 = vmul.u32 %v458_v5, %v434_v57 }
 0x10e   : > { %v441_v21 = vshll.u32 %v438_v12, 16  ;;  %v442_v22 = vshrl.u32 %v438_v12, 16  ;;  %v443_v24 = vshll.u32 %v439_v14, 16  ;;  %v444_v28 = vshrl.u32 %v439_v14, 16 }
 0x10f   : > { %v463_v30 = vshll.u32 %v460_v18, 16  ;;  %v464_v32 = vshrl.u32 %v460_v18, 16  ;;  %v465_v33 = vshll.u32 %v461_v19, 16  ;;  %v466_v35 = vshrl.u32 %v461_v19, 16 }
 0x110   : > { %vm445_vm6 = vc.u32 %v437_v11, %v441_v21  ;;  %v447_v34 = vadd.s32 %v441_v21, %v437_v11  ;;  %v1028_v20 = vshrl.u32 %v8169_v29, %v5785_v54  ;;  %v1033_v53 = vshll.u32 %v8161_v31, %v5779_v46 }
 0x111   : > { %v446_v39 = vsel %vm445_vm6, 1, %v8172_v37  ;;  %vm467_vm7 = vc.u32 %v459_v17, %v463_v30  ;;  %v469_v40 = vadd.s32 %v463_v30, %v459_v17  ;;  %v1034_v55 = vshrl.u32 %v8159_v38, %v5785_v54 }
 0x112   : > { %v448_v41 = vadd.s32 %v446_v39, %v440_v16  ;;  %vm449_vm8 = vc.u32 %v447_v34, %v443_v24  ;;  %v468_v42 = vsel %vm467_vm7, 1, %v8172_v37  ;;  %v1029_v50 = vor.u32 %v1028_v20, %v1027_v15 }
 0x113   : > { %v450_v44 = vsel %vm449_vm8, 1, %v8172_v37  ;;  %v470_v45 = vadd.s32 %v468_v42, %v462_v26  ;;  %vm471_vm9 = vc.u32 %v469_v40, %v465_v33  ;;  %vm1036_vm10 = vcmp.lt.s32.totalorder %v5795_v62, 1 }
 0x114   : > { %v452_v48 = vadd.s32 %v450_v44, %v448_v41  ;;  %v472_v49 = vsel %vm471_vm9, 1, %v8172_v37  ;;  %v5826_v57 = vadd.s32 %v469_v40, %v465_v33  ;;  %v1032_v60 = vor.u32 %v1031_v51, %v1030_v43 }
 0x115   : > { %v474_v52 = vadd.s32 %v472_v49, %v470_v45  ;;  %vm1038_vm11 = vcmp.lt.s32.totalorder %v5795_v62, 3  ;;  %v1035_v63 = vor.u32 %v1034_v55, %v1033_v53  ;;  %vm1037_vm12 = vcmp.lt.s32.totalorder %v5795_v62, 2 }
 0x116   : > { %v453_v56 = vadd.s32 %v452_v48, %v442_v22  ;;  %vm1039_vm13 = vcmp.lt.s32.totalorder %v5795_v62, 4  ;;  %v1044_v46 = vsel %vm1036_vm10, %v5807_v36, %v5816_v47  ;;  %v1053_v8 = vand.u32 65535, %v5788_v58 }
 0x117   : > { %v475_v61 = vadd.s32 %v474_v52, %v464_v32  ;;  %v1045_v4 = vsel %vm1039_vm13, %v1032_v60, 920167782  ;;  %v1054_v9 = vshrl.u32 %v5788_v58, 16  ;;  %v477_v10 = vmul.u32 %v5763_v13, %v5791_v59 }
 0x118   : > { %v5831_v0 = vadd.s32 %v453_v56, %v444_v28  ;;  %v1046_v6 = vsel %vm1038_vm11, %v1029_v50, %v1045_v4  ;;  %v1048_v12 = vsel %vm1036_vm10, %v5816_v47, %v1029_v50  ;;  %v1049_v15 = vsel %vm1039_vm13, %v1035_v63, 1326507024 }
 0x119   : > { %v476_v5 = vadd.s32 %v475_v61, %v466_v35  ;;  %v1047_v11 = vsel %vm1037_vm12, %v1044_v46, %v1046_v6  ;;  %v1050_v18 = vsel %vm1038_vm11, %v1032_v60, %v1049_v15  ;;  %v1020_v39 = vshrl.u32 %v8167_v23, %v5785_v54 }
 0x11a   : > { %vm479_vm14 = vc.u32 %v5831_v0, %v5826_v57  ;;  %v1077_v16 = vand.u32 65535, %v1047_v11  ;;  %v1078_v17 = vshrl.u32 %v1047_v11, 16  ;;  %v1051_v59 = vsel %vm1037_vm12, %v1048_v12, %v1050_v18 }
 0x11b   : > { %v480_v14 = vadd.s32 1, %v476_v5  ;;  %v1055_v24 = vand.u32 65535, %v1051_v59  ;;  %v1056_v26 = vshrl.u32 %v1051_v59, 16  ;;  %v1041_v44 = vsel %vm1039_vm13, %v1029_v50, 2102212464 }
 0x11c   : > { %v1079_v19 = vmul.u32 %v1077_v16, %v1053_v8  ;;  %v1080_v21 = vmul.u32 %v1078_v17, %v1053_v8  ;;  %v1081_v28 = vmul.u32 %v1077_v16, %v1054_v9  ;;  %v1082_v40 = vmul.u32 %v1078_v17, %v1054_v9 }
 0x11d   : > { %v481_v13 = vsel %vm479_vm14, %v480_v14, %v476_v5  ;;  %v1057_v33 = vmul.u32 %v1055_v24, %v1053_v8  ;;  %v1058_v34 = vmul.u32 %v1056_v26, %v1053_v8  ;;  %v1059_v35 = vmul.u32 %v1055_v24, %v1054_v9 }
 0x11e   : > { %v482_v22 = vadd.s32 %v481_v13, %v477_v10  ;;  %v1083_v30 = vshll.u32 %v1080_v21, 16  ;;  %v1085_v20 = vshll.u32 %v1081_v28, 16  ;;  %v1060_v42 = vmul.u32 %v1056_v26, %v1054_v9 }
 0x11f   : > { %v1061_v43 = vshll.u32 %v1058_v34, 16  ;;  %v1063_v45 = vshll.u32 %v1059_v35, 16  ;;  %v1040_v54 = vsel %vm1036_vm10, %v1020_v39, %v5807_v36  ;;  %v1042_v50 = vsel %vm1038_vm11, %v5816_v47, %v1041_v44 }
 0x120   : > { %v483_v32 = vadd.s32 536870912, %v482_v22  ;;  %vm1087_vm15 = vc.u32 %v1079_v19, %v1083_v30  ;;  %v1089_v49 = vadd.s32 %v1083_v30, %v1079_v19  ;;  %v1084_v61 = vshrl.u32 %v1080_v21, 16 }
 0x121   : > { %v1088_v48 = vsel %vm1087_vm15, 1, %v8172_v37  ;;  %vm1065_vm0 = vc.u32 %v1057_v33, %v1061_v43  ;;  %v1067_v52 = vadd.s32 %v1061_v43, %v1057_v33  ;;  %v1062_v63 = vshrl.u32 %v1058_v34, 16 }
 0x122   : > { %v5860_v41 = vshrl.u32 %v483_v32, 30  ;;  %v1066_v53 = vsel %vm1065_vm0, 1, %v8172_v37  ;;  %v1090_v55 = vadd.s32 %v1088_v48, %v1082_v40  ;;  %vm1091_vm1 = vc.u32 %v1089_v49, %v1085_v20 }
 0x123   : > { %v1068_v60 = vadd.s32 %v1066_v53, %v1060_v42  ;;  %vm1069_vm2 = vc.u32 %v1067_v52, %v1063_v45  ;;  %v1086_v46 = vshrl.u32 %v1081_v28, 16  ;;  %v1092_v4 = vsel %vm1091_vm1, 1, %v8172_v37 }
 0x124   : > { %v485_v51 = vshll.u32 %v5860_v41, 30  ;;  %v1070_v36 = vsel %vm1069_vm2, 1, %v8172_v37  ;;  %v1094_v6 = vadd.s32 %v1092_v4, %v1090_v55  ;;  %v1064_v8 = vshrl.u32 %v1059_v35, 16 }
 0x125   : > { %v1072_v9 = vadd.s32 %v1070_v36, %v1068_v60  ;;  %v1043_v11 = vsel %vm1037_vm12, %v1040_v54, %v1042_v50  ;;  %v1093_v15 = vadd.s32 %v1089_v49, %v1085_v20  ;;  %v478_v19 = vadd.s32 %v5826_v57, %v5831_v0 }
 0x126   : > { %v486_v56 = vsub.s32 %v482_v22, %v485_v51  ;;  %v1095_v12 = vadd.s32 %v1094_v6, %v1084_v61  ;;  %v1097_v13 = vmul.u32 %v5788_v58, %v1043_v11  ;;  %vm386_vm7 = vcmp.lt.s32.totalorder %v5752_v1, 0 }
 0x127   : > { %v1073_v14 = vadd.s32 %v1072_v9, %v1062_v63  ;;  %v508_v44 = vsub.s32 4, %v5860_v41  ;;  %vm385_vm8 = vcmp.le.f32.partialorder %v384_v3, 0.7853982  ;;  %vm1006_vm11 = vcmp.lt.s32.totalorder %v5755_v2, 0 }
 0x128   : > { %vm487_vm3 = vcmp.lt.s32.totalorder %v486_v56, 0  ;;  %v488_v5 = vsub.s32 0, %v486_v56  ;;  %v1096_v16 = vadd.s32 %v1095_v12, %v1086_v46  ;;  %vm1005_vm13 = vcmp.le.f32.partialorder %v1004_v7, 0.7853982 }
 0x129   : > { %v1074_v18 = vadd.s32 %v1073_v14, %v1064_v8  ;;  %v509_v52 = vsel %vm386_vm7, %v508_v44, %v5860_v41  ;;  %vm527_vm15 = vweird.f32 %v5752_v1 }
 0x12a   : > { %v489_v10 = vsel %vm487_vm3, %v488_v5, %v486_v56  ;;  %v1100_v59 = vadd.s32 1, %v1096_v16  ;;  %v5889_v50 = vsel %vm385_vm8, 0, %v509_v52 }
 0x12b   : > { %v490_v47 = vclz %v489_v10  ;;  %vm1099_vm5 = vc.u32 %v1074_v18, %v1093_v15  ;;  %v528_v6 = vadd.s32 3, %v5889_v50 }
 0x12c   : > { %v1101_v22 = vsel %vm1099_vm5, %v1100_v59, %v1096_v16 }
 0x12d   : > { %v5240_v17 = vadd.s32 4294967294, %v490_v47  ;;  %v1102_v28 = vadd.s32 %v1101_v22, %v1097_v13 }
 0x12f   : > { %vm5241_vm4 = vcmp.lt.s32.totalorder %v5240_v17, 0  ;;  %v1103_v33 = vadd.s32 536870912, %v1102_v28 }
 0x130   : > { %v493_v21 = vsel %vm5241_vm4, 0, %v5240_v17 }
 0x131   : > { %v494_v24 = vsub.s32 32, %v493_v21  ;;  %v495_v62 = vshll.u32 %v486_v56, %v493_v21  ;;  %v498_v26 = vsub.s32 4294967266, %v493_v21  ;;  %v5880_v39 = vshrl.u32 %v1103_v33, 30 }
 0x132   : > { %v1098_v56 = vadd.s32 %v1093_v15, %v1074_v18  ;;  %v529_v15 = vand.u32 3, %v528_v6 }
 0x133   : > { %v496_v30 = vshrl.u32 %v478_v19, %v494_v24  ;;  %v499_v32 = vadd.s32 127, %v498_v26  ;;  %v1105_v20 = vshll.u32 %v5880_v39, 30  ;;  %v1128_v26 = vsub.s32 4, %v5880_v39 }
 0x134   : > { %vm534_vm10 = vcmp.eq.s32.totalorder %v529_v15, 2  ;;  %vm531_vm12 = vcmp.eq.s32.totalorder %v529_v15, 0  ;;  %vm530_vm14 = vcmp.lt.s32.totalorder %v529_v15, 2 }
 0x135   : > { %v497_v34 = vor.u32 %v496_v30, %v495_v62  ;;  %v500_v35 = vshll.u32 %v499_v32, 23  ;;  %v1106_v0 = vsub.s32 %v1102_v28, %v1105_v20 }
 0x137   : > { %v501_v58 = vor.u32 4788187, %v500_v35  ;;  %v504_v40 = vcvt.s32.f32 %v497_v34  ;;  %vm1107_vm6 = vcmp.lt.s32.totalorder %v1106_v0, 0  ;;  %v1108_v43 = vsub.s32 0, %v1106_v0 }
 0x138   : > { %v1129_v35 = vsel %vm1006_vm11, %v1128_v26, %v5880_v39 }
 0x139   : > { %v502_v57 = vand.u32 2147483647, %v501_v58  ;;  %v1109_v48 = vsel %vm1107_vm6, %v1108_v43, %v1106_v0  ;;  %vm1147_vm6 = vweird.f32 %v5755_v2 }
 0x13a   : > { %v1110_v49 = vclz %v1109_v48 }
 0x13b   : > { %v505_v42 = vmul.f32 %v504_v40, %v502_v57  ;;  %v5909_v40 = vstv %s2856_s13 }
 0x13c   : > { %v5252_v53 = vadd.s32 4294967294, %v1110_v49 }
 0x13d   : > { %v506_v45 = vxor.u32 2147483648, %v505_v42 }
 0x13e   : > { %vm5253_vm9 = vcmp.lt.s32.totalorder %v5252_v53, 0 }
 0x13f   : > { %v507_v51 = vsel %vm386_vm7, %v506_v45, %v505_v42  ;;  %v1113_v63 = vsel %vm5253_vm9, 0, %v5252_v53 }
 0x140   : > { %v510_v54 = vsel %vm385_vm8, %v5752_v1, %v507_v51  ;;  %v1114_v46 = vsub.s32 32, %v1113_v63  ;;  %v1115_v4 = vshll.u32 %v1106_v0, %v1113_v63  ;;  %v1118_v3 = vsub.s32 4294967266, %v1113_v63 }
 0x141   : > { %v512_v55 = vmul.f32 %v510_v54, %v510_v54  ;;  %v1131_v0 = vsel %vm1005_vm13, 0, %v1129_v35 }
 0x142   : > { %v1116_v8 = vshrl.u32 %v1098_v56, %v1114_v46  ;;  %v1119_v41 = vadd.s32 127, %v1118_v3  ;;  %v1148_v39 = vadd.s32 3, %v1131_v0 }
 0x143   : > { %v513_v60 = vmul.f32 -0.001358992, %v512_v55  ;;  %v520_v61 = vmul.f32 -0.00019511016, %v512_v55 }
 0x144   : > { %v1117_v11 = vor.u32 %v1116_v8, %v1115_v4  ;;  %v1120_v12 = vshll.u32 %v1119_v41, 23  ;;  %v1149_v53 = vand.u32 3, %v1148_v39 }
 0x145   : > { %v514_v5 = vadd.f32 0.041655596, %v513_v60  ;;  %v521_v36 = vadd.f32 0.008332121, %v520_v61  ;;  %v1768_v60 = vand.u32 3, %v5889_v50  ;;  %v2384_v61 = vand.u32 3, %v1131_v0 }
 0x146   : > { %v1121_v16 = vor.u32 4788187, %v1120_v12  ;;  %v1124_v17 = vcvt.s32.f32 %v1117_v11  ;;  %vm1154_vm0 = vcmp.eq.s32.totalorder %v1149_v53, 2  ;;  %vm1151_vm1 = vcmp.eq.s32.totalorder %v1149_v53, 0 }
 0x147   : > { %v515_v9 = vmul.f32 %v514_v5, %v512_v55  ;;  %v522_v10 = vmul.f32 %v521_v36, %v512_v55  ;;  %v5919_v5 = vld [vmem:[%s5545_s24 + $0x8] sm:$0x77]  ;;  %vm2389_vm2 = vcmp.eq.s32.totalorder %v2384_v61, 2  ;;  %vm1770_vm3 = vcmp.eq.s32.totalorder %v1768_v60, 0 }
 0x148   : > { %v1122_v59 = vand.u32 2147483647, %v1121_v16  ;;  %v542_v36 = vand.u32 2139095040, %v5919_v5  ;;  %vm1773_vm4 = vcmp.eq.s32.totalorder %v1768_v60, 2  ;;  %vm2386_vm5 = vcmp.eq.s32.totalorder %v2384_v61, 0 }
 0x149   : > { %v516_v47 = vadd.f32 -0.4999988, %v515_v9  ;;  %v523_v14 = vadd.f32 -0.16666654, %v522_v10  ;;  %vm1150_vm7 = vcmp.lt.s32.totalorder %v1149_v53, 2  ;;  %vm1769_vm8 = vcmp.lt.s32.totalorder %v1768_v60, 2 }
 0x14a   : > { %v1125_v22 = vmul.f32 %v1124_v17, %v1122_v59  ;;  %v543_v50 = vshrl.u32 %v542_v36, 23  ;;  %vm2385_vm9 = vcmp.lt.s32.totalorder %v2384_v61, 2 }
 0x14b   : > { %v517_v18 = vmul.f32 %v516_v47, %v512_v55  ;;  %v524_v13 = vmul.f32 %v523_v14, %v512_v55 }
 0x14c   : > { %v1126_v28 = vxor.u32 2147483648, %v1125_v22  ;;  %v5242_v11 = vadd.s32 4294967169, %v543_v50  ;;  %v5991_v50 = vstv %s5287_s14 }
 0x14d   : > { %v5892_v19 = vadd.f32 1.0, %v517_v18  ;;  %v525_v21 = vadd.f32 1.0, %v524_v13  ;;  %8190 = vst [vmem:[#allocation9_spill] sm:$0xff] %v5991_v50 }
 0x14e   : > { %v1127_v33 = vsel %vm1006_vm11, %v1126_v28, %v1125_v22  ;;  %v549_v17 = vadd.s32 1, %v5242_v11 }
 0x14f   : > { %v5894_v24 = vmul.f32 %v525_v21, %v510_v54  ;;  %v535_v62 = vxor.u32 2147483648, %v5892_v19  ;;  %v1130_v58 = vsel %vm1005_vm13, %v5755_v2, %v1127_v33 }
 0x150   : > { %v1132_v20 = vmul.f32 %v1130_v58, %v1130_v58 }
 0x151   : > { %v532_v30 = vxor.u32 2147483648, %v5894_v24  ;;  %v536_v32 = vsel %vm534_vm10, %v535_v62, %v5894_v24  ;;  %v1775_v14 = vsel %vm1773_vm4, %v535_v62, %v5894_v24  ;;  %vm550_vm10 = vcmp.gt.s32.totalorder %v549_v17, 0 }
 0x152   : > { %v1133_v42 = vmul.f32 -0.001358992, %v1132_v20  ;;  %v1140_v43 = vmul.f32 -0.00019511016, %v1132_v20  ;;  %v551_v62 = vsel %vm550_vm10, %v549_v17, 0 }
 0x153   : > { %v533_v34 = vsel %vm531_vm12, %v5892_v19, %v532_v30  ;;  %v1772_v47 = vsel %vm1770_vm3, %v5892_v19, %v532_v30  ;;  %v553_v2 = vand.u32 31, %v551_v62 }
 0x154   : > { %v537_v7 = vsel %vm530_vm14, %v533_v34, %v536_v32  ;;  %v1134_v45 = vadd.f32 0.041655596, %v1133_v42  ;;  %v1141_v48 = vadd.f32 0.008332121, %v1140_v43  ;;  %v1776_v59 = vsel %vm1769_vm8, %v1772_v47, %v1775_v14  ;;  %v6004_v47 = vld [vmem:[%s5545_s24 + $0x28] sm:$0x77] }
 0x155   : > { %v5913_v57 = vsel %vm527_vm15, nan, %v537_v7  ;;  %v1777_v19 = vsel %vm527_vm15, nan, %v1776_v59  ;;  %v5950_v0 = vsub.s32 32, %v553_v2  ;;  %v559_v53 = vshll.u32 %v8165_v25, %v553_v2 }
 0x156   : > { %v2858_v44 = vmul.f32 %v5909_v40, %v5913_v57  ;;  %v1135_v49 = vmul.f32 %v1134_v45, %v1132_v20  ;;  %v1142_v51 = vmul.f32 %v1141_v48, %v1132_v20  ;;  %v2933_v32 = vmul.f32 %v5909_v40, %v1777_v19 }
 0x157   : > { %v3024_v45 = vmul.f32 2.0, %v5913_v57  ;;  %v562_v60 = vshll.u32 %v8163_v27, %v553_v2  ;;  %v563_v61 = vshrl.u32 %v8169_v29, %v5950_v0  ;;  %v566_v36 = vshrl.u32 %v8161_v31, %v5950_v0 }
 0x158   : > { %2874 = vst [vmem:[#allocation1] ss:$2 sm:$0xff] %v2858_v44  ;;  %v1136_v52 = vadd.f32 -0.4999988, %v1135_v49  ;;  %v1143_v54 = vadd.f32 -0.16666654, %v1142_v51  ;;  %v556_v51 = vshll.u32 %v8167_v23, %v553_v2 }
 0x159   : > { %v539_v44 = vand.u32 2147483647, %v5919_v5  ;;  %v5965_v49 = vshrl.u32 %v551_v62, 5  ;;  %v6016_v59 = vmul.f32 %v3024_v45, %v5913_v57 }
 0x15a   : > { %v1137_v55 = vmul.f32 %v1136_v52, %v1132_v20  ;;  %v1144_v56 = vmul.f32 %v1143_v54, %v1132_v20  ;;  %v557_v54 = vshrl.u32 %v8165_v25, %v5950_v0 }
 0x15b   : > { %vm571_vm11 = vcmp.lt.s32.totalorder %v5965_v49, 1  ;;  %vm573_vm12 = vcmp.lt.s32.totalorder %v5965_v49, 3  ;;  %vm574_vm13 = vcmp.lt.s32.totalorder %v5965_v49, 4  ;;  %vm572_vm14 = vcmp.lt.s32.totalorder %v5965_v49, 2 }
 0x15c   : > { %v1138_v4 = vadd.f32 1.0, %v1137_v55  ;;  %v1145_v3 = vadd.f32 1.0, %v1144_v56  ;;  %v560_v55 = vshrl.u32 %v8163_v27, %v5950_v0  ;;  %v546_v56 = vand.u32 8388607, %v539_v44 }
 0x15e   : > { %v1146_v6 = vmul.f32 %v1145_v3, %v1130_v58  ;;  %v1155_v8 = vxor.u32 2147483648, %v1138_v4  ;;  %v5999_v11 = vor.u32 %v560_v55, %v559_v53  ;;  %v547_v14 = vor.u32 8388608, %v546_v56 }
 0x15f   : > { %v2881_v63 = vld.sshfl [vmem:[#allocation1] sm:$0xff pattern:$0x75316420]  ;;  %v2882_v46 = vld.sshfl [vmem:[#allocation1 + $0x8] sm:$0xff pattern:$0x75316420] }
 0x160   : > { %2917 = vst [vmem:[#allocation2 + $0x78] sm:$0x7] %v2881_v63  ;;  %v1152_v41 = vxor.u32 2147483648, %v1146_v6  ;;  %v1156_v9 = vsel %vm1154_vm0, %v1155_v8, %v1146_v6  ;;  %v2391_v10 = vsel %vm2389_vm2, %v1155_v8, %v1146_v6  ;;  %v565_v63 = vshll.u32 %v8169_v29, %v553_v2 }
 0x161   : > { %2918 = vst [vmem:[#allocation2 + $0x298] sm:$0x7] %v2882_v46  ;;  %v5989_v8 = vmul.f32 %v3024_v45, %v1777_v19  ;;  %v6031_v62 = vshll.u32 %v547_v14, 8  ;;  %v3048_v53 = vsub.f32 1.0, %v6016_v59  ;;  %v555_v14 = vshrl.u32 %v8167_v23, %v5950_v0 }
 0x162   : > { %v1153_v12 = vsel %vm1151_vm1, %v1138_v4, %v1152_v41  ;;  %v2388_v15 = vsel %vm2386_vm5, %v1138_v4, %v1152_v41  ;;  %v568_v41 = vshll.u32 %v8161_v31, %v553_v2 }
 0x163   : > { %v1157_v16 = vsel %vm1150_vm7, %v1153_v12, %v1156_v9  ;;  %v2392_v13 = vsel %vm2385_vm9, %v2388_v15, %v2391_v10  ;;  %v5997_v10 = vor.u32 %v557_v54, %v556_v51  ;;  %v569_v12 = vshrl.u32 %v8159_v38, %v5950_v0 }
 0x164   : > { %v1158_v18 = vsel %vm1147_vm6, nan, %v1157_v16  ;;  %v2393_v26 = vsel %vm1147_vm6, nan, %v2392_v13  ;;  %v564_v15 = vor.u32 %v563_v61, %v562_v60  ;;  %v567_v16 = vor.u32 %v566_v36, %v565_v63 }
 0x165   : > { %v2862_v21 = vmul.f32 %v5909_v40, %v1158_v18  ;;  %v3028_v22 = vmul.f32 2.0, %v1158_v18  ;;  %v2937_v48 = vmul.f32 %v5909_v40, %v2393_v26  ;;  %v570_v13 = vor.u32 %v569_v12, %v568_v41 }
 0x166   : > { %v583_v19 = vsel %vm571_vm11, %v5999_v11, %v564_v15  ;;  %v588_v45 = vand.u32 65535, %v6031_v62  ;;  %v3256_v49 = vmul.f32 2.0, %v5989_v8 }
 0x167   : > { %2889 = vst [vmem:[#allocation1] ss:$2 sm:$0xff] %v2862_v21  ;;  %v5932_v28 = vmul.f32 %v3028_v22, %v1158_v18  ;;  %v5936_v24 = vmul.f32 %v3028_v22, %v2393_v26  ;;  %v3058_v18 = vmul.f32 %v5991_v50, %v5989_v8  ;;  %v579_v21 = vsel %vm571_vm11, %v5997_v10, %v5999_v11 }
 0x168   : > { %v1162_v22 = vand.u32 2139095040, %v6004_v47  ;;  %v580_v26 = vsel %vm574_vm13, %v567_v16, 920167782  ;;  %v584_v57 = vsel %vm574_vm13, %v570_v13, 1326507024 }
 0x169   : > { %v3260_v30 = vmul.f32 2.0, %v5936_v24  ;;  %v3052_v33 = vsub.f32 1.0, %v5932_v28  ;;  %v581_v2 = vsel %vm573_vm12, %v564_v15, %v580_v26  ;;  %v3062_v36 = vmul.f32 %v5991_v50, %v5936_v24 }
 0x16b   : > { %v5942_v34 = vmul.f32 %v3260_v30, %v5936_v24  ;;  %v5946_v35 = vmul.f32 %v3260_v30, %v3052_v33  ;;  %v3165_v24 = vmul.f32 %v5991_v50, %v3048_v53 }
 0x16d   : > { %v3284_v7 = vsub.f32 1.0, %v5942_v34  ;;  %v3477_v20 = vmul.f32 2.0, %v5946_v35 }
 0x16e   : > { %v2893_v58 = vld.sshfl [vmem:[#allocation1] sm:$0xff pattern:$0x75316420]  ;;  %v2894_v1 = vld.sshfl [vmem:[#allocation1 + $0x8] sm:$0xff pattern:$0x75316420] }
 0x16f   : > { %2949 = vst [vmem:[#allocation1] ss:$2 sm:$0xff] %v2933_v32  ;;  %v5954_v42 = vmul.f32 %v3477_v20, %v3284_v7  ;;  %v5957_v43 = vmul.f32 %v3477_v20, %v5946_v35 }
 0x170   : > { %2925 = vst [vmem:[#allocation2 + $0x108] sm:$0x7] %v2893_v58  ;;  %v585_v58 = vsel %vm573_vm12, %v567_v16, %v584_v57 }
 0x171   : > { %2926 = vst [vmem:[#allocation2 + $0x208] sm:$0x7] %v2894_v1  ;;  %v5963_v39 = vmul.f32 2.0, %v5954_v42  ;;  %v3501_v52 = vsub.f32 1.0, %v5957_v43  ;;  %v582_v1 = vsel %vm572_vm14, %v579_v21, %v581_v2  ;;  %v586_v20 = vsel %vm572_vm14, %v583_v19, %v585_v58 }
 0x172   : > { %v590_v51 = vand.u32 65535, %v586_v20  ;;  %v591_v54 = vshrl.u32 %v586_v20, 16  ;;  %v612_v55 = vand.u32 65535, %v582_v1  ;;  %v613_v56 = vshrl.u32 %v582_v1, 16 }
 0x173   : > { %v5985_v3 = vmul.f32 %v5963_v39, %v3501_v52  ;;  %v576_v21 = vsel %vm574_vm13, %v564_v15, 2102212464 }
 0x174   : > { %v592_v60 = vmul.u32 %v590_v51, %v588_v45  ;;  %v593_v61 = vmul.u32 %v591_v54, %v588_v45  ;;  %v615_v41 = vmul.u32 %v613_v56, %v588_v45 }
 0x175   : > { %v5995_v9 = vmul.f32 2.0, %v5985_v3 }
 0x176   : > { %v2956_v46 = vld.sshfl [vmem:[#allocation1] sm:$0xff pattern:$0x75316420]  ;;  %v5980_v4 = vld.sshfl [vmem:[#allocation1 + $0x8] sm:$0xff pattern:$0x75316420] }
 0x177   : > { %2964 = vst [vmem:[#allocation1] ss:$2 sm:$0xff] %v2937_v48  ;;  %v2976_v6 = vrot.slane %v2956_v46, 5  ;;  %v6009_v17 = vmul.f32 %v5995_v9, %v5985_v3  ;;  %v589_v48 = vshrl.u32 %v6031_v62, 16  ;;  %v1163_v46 = vshrl.u32 %v1162_v22, 23 }
 0x178   : > { %v618_v19 = vshll.u32 %v615_v41, 16  ;;  %v597_v0 = vshrl.u32 %v593_v61, 16 }
 0x179   : > { %3008 = vst [vmem:[#allocation2 + $0x78] sm:$0x38] %v2976_v6  ;;  %v594_v63 = vmul.u32 %v590_v51, %v589_v48  ;;  %v614_v6 = vmul.u32 %v612_v55, %v588_v45  ;;  %v616_v12 = vmul.u32 %v612_v55, %v589_v48  ;;  %v595_v16 = vmul.u32 %v591_v54, %v589_v48 }
 0x17a   : > { %8191 = vst [vmem:[#allocation10_spill] sm:$0xff] %v6009_v17  ;;  %v617_v26 = vmul.u32 %v613_v56, %v589_v48  ;;  %v575_v51 = vsel %vm571_vm11, %v555_v14, %v5997_v10  ;;  %v5254_v56 = vadd.s32 4294967169, %v1163_v46 }
 0x17b   : > { %v598_v13 = vshll.u32 %v594_v63, 16  ;;  %v620_v57 = vshll.u32 %v616_v12, 16  ;;  %vm622_vm0 = vc.u32 %v614_v6, %v618_v19  ;;  %v624_v48 = vadd.s32 %v618_v19, %v614_v6 }
 0x17c   : > { %v623_v15 = vsel %vm622_vm0, 1, %v8172_v37  ;;  %v621_v10 = vshrl.u32 %v616_v12, 16  ;;  %vm541_vm0 = vcmp.lt.s32.totalorder %v5919_v5, 0 }
 0x17d   : > { %v625_v55 = vadd.s32 %v623_v15, %v617_v26  ;;  %vm626_vm2 = vc.u32 %v624_v48, %v620_v57  ;;  %v6072_v46 = vadd.s32 %v624_v48, %v620_v57 }
 0x17e   : > { %v6033_v30 = vld.sshfl [vmem:[#allocation1] sm:$0xff pattern:$0x75316420]  ;;  %v6035_v32 = vld.sshfl [vmem:[#allocation1 + $0x8] sm:$0xff pattern:$0x75316420] }
 0x17f   : > { %8192 = vst [vmem:[#allocation11_spill] sm:$0xff] %v6033_v30  ;;  %v627_v6 = vsel %vm626_vm2, 1, %v8172_v37 }
 0x180   : > { %8193 = vst [vmem:[#allocation12_spill] sm:$0xff] %v6035_v32  ;;  %v629_v14 = vadd.s32 %v627_v6, %v625_v55 }
 0x181   : > { %3074 = vst [vmem:[#allocation1] ss:$2 sm:$0xff] %v3058_v18  ;;  %v596_v18 = vshll.u32 %v593_v61, 16 }
 0x183   : > { %vm600_vm15 = vc.u32 %v592_v60, %v596_v18  ;;  %v602_v58 = vadd.s32 %v596_v18, %v592_v60  ;;  %v599_v60 = vshrl.u32 %v594_v63, 16  ;;  %v1159_v18 = vand.u32 2147483647, %v6004_v47 }
 0x184   : > { %v601_v20 = vsel %vm600_vm15, 1, %v8172_v37 }
 0x185   : > { %v603_v45 = vadd.s32 %v601_v20, %v595_v16  ;;  %vm604_vm1 = vc.u32 %v602_v58, %v598_v13  ;;  %v577_v16 = vsel %vm573_vm12, %v5999_v11, %v576_v21  ;;  %v1169_v13 = vadd.s32 1, %v5254_v56 }
 0x186   : > { %v605_v54 = vsel %vm604_vm1, 1, %v8172_v37  ;;  %v578_v11 = vsel %vm572_vm14, %v575_v51, %v577_v16  ;;  %v1166_v12 = vand.u32 8388607, %v1159_v18  ;;  %v3169_v20 = vmul.f32 %v5991_v50, %v3052_v33 }
 0x187   : > { %v607_v61 = vadd.s32 %v605_v54, %v603_v45  ;;  %vm1170_vm3 = vcmp.gt.s32.totalorder %v1169_v13, 0  ;;  %v632_v45 = vmul.u32 %v6031_v62, %v578_v11  ;;  %vm540_vm1 = vcmp.le.f32.partialorder %v539_v44, 0.7853982 }
 0x188   : > { %v3081_v2 = vld.sshfl [vmem:[#allocation1] sm:$0xff pattern:$0x75316420]  ;;  %v6054_v22 = vld.sshfl [vmem:[#allocation1 + $0x8] sm:$0xff pattern:$0x75316420] }
 0x189   : > { %v3101_v1 = vrot.slane %v3081_v2, 2  ;;  %3089 = vst [vmem:[#allocation1] ss:$2 sm:$0xff] %v3062_v36  ;;  %v619_v36 = vshrl.u32 %v615_v41, 16  ;;  %v608_v19 = vadd.s32 %v607_v61, %v597_v0  ;;  %v1171_v2 = vsel %vm1170_vm3, %v1169_v13, 0 }
 0x18a   : > { %v6084_v57 = vshrl.u32 %v1171_v2, 5  ;;  %v1173_v0 = vand.u32 31, %v1171_v2  ;;  %v1167_v54 = vor.u32 8388608, %v1166_v12  ;;  %v6106_v13 = vmul.f32 %v3256_v49, %v3048_v53 }
 0x18b   : > { %3133 = vst [vmem:[#allocation2 + $0x78] sm:$0xc0] %v3101_v1  ;;  %v6080_v21 = vadd.s32 %v608_v19, %v599_v60  ;;  %v630_v26 = vadd.s32 %v629_v14, %v619_v36  ;;  %v6109_v19 = vstv %s6070_s29 }
 0x18c   : > { %3149 = vst [vmem:[#allocation2 + $0xe8] sm:$0x1] %v3101_v1  ;;  %v1174_v15 = vsub.s32 32, %v1173_v0  ;;  %v1176_v48 = vshll.u32 %v8167_v23, %v1173_v0  ;;  %v1179_v51 = vshll.u32 %v8165_v25, %v1173_v0  ;;  %v1182_v28 = vshll.u32 %v8163_v27, %v1173_v0 }
 0x18d   : > { %v631_v1 = vadd.s32 %v630_v26, %v621_v10  ;;  %vm634_vm4 = vc.u32 %v6080_v21, %v6072_v46  ;;  %v1185_v33 = vshll.u32 %v8169_v29, %v1173_v0  ;;  %v1188_v55 = vshll.u32 %v8161_v31, %v1173_v0 }
 0x18e   : > { %v1177_v62 = vshrl.u32 %v8165_v25, %v1174_v15  ;;  %v1180_v60 = vshrl.u32 %v8163_v27, %v1174_v15  ;;  %vm1191_vm5 = vcmp.lt.s32.totalorder %v6084_v57, 1  ;;  %v1183_v36 = vshrl.u32 %v8169_v29, %v1174_v15 }
 0x18f   : > { %v1186_v16 = vshrl.u32 %v8161_v31, %v1174_v15  ;;  %v1189_v6 = vshrl.u32 %v8159_v38, %v1174_v15  ;;  %vm1193_vm6 = vcmp.lt.s32.totalorder %v6084_v57, 3  ;;  %vm1194_vm7 = vcmp.lt.s32.totalorder %v6084_v57, 4 }
 0x190   : > { %v6074_v63 = vld.sshfl [vmem:[#allocation1] sm:$0xff pattern:$0x75316420]  ;;  %v6076_v41 = vld.sshfl [vmem:[#allocation1 + $0x8] sm:$0xff pattern:$0x75316420]  ;;  %v1178_v11 = vor.u32 %v1177_v62, %v1176_v48  ;;  %v6113_v26 = vor.u32 %v1180_v60, %v1179_v51  ;;  %v3290_v51 = vmul.f32 %v6109_v19, %v6106_v13  ;;  %v633_v29 = vadd.s32 %v6072_v46, %v6080_v21 }
 0x191   : > { %8194 = vst [vmem:[#allocation13_spill] sm:$0xff] %v6074_v63  ;;  %v1190_v0 = vor.u32 %v1189_v6, %v1188_v55  ;;  %v6117_v59 = vshll.u32 %v1167_v54, 8  ;;  %vm1192_vm8 = vcmp.lt.s32.totalorder %v6084_v57, 2 }
 0x192   : > { %8195 = vst [vmem:[#allocation14_spill] sm:$0xff] %v6076_v41  ;;  %v4121_v58 = vld [vmem:[#allocation2 + $0x78] sm:$0xff] }
 0x193   : > { %3181 = vst [vmem:[#allocation1] ss:$2 sm:$0xff] %v3165_v24  ;;  %4377 = vxpose.xlu0.b32.start [1/16] %v4121_v58, 128  ;;  %v635_v24 = vadd.s32 1, %v631_v1  ;;  %v1184_v58 = vor.u32 %v1183_v36, %v1182_v28  ;;  %v1208_v55 = vand.u32 65535, %v6117_v59 }
 0x195   : > { %v636_v56 = vsel %vm634_vm4, %v635_v24, %v631_v1  ;;  %v1187_v1 = vor.u32 %v1186_v16, %v1185_v33  ;;  %v1203_v48 = vsel %vm1191_vm5, %v6113_v26, %v1184_v58  ;;  %v1204_v33 = vsel %vm1194_vm7, %v1190_v0, 1326507024 }
 0x196   : > { %v637_v61 = vadd.s32 %v636_v56, %v632_v45  ;;  %v6126_v45 = vmul.f32 %v3256_v49, %v5989_v8  ;;  %v1209_v56 = vshrl.u32 %v6117_v59, 16 }
 0x197   : > { %v1200_v24 = vsel %vm1194_vm7, %v1187_v1, 920167782  ;;  %v1205_v49 = vsel %vm1193_vm6, %v1187_v1, %v1204_v33 }
 0x198   : > { %v638_v2 = vadd.s32 536870912, %v637_v61  ;;  %v1201_v28 = vsel %vm1193_vm6, %v1184_v58, %v1200_v24  ;;  %v1206_v60 = vsel %vm1192_vm8, %v1203_v48, %v1205_v49 }
 0x199   : > { %v1210_v1 = vand.u32 65535, %v1206_v60  ;;  %v1211_v0 = vshrl.u32 %v1206_v60, 16  ;;  %v1196_v60 = vsel %vm1194_vm7, %v1184_v58, 2102212464  ;;  %vm682_vm7 = vweird.f32 %v5919_v5 }
 0x19a   : > { %v3188_v10 = vld.sshfl [vmem:[#allocation1] sm:$0xff pattern:$0x75316420]  ;;  %v6111_v14 = vld.sshfl [vmem:[#allocation1 + $0x8] sm:$0xff pattern:$0x75316420] }
 0x19b   : > { %3196 = vst [vmem:[#allocation1] ss:$2 sm:$0xff] %v3169_v20  ;;  %v3208_v12 = vrot.slane %v3188_v10, 7  ;;  %v6119_v53 = vshrl.u32 %v638_v2, 30  ;;  %v1199_v20 = vsel %vm1191_vm5, %v1178_v11, %v6113_v26  ;;  %v1213_v33 = vmul.u32 %v1211_v0, %v1208_v55 }
 0x19c   : > { %v1202_v8 = vsel %vm1192_vm8, %v1199_v20, %v1201_v28  ;;  %v1212_v28 = vmul.u32 %v1210_v1, %v1208_v55 }
 0x19d   : > { %3240 = vst [vmem:[#allocation2 + $0xe8] sm:$0xe] %v3208_v12  ;;  %v640_v54 = vshll.u32 %v6119_v53, 30  ;;  %v1232_v36 = vand.u32 65535, %v1202_v8  ;;  %v1233_v16 = vshrl.u32 %v1202_v8, 16  ;;  %v1175_v12 = vshrl.u32 %v8167_v23, %v1174_v15 }
 0x19e   : > { %v1214_v8 = vmul.u32 %v1210_v1, %v1209_v56  ;;  %v3294_v15 = vmul.f32 %v6109_v19, %v5946_v35  ;;  %v1216_v27 = vshll.u32 %v1213_v33, 16  ;;  %v1215_v23 = vmul.u32 %v1211_v0, %v1209_v56 }
 0x19f   : > { %v6146_v62 = vsub.s32 %v637_v61, %v640_v54  ;;  %v3280_v61 = vsub.f32 1.0, %v6126_v45  ;;  %v1234_v20 = vmul.u32 %v1232_v36, %v1208_v55  ;;  %v1235_v24 = vmul.u32 %v1233_v16, %v1208_v55 }
 0x1a0   : > { %v1236_v48 = vmul.u32 %v1232_v36, %v1209_v56  ;;  %v1237_v49 = vmul.u32 %v1233_v16, %v1209_v56  ;;  %v1195_v31 = vsel %vm1191_vm5, %v1175_v12, %v1178_v11  ;;  %v1218_v25 = vshll.u32 %v1214_v8, 16 }
 0x1a1   : > { %vm642_vm9 = vcmp.lt.s32.totalorder %v6146_v62, 0  ;;  %v643_v2 = vsub.s32 0, %v6146_v62  ;;  %v1238_v38 = vshll.u32 %v1235_v24, 16  ;;  %vm1220_vm11 = vc.u32 %v1212_v28, %v1216_v27 }
 0x1a2   : > { %v6150_v6 = vld.sshfl [vmem:[#allocation1] sm:$0xff pattern:$0x75316420]  ;;  %v6152_v10 = vld.sshfl [vmem:[#allocation1 + $0x8] sm:$0xff pattern:$0x75316420]  ;;  %v1222_v55 = vadd.s32 %v1216_v27, %v1212_v28  ;;  %v1197_v11 = vsel %vm1193_vm6, %v6113_v26, %v1196_v60 }
 0x1a3   : > { %8196 = vst [vmem:[#allocation15_spill] sm:$0xff] %v6150_v6  ;;  %v644_v54 = vsel %vm642_vm9, %v643_v2, %v6146_v62  ;;  %v1240_v2 = vshll.u32 %v1236_v48, 16  ;;  %vm1242_vm10 = vc.u32 %v1234_v20, %v1238_v38  ;;  %v1239_v1 = vshrl.u32 %v1235_v24, 16 }
 0x1a4   : > { %8197 = vst [vmem:[#allocation16_spill] sm:$0xff] %v6152_v10  ;;  %v1243_v35 = vsel %vm1242_vm10, 1, %v8172_v37  ;;  %v1244_v58 = vadd.s32 %v1238_v38, %v1234_v20  ;;  %v1217_v56 = vshrl.u32 %v1213_v33, 16  ;;  %v1221_v0 = vsel %vm1220_vm11, 1, %v8172_v37  ;;  %v4201_v10 = vld [vmem:[#allocation2 + $0xe0] sm:$0xff] }
 0x1a5   : > { %3307 = vst [vmem:[#allocation1 + $0x1] ss:$2 sm:$0xff] %v3290_v51  ;;  %v645_v51 = vclz %v644_v54  ;;  %v1245_v12 = vadd.s32 %v1243_v35, %v1237_v49  ;;  %vm1224_vm13 = vc.u32 %v1222_v55, %v1218_v25  ;;  %v1223_v24 = vadd.s32 %v1221_v0, %v1215_v23 }
 0x1a6   : > { %v1225_v28 = vsel %vm1224_vm13, 1, %v8172_v37  ;;  %vm1246_vm14 = vc.u32 %v1244_v58, %v1240_v2  ;;  %v1219_v26 = vshrl.u32 %v1214_v8, 16  ;;  %v3366_v25 = vmul.f32 %v6109_v19, %v3280_v61 }
 0x1a7   : > { %v5243_v36 = vadd.s32 4294967294, %v645_v51  ;;  %v1247_v38 = vsel %vm1246_vm14, 1, %v8172_v37  ;;  %v1227_v20 = vadd.s32 %v1225_v28, %v1223_v24  ;;  %v1198_v60 = vsel %vm1192_vm8, %v1195_v31, %v1197_v11 }
 0x1a8   : > { %v1249_v33 = vadd.s32 %v1247_v38, %v1245_v12  ;;  %v6180_v55 = vadd.s32 %v1244_v58, %v1240_v2  ;;  %v663_v2 = vsub.s32 4, %v6119_v53  ;;  %v3370_v11 = vmul.f32 %v6109_v19, %v3284_v7 }
 0x1a9   : > { %vm5244_vm12 = vcmp.lt.s32.totalorder %v5243_v36, 0  ;;  %v3473_v58 = vmul.f32 2.0, %v6106_v13  ;;  %vm1161_vm8 = vcmp.lt.s32.totalorder %v6004_v47, 0  ;;  %vm6256_vm9 = vcmp.le.f32.partialorder %v1159_v18, 0.7853982 }
 0x1aa   : > { %v648_v27 = vsel %vm5244_vm12, 0, %v5243_v36  ;;  %v1228_v36 = vadd.s32 %v1227_v20, %v1217_v56  ;;  %v6204_v20 = vstv %s5289_s30  ;;  %vm1302_vm13 = vweird.f32 %v6004_v47 }
 0x1ab   : > { %v649_v46 = vsub.s32 32, %v648_v27  ;;  %v650_v21 = vshll.u32 %v6146_v62, %v648_v27  ;;  %v653_v51 = vsub.s32 4294967266, %v648_v27  ;;  %v1250_v62 = vadd.s32 %v1249_v33, %v1239_v1 }
 0x1ac   : > { %v3314_v54 = vld.sshfl [vmem:[#allocation1] sm:$0xff pattern:$0x75316420]  ;;  %v3315_v16 = vld.sshfl [vmem:[#allocation1 + $0x8] sm:$0xff pattern:$0x75316420]  ;;  %v6182_v0 = vadd.s32 %v1228_v36, %v1219_v26  ;;  %v6200_v34 = vmul.f32 %v3473_v58, %v3280_v61 }
 0x1ad   : > { %3322 = vst [vmem:[#allocation1 + $0x1] ss:$2 sm:$0xff] %v3294_v15  ;;  %v1241_v15 = vshrl.u32 %v1236_v48, 16  ;;  %v651_v49 = vshrl.u32 %v633_v29, %v649_v46  ;;  %v654_v23 = vadd.s32 127, %v653_v51  ;;  %v1252_v29 = vmul.u32 %v6117_v59, %v1198_v60 }
 0x1ae   : > { %3350 = vst [vmem:[#allocation2 + $0xe8] sm:$0x70] %v3314_v54  ;;  %vm1254_vm15 = vc.u32 %v6182_v0, %v6180_v55  ;;  %v664_v51 = vsel %vm541_vm0, %v663_v2, %v6119_v53  ;;  %v3507_v53 = vmul.f32 %v6204_v20, %v6200_v34 }
 0x1af   : > { %3351 = vst [vmem:[#allocation2 + $0xb0] sm:$0x70] %v3315_v16  ;;  %v652_v35 = vor.u32 %v651_v49, %v650_v21  ;;  %v655_v54 = vshll.u32 %v654_v23, 23  ;;  %v1251_v48 = vadd.s32 %v1250_v62, %v1241_v15  ;;  %v6207_v15 = vsel %vm540_vm1, 0, %v664_v51 }
 0x1b0   : > { %v683_v23 = vadd.s32 3, %v6207_v15 }
 0x1b1   : > { %v656_v12 = vor.u32 4788187, %v655_v54  ;;  %v659_v27 = vcvt.s32.f32 %v652_v35  ;;  %v1255_v31 = vadd.s32 1, %v1251_v48 }
 0x1b2   : > { %v684_v2 = vand.u32 3, %v683_v23 }
 0x1b3   : > { %v657_v57 = vand.u32 2147483647, %v656_v12  ;;  %v1256_v1 = vsel %vm1254_vm15, %v1255_v31, %v1251_v48  ;;  %v3489_v12 = vmul.f32 %v3473_v58, %v6106_v13 }
 0x1b4   : > { %v3326_v16 = vld.sshfl [vmem:[#allocation1] sm:$0xff pattern:$0x75316420]  ;;  %v3327_v8 = vld.sshfl [vmem:[#allocation1 + $0x8] sm:$0xff pattern:$0x75316420]  ;;  %v1257_v24 = vadd.s32 %v1256_v1, %v1252_v29 }
 0x1b5   : > { %3382 = vst [vmem:[#allocation1] ss:$2 sm:$0xff] %v3366_v25  ;;  %v660_v56 = vmul.f32 %v659_v27, %v657_v57  ;;  %vm689_vm4 = vcmp.eq.s32.totalorder %v684_v2, 2  ;;  %vm686_vm5 = vcmp.eq.s32.totalorder %v684_v2, 0  ;;  %vm685_vm6 = vcmp.lt.s32.totalorder %v684_v2, 2 }
 0x1b6   : > { %3358 = vst [vmem:[#allocation2 + $0x2e8] sm:$0x70] %v3326_v16  ;;  %v1258_v28 = vadd.s32 536870912, %v1257_v24  ;;  %v3602_v2 = vmul.f32 %v6204_v20, %v3501_v52 }
 0x1b7   : > { %3359 = vst [vmem:[#allocation2 + $0x4f0] sm:$0x70] %v3327_v8  ;;  %v661_v59 = vxor.u32 2147483648, %v660_v56 }
 0x1b8   : > { %v6202_v26 = vshrl.u32 %v1258_v28, 30  ;;  %v1253_v28 = vadd.s32 %v6180_v55, %v6182_v0 }
 0x1b9   : > { %v662_v38 = vsel %vm541_vm0, %v661_v59, %v660_v56  ;;  %v3497_v59 = vsub.f32 1.0, %v3489_v12 }
 0x1ba   : > { %v665_v44 = vsel %vm540_vm1, %v5919_v5, %v662_v38  ;;  %v1260_v25 = vshll.u32 %v6202_v26, 30 }
 0x1bb   : > { %v667_v33 = vmul.f32 %v665_v44, %v665_v44 }
 0x1bc   : > { %v3389_v46 = vld.sshfl [vmem:[#allocation1] sm:$0xff pattern:$0x75316420]  ;;  %v6195_v21 = vld.sshfl [vmem:[#allocation1 + $0x8] sm:$0xff pattern:$0x75316420]  ;;  %v1261_v49 = vsub.s32 %v1257_v24, %v1260_v25 }
 0x1bd   : > { %v3409_v7 = vrot.slane %v3389_v46, 1  ;;  %3397 = vst [vmem:[#allocation1] ss:$2 sm:$0xff] %v3370_v11  ;;  %v668_v45 = vmul.f32 -0.001358992, %v667_v33  ;;  %v3511_v11 = vmul.f32 %v6204_v20, %v5954_v42 }
 0x1be   : > { %v675_v61 = vmul.f32 -0.00019511016, %v667_v33  ;;  %vm1262_vm2 = vcmp.lt.s32.totalorder %v1261_v49, 0  ;;  %v1263_v62 = vsub.s32 0, %v1261_v49 }
 0x1bf   : > { %3441 = vst [vmem:[#allocation2 + $0xe8] sm:$0x80] %v3409_v7  ;;  %v669_v60 = vadd.f32 0.041655596, %v668_v45 }
 0x1c0   : > { %3457 = vst [vmem:[#allocation2 + $0x368] sm:$0x3] %v3409_v7  ;;  %v676_v36 = vadd.f32 0.008332121, %v675_v61  ;;  %v1264_v48 = vsel %vm1262_vm2, %v1263_v62, %v1261_v49 }
 0x1c1   : > { %v670_v16 = vmul.f32 %v669_v60, %v667_v33  ;;  %v1265_v29 = vclz %v1264_v48 }
 0x1c2   : > { %v677_v8 = vmul.f32 %v676_v36, %v667_v33 }
 0x1c3   : > { %v671_v31 = vadd.f32 -0.4999988, %v670_v16  ;;  %v5255_v1 = vadd.s32 4294967294, %v1265_v29 }
 0x1c4   : > { %v6213_v35 = vld.sshfl [vmem:[#allocation1] sm:$0xff pattern:$0x75316420]  ;;  %v6215_v54 = vld.sshfl [vmem:[#allocation1 + $0x8] sm:$0xff pattern:$0x75316420] }
 0x1c5   : > { %8198 = vst [vmem:[#allocation17_spill] sm:$0xff] %v6213_v35  ;;  %v678_v57 = vadd.f32 -0.16666654, %v677_v8  ;;  %v672_v56 = vmul.f32 %v671_v31, %v667_v33  ;;  %vm5256_vm3 = vcmp.lt.s32.totalorder %v5255_v1, 0 }
 0x1c6   : > { %8199 = vst [vmem:[#allocation18_spill] sm:$0xff] %v6215_v54  ;;  %v4137_v27 = vld [vmem:[#allocation2 + $0xe8] sm:$0xff]  ;;  %v1268_v58 = vsel %vm5256_vm3, 0, %v5255_v1  ;;  %v3689_v1 = vmul.f32 2.0, %v6200_v34 }
 0x1c7   : > { %3523 = vst [vmem:[#allocation1] ss:$2 sm:$0xff] %v3507_v53  ;;  %4378 = vxpose.xlu0.b32.cont [2/16] %v4137_v27, 128  ;;  %v679_v24 = vmul.f32 %v678_v57, %v667_v33  ;;  %v6222_v46 = vadd.f32 1.0, %v672_v56  ;;  %v1270_v38 = vshll.u32 %v1261_v49, %v1268_v58  ;;  %v1269_v45 = vsub.s32 32, %v1268_v58 }
 0x1c8   : > { %v1273_v61 = vsub.s32 4294967266, %v1268_v58  ;;  %v1283_v56 = vsub.s32 4, %v6202_v26  ;;  %v6262_v43 = vmul.f32 %v3689_v1, %v3497_v59 }
 0x1c9   : > { %v680_v13 = vadd.f32 1.0, %v679_v24  ;;  %v690_v33 = vxor.u32 2147483648, %v6222_v46  ;;  %v1271_v23 = vshrl.u32 %v1253_v28, %v1269_v45  ;;  %v6265_v45 = vstv %s5290_s3 }
 0x1ca   : > { %v1274_v49 = vadd.s32 127, %v1273_v61  ;;  %v3727_v24 = vmul.f32 %v6265_v45, %v5985_v3  ;;  %v3709_v3 = vmul.f32 %v5963_v39, %v5954_v42 }
 0x1cb   : > { %v6226_v53 = vmul.f32 %v680_v13, %v665_v44  ;;  %v3598_v44 = vmul.f32 %v6204_v20, %v3497_v59  ;;  %v1272_v36 = vor.u32 %v1271_v23, %v1270_v38  ;;  %v1284_v38 = vsel %vm1161_vm8, %v1283_v56, %v6202_v26 }
 0x1cc   : > { %v1275_v16 = vshll.u32 %v1274_v49, 23  ;;  %v1286_v59 = vsel %vm6256_vm9, 0, %v1284_v38  ;;  %v3723_v23 = vmul.f32 %v6265_v45, %v6262_v43  ;;  %v3705_v56 = vmul.f32 %v3689_v1, %v6200_v34 }
 0x1cd   : > { %v687_v55 = vxor.u32 2147483648, %v6226_v53  ;;  %v691_v0 = vsel %vm689_vm4, %v690_v33, %v6226_v53  ;;  %v1279_v31 = vcvt.s32.f32 %v1272_v36  ;;  %v1303_v36 = vadd.s32 3, %v1286_v59 }
 0x1ce   : > { %v3530_v51 = vld.sshfl [vmem:[#allocation1] sm:$0xff pattern:$0x75316420]  ;;  %v6224_v7 = vld.sshfl [vmem:[#allocation1 + $0x8] sm:$0xff pattern:$0x75316420] }
 0x1cf   : > { %8200 = vst [vmem:[#allocation19_spill] sm:$0xff] %v6224_v7  ;;  %v3550_v25 = vrot.slane %v3530_v51, 6  ;;  %v688_v60 = vsel %vm686_vm5, %v6222_v46, %v687_v55  ;;  %v1276_v29 = vor.u32 4788187, %v1275_v16  ;;  %v4217_v7 = vld [vmem:[#allocation2 + $0x300] sm:$0xff] }
 0x1d0   : > { %3538 = vst [vmem:[#allocation1] ss:$2 sm:$0xff] %v3511_v11  ;;  %v692_v62 = vsel %vm685_vm6, %v688_v60, %v691_v0 }
 0x1d1   : > { %3582 = vst [vmem:[#allocation2 + $0x368] sm:$0x1c] %v3550_v25  ;;  %v6240_v8 = vsel %vm682_vm7, nan, %v692_v62  ;;  %v1277_v57 = vand.u32 2147483647, %v1276_v29 }
 0x1d2   : > { %v2859_v27 = vmul.f32 %v5909_v40, %v6240_v8 }
 0x1d3   : > { %v1280_v11 = vmul.f32 %v1279_v31, %v1277_v57 }
 0x1d4   : > { %2876 = vst [vmem:[#allocation1 + $0x10] ss:$2 sm:$0xff] %v2859_v27 }
 0x1d5   : > { %v1281_v28 = vxor.u32 2147483648, %v1280_v11 }
 0x1d7   : > { %v6242_v48 = vld.sshfl [vmem:[#allocation1] sm:$0xff pattern:$0x75316420]  ;;  %v6244_v12 = vld.sshfl [vmem:[#allocation1 + $0x8] sm:$0xff pattern:$0x75316420]  ;;  %v1282_v51 = vsel %vm1161_vm8, %v1281_v28, %v1280_v11 }
 0x1d8   : > { %8201 = vst [vmem:[#allocation20_spill] sm:$0xff] %v6242_v48  ;;  %v1285_v18 = vsel %vm6256_vm9, %v6004_v47, %v1282_v51  ;;  %v1304_v11 = vand.u32 3, %v1303_v36 }
 0x1d9   : > { %8202 = vst [vmem:[#allocation21_spill] sm:$0xff] %v6244_v12  ;;  %v1287_v61 = vmul.f32 %v1285_v18, %v1285_v18 }
 0x1da   : > { %3614 = vst [vmem:[#allocation1] ss:$2 sm:$0xff] %v3598_v44  ;;  %vm1309_vm10 = vcmp.eq.s32.totalorder %v1304_v11, 2  ;;  %vm1306_vm11 = vcmp.eq.s32.totalorder %v1304_v11, 0  ;;  %vm1305_vm12 = vcmp.lt.s32.totalorder %v1304_v11, 2 }
 0x1db   : > { %v2883_v25 = vld.sshfl [vmem:[#allocation1 + $0x10] sm:$0xff pattern:$0x75316420]  ;;  %v2884_v0 = vld.sshfl [vmem:[#allocation1 + $0x18] sm:$0xff pattern:$0x75316420] }
 0x1dc   : > { %2919 = vst [vmem:[#allocation2 + $0x670] sm:$0x7] %v2883_v25  ;;  %v1288_v49 = vmul.f32 -0.001358992, %v1287_v61  ;;  %v1295_v26 = vmul.f32 -0.00019511016, %v1287_v61 }
 0x1dd   : > { %2920 = vst [vmem:[#allocation2 + $0x610] sm:$0x7] %v2884_v0  ;;  %v3713_v0 = vsub.f32 1.0, %v3705_v56 }
 0x1de   : > { %v1289_v44 = vadd.f32 0.041655596, %v1288_v49  ;;  %v1296_v60 = vadd.f32 0.008332121, %v1295_v26  ;;  %v1922_v26 = vand.u32 3, %v6207_v15 }
 0x1e0   : > { %v1290_v27 = vmul.f32 %v1289_v44, %v1287_v61  ;;  %v1297_v29 = vmul.f32 %v1296_v60, %v1287_v61  ;;  %vm1924_vm14 = vcmp.eq.s32.totalorder %v1922_v26, 0  ;;  %vm1927_vm15 = vcmp.eq.s32.totalorder %v1922_v26, 2 }
 0x1e1   : > { %v3621_v13 = vld.sshfl [vmem:[#allocation1] sm:$0xff pattern:$0x75316420]  ;;  %v6260_v58 = vld.sshfl [vmem:[#allocation1 + $0x8] sm:$0xff pattern:$0x75316420]  ;;  %v1926_v42 = vsel %vm1924_vm14, %v6222_v46, %v687_v55  ;;  %v1929_v39 = vsel %vm1927_vm15, %v690_v33, %v6226_v53 }
 0x1e2   : > { %8205 = vst [vmem:[#allocation22_spill] sm:$0xff] %v6260_v58  ;;  %v3641_v52 = vrot.slane %v3621_v13, 3  ;;  %v1291_v57 = vadd.f32 -0.4999988, %v1290_v27  ;;  %vm1923_vm0 = vcmp.lt.s32.totalorder %v1922_v26, 2  ;;  %v2538_v60 = vand.u32 3, %v1286_v59 }
 0x1e3   : > { %3629 = vst [vmem:[#allocation1] ss:$2 sm:$0xff] %v3602_v2  ;;  %v1298_v2 = vadd.f32 -0.16666654, %v1297_v29  ;;  %v3889_v53 = vmul.f32 2.0, %v6262_v43 }
 0x1e4   : > { %3673 = vst [vmem:[#allocation2 + $0x368] sm:$0xe0] %v3641_v52  ;;  %v1292_v28 = vmul.f32 %v1291_v57, %v1287_v61  ;;  %v6299_v57 = vld [vmem:[%s5545_s24 + $0x10] sm:$0x77]  ;;  %vm2540_vm1 = vcmp.eq.s32.totalorder %v2538_v60, 0  ;;  %vm2543_vm2 = vcmp.eq.s32.totalorder %v2538_v60, 2 }
 0x1e5   : > { %v1299_v13 = vmul.f32 %v1298_v2, %v1287_v61  ;;  %v3798_v61 = vmul.f32 %v6265_v45, %v3713_v0  ;;  %v697_v59 = vand.u32 2139095040, %v6299_v57  ;;  %v1930_v2 = vsel %vm1923_vm0, %v1926_v42, %v1929_v39 }
 0x1e6   : > { %v1293_v52 = vadd.f32 1.0, %v1292_v28  ;;  %v1931_v33 = vsel %vm682_vm7, nan, %v1930_v2  ;;  %vm2539_vm3 = vcmp.lt.s32.totalorder %v2538_v60, 2  ;;  %v6323_v60 = vld [vmem:[%s5545_s24 + $0x30] sm:$0x77] }
 0x1e7   : > { %v1300_v51 = vadd.f32 1.0, %v1299_v13  ;;  %v698_v55 = vshrl.u32 %v697_v59, 23 }
 0x1e8   : > { %v1310_v49 = vxor.u32 2147483648, %v1293_v52 }
 0x1e9   : > { %v5245_v11 = vadd.s32 4294967169, %v698_v55  ;;  %v8213_v55 = vmov 683565275  }
 0x1ea   : > { %v6274_v62 = vld.sshfl [vmem:[#allocation1] sm:$0xff pattern:$0x75316420]  ;;  %v6276_v16 = vld.sshfl [vmem:[#allocation1 + $0x8] sm:$0xff pattern:$0x75316420] }
 0x1eb   : > { %8206 = vst [vmem:[#allocation23_spill] sm:$0xff] %v6274_v62  ;;  %v4153_v31 = vld [vmem:[#allocation2 + $0x368] sm:$0xff]  ;;  %v704_v26 = vadd.s32 1, %v5245_v11 }
 0x1ec   : > { %8207 = vst [vmem:[#allocation24_spill] sm:$0xff] %v6276_v16  ;;  %4379 = vxpose.xlu0.b32.cont [3/16] %v4153_v31, 128  ;;  %v3717_v31 = vsub.f32 1.0, %v3709_v3  ;;  %v6312_v3 = vstv %s5291_s4 }
 0x1ed   : > { %3739 = vst [vmem:[#allocation1] ss:$2 sm:$0xff] %v3723_v23  ;;  %v1301_v23 = vmul.f32 %v1300_v51, %v1285_v18  ;;  %v3897_v51 = vmul.f32 %v3889_v53, %v3713_v0  ;;  %vm705_vm4 = vcmp.gt.s32.totalorder %v704_v26, 0 }
 0x1ee   : > { %v3802_v46 = vmul.f32 %v6265_v45, %v3717_v31  ;;  %8209 = vst [vmem:[#allocation26_spill] sm:$0xff] %v6312_v3  ;;  %v706_v0 = vsel %vm705_vm4, %v704_v26, 0 }
 0x1ef   : > { %v1307_v34 = vxor.u32 2147483648, %v1301_v23  ;;  %v1311_v1 = vsel %vm1309_vm10, %v1310_v49, %v1301_v23  ;;  %v6338_v2 = vshrl.u32 %v706_v0, 5 }
 0x1f1   : > { %v1308_v44 = vsel %vm1306_vm11, %v1293_v52, %v1307_v34  ;;  %v2542_v56 = vsel %vm2540_vm1, %v1293_v52, %v1307_v34  ;;  %v3901_v52 = vmul.f32 %v5995_v9, %v3717_v31  ;;  %v8171_v9 = vand.u32 2147483647, %v6299_v57 }
 0x1f2   : > { %v1312_v18 = vsel %vm1305_vm12, %v1308_v44, %v1311_v1  ;;  %v6310_v1 = vmul.f32 %v3889_v53, %v6262_v43  ;;  %v708_v43 = vand.u32 31, %v706_v0  ;;  %v8214_v53 = vmov 2475754826  }
 0x1f3   : > { %v6288_v15 = vsel %vm1302_vm13, nan, %v1312_v18  ;;  %v3025_v18 = vmul.f32 2.0, %v6240_v8  ;;  %v701_v59 = vand.u32 8388607, %v8171_v9  ;;  %vm726_vm5 = vcmp.lt.s32.totalorder %v6338_v2, 1 }
 0x1f4   : > { %v3746_v38 = vld.sshfl [vmem:[#allocation1] sm:$0xff pattern:$0x75316420]  ;;  %v3747_v25 = vld.sshfl [vmem:[#allocation1 + $0x8] sm:$0xff pattern:$0x75316420]  ;;  %v2863_v29 = vmul.f32 %v5909_v40, %v6288_v15 }
 0x1f5   : > { %3754 = vst [vmem:[#allocation1] ss:$2 sm:$0xff] %v3727_v24  ;;  %v2545_v24 = vsel %vm2543_vm2, %v1310_v49, %v1301_v23  ;;  %v3923_v49 = vmul.f32 %v6312_v3, %v3897_v51  ;;  %v3913_v44 = vsub.f32 1.0, %v6310_v1  ;;  %v6358_v0 = vmul.f32 %v3025_v18, %v1931_v33 }
 0x1f6   : > { %3782 = vst [vmem:[#allocation2 + $0x200] sm:$0x7] %v3746_v38  ;;  %v2546_v5 = vsel %vm2539_vm3, %v2542_v56, %v2545_v24  ;;  %v714_v56 = vshll.u32 %v8214_v53, %v708_v43  ;;  %v8215_v24 = vmov 2131351028   ;;  %vm727_vm6 = vcmp.lt.s32.totalorder %v6338_v2, 2 }
 0x1f7   : > { %3783 = vst [vmem:[#allocation2 + $0x4d0] sm:$0x7] %v3747_v25  ;;  %v2934_v25 = vmul.f32 %v5909_v40, %v1931_v33  ;;  %v6318_v34 = vsel %vm1302_vm13, nan, %v2546_v5  ;;  %v717_v51 = vshll.u32 %v8215_v24, %v708_v43  ;;  %v8216_v5 = vmov 920167782  }
 0x1f8   : > { %2890 = vst [vmem:[#allocation1 + $0x10] ss:$2 sm:$0xff] %v2863_v29  ;;  %v2938_v39 = vmul.f32 %v5909_v40, %v6318_v34  ;;  %v8212_v29 = vmov 2102212464   ;;  %v723_v9 = vshll.u32 %v8216_v5, %v708_v43  ;;  %vm728_vm7 = vcmp.lt.s32.totalorder %v6338_v2, 3 }
 0x1f9   : > { %v720_v31 = vshll.u32 %v8212_v29, %v708_v43  ;;  %vm729_vm8 = vcmp.lt.s32.totalorder %v6338_v2, 4  ;;  %v4030_v35 = vmul.f32 %v6312_v3, %v3913_v44 }
 0x1fc   : > { %v3758_v36 = vld.sshfl [vmem:[#allocation1] sm:$0xff pattern:$0x75316420]  ;;  %v3759_v27 = vld.sshfl [vmem:[#allocation1 + $0x8] sm:$0xff pattern:$0x75316420] }
 0x1fd   : > { %3814 = vst [vmem:[#allocation1] ss:$2 sm:$0xff] %v3798_v61 }
 0x1fe   : > { %3790 = vst [vmem:[#allocation2 + $0x110] sm:$0x7] %v3758_v36  ;;  %v6326_v36 = vsub.s32 32, %v708_v43 }
 0x1ff   : > { %3791 = vst [vmem:[#allocation2 + $0x2a8] sm:$0x7] %v3759_v27  ;;  %v2895_v61 = vld.sshfl [vmem:[#allocation1 + $0x10] sm:$0xff pattern:$0x75316420]  ;;  %v3927_v27 = vmul.f32 %v6312_v3, %v3901_v52 }
 0x200   : > { %v2896_v23 = vld.sshfl [vmem:[#allocation1 + $0x18] sm:$0xff pattern:$0x75316420]  ;;  %2927 = vst [vmem:[#allocation2 + $0x628] sm:$0x7] %v2895_v61  ;;  %v712_v11 = vshrl.u32 %v8214_v53, %v6326_v36  ;;  %v718_v1 = vshrl.u32 %v8212_v29, %v6326_v36  ;;  %v721_v61 = vshrl.u32 %v8216_v5, %v6326_v36 }
 0x201   : > { %2951 = vst [vmem:[#allocation1 + $0x10] ss:$2 sm:$0xff] %v2934_v25  ;;  %v702_v25 = vor.u32 8388608, %v701_v59  ;;  %v8217_v59 = vmov 1326507024  }
 0x202   : > { %2928 = vst [vmem:[#allocation2 + $0x370] sm:$0x7] %v2896_v23  ;;  %v722_v37 = vor.u32 %v721_v61, %v720_v31 }
 0x203   : > { %v6378_v31 = vshll.u32 %v702_v25, 8 }
 0x204   : > { %v3821_v28 = vld.sshfl [vmem:[#allocation1] sm:$0xff pattern:$0x75316420]  ;;  %v6306_v13 = vld.sshfl [vmem:[#allocation1 + $0x8] sm:$0xff pattern:$0x75316420] }
 0x205   : > { %8208 = vst [vmem:[#allocation25_spill] sm:$0xff] %v6306_v13  ;;  %v3841_v38 = vrot.slane %v3821_v28, 5  ;;  %v715_v28 = vshrl.u32 %v8215_v24, %v6326_v36  ;;  %v744_v48 = vshrl.u32 %v6378_v31, 16 }
 0x206   : > { %3829 = vst [vmem:[#allocation1] ss:$2 sm:$0xff] %v3802_v46  ;;  %v711_v46 = vshll.u32 %v8213_v55, %v708_v43  ;;  %v3029_v43 = vmul.f32 2.0, %v6288_v15 }
 0x207   : > { %3873 = vst [vmem:[#allocation2 + $0x200] sm:$0x38] %v3841_v38  ;;  %v1317_v38 = vand.u32 2139095040, %v6323_v60 }
 0x208   : > { %v6348_v26 = vor.u32 %v712_v11, %v711_v46  ;;  %v6354_v52 = vld.sshfl [vmem:[#allocation1 + $0x10] sm:$0xff pattern:$0x75316420]  ;;  %v6356_v23 = vld.sshfl [vmem:[#allocation1 + $0x18] sm:$0xff pattern:$0x75316420]  ;;  %v724_v46 = vshrl.u32 %v8217_v59, %v6326_v36  ;;  %v6365_v11 = vor.u32 %v718_v1, %v717_v51  ;;  %v3059_v1 = vmul.f32 %v5991_v50, %v6358_v0 }
 0x209   : > { %2965 = vst [vmem:[#allocation1 + $0x10] ss:$2 sm:$0xff] %v2938_v39  ;;  %v735_v39 = vsel %vm729_vm8, %v722_v37, 920167782 }
 0x20a   : > { %v736_v61 = vsel %vm728_vm7, %v6365_v11, %v735_v39  ;;  %v743_v39 = vand.u32 65535, %v6378_v31 }
 0x20d   : > { %v6329_v42 = vld.sshfl [vmem:[#allocation1] sm:$0xff pattern:$0x75316420]  ;;  %v6331_v47 = vld.sshfl [vmem:[#allocation1 + $0x8] sm:$0xff pattern:$0x75316420] }
 0x20e   : > { %8210 = vst [vmem:[#allocation27_spill] sm:$0xff] %v6329_v42  ;;  %v725_v42 = vor.u32 %v724_v46, %v723_v9  ;;  %v6383_v9 = vmul.f32 %v3025_v18, %v6240_v8 }
 0x20f   : > { %8211 = vst [vmem:[#allocation28_spill] sm:$0xff] %v6331_v47 }
 0x210   : > { %3939 = vst [vmem:[#allocation1] ss:$2 sm:$0xff] %v3923_v49  ;;  %v6360_v49 = vor.u32 %v715_v28, %v714_v56  ;;  %v1318_v56 = vshrl.u32 %v1317_v38, 23  ;;  %v6395_v38 = vmul.f32 %v3029_v43, %v6288_v15  ;;  %v739_v18 = vsel %vm729_vm8, %v725_v42, 1326507024 }
 0x211   : > { %v740_v62 = vsel %vm728_vm7, %v722_v37, %v739_v18  ;;  %v6411_v42 = vmul.f32 %v3029_v43, %v6318_v34 }
 0x212   : > { %v734_v33 = vsel %vm726_vm5, %v6348_v26, %v6360_v49  ;;  %v738_v25 = vsel %vm726_vm5, %v6360_v49, %v6365_v11 }
 0x213   : > { %v737_v8 = vsel %vm727_vm6, %v734_v33, %v736_v61  ;;  %v6408_v33 = vld.sshfl [vmem:[#allocation1 + $0x10] sm:$0xff pattern:$0x75316420]  ;;  %v6413_v61 = vld.sshfl [vmem:[#allocation1 + $0x18] sm:$0xff pattern:$0x75316420]  ;;  %v3063_v18 = vmul.f32 %v5991_v50, %v6411_v42 }
 0x214   : > { %v767_v47 = vand.u32 65535, %v737_v8  ;;  %v768_v15 = vshrl.u32 %v737_v8, 16  ;;  %8219 = vst [vmem:[#allocation30_spill] sm:$0xff] %v6408_v33 }
 0x215   : > { %8220 = vst [vmem:[#allocation31_spill] sm:$0xff] %v6413_v61 }
 0x216   : > { %v770_v12 = vmul.u32 %v768_v15, %v743_v39  ;;  %3076 = vst [vmem:[#allocation1 + $0x10] ss:$2 sm:$0xff] %v3059_v1  ;;  %v772_v61 = vmul.u32 %v768_v15, %v744_v48 }
 0x217   : > { %v3946_v28 = vld.sshfl [vmem:[#allocation1] sm:$0xff pattern:$0x75316420]  ;;  %v6380_v51 = vld.sshfl [vmem:[#allocation1 + $0x8] sm:$0xff pattern:$0x75316420] }
 0x218   : > { %8218 = vst [vmem:[#allocation29_spill] sm:$0xff] %v6380_v51  ;;  %v3966_v46 = vrot.slane %v3946_v28, 2  ;;  %v5257_v28 = vadd.s32 4294967169, %v1318_v56  ;;  %v769_v56 = vmul.u32 %v767_v47, %v743_v39  ;;  %v773_v33 = vshll.u32 %v770_v12, 16 }
 0x219   : > { %3954 = vst [vmem:[#allocation1] ss:$2 sm:$0xff] %v3927_v27  ;;  %v741_v27 = vsel %vm727_vm6, %v738_v25, %v740_v62  ;;  %v771_v25 = vmul.u32 %v767_v47, %v744_v48 }
 0x21a   : > { %3998 = vst [vmem:[#allocation2 + $0x200] sm:$0xc0] %v3966_v46  ;;  %v745_v37 = vand.u32 65535, %v741_v27  ;;  %v746_v16 = vshrl.u32 %v741_v27, 16  ;;  %v1324_v34 = vadd.s32 1, %v5257_v28  ;;  %vm777_vm9 = vc.u32 %v769_v56, %v773_v33 }
 0x21b   : > { %4014 = vst [vmem:[#allocation2 + $0x4b0] sm:$0x1] %v3966_v46  ;;  %v775_v47 = vshll.u32 %v771_v25, 16  ;;  %v779_v44 = vadd.s32 %v773_v33, %v769_v56 }
 0x21c   : > { %v749_v62 = vmul.u32 %v745_v37, %v744_v48  ;;  %v747_v46 = vmul.u32 %v745_v37, %v743_v39  ;;  %v748_v8 = vmul.u32 %v746_v16, %v743_v39  ;;  %v750_v27 = vmul.u32 %v746_v16, %v744_v48 }
 0x21d   : > { %v8223_v39 = vand.u32 2147483647, %v6323_v60  ;;  %v8224_v16 = vmov 0   ;;  %vm1325_vm11 = vcmp.gt.s32.totalorder %v1324_v34, 0  ;;  %vm781_vm13 = vc.u32 %v779_v44, %v775_v47 }
 0x21e   : > { %v751_v6 = vshll.u32 %v748_v8, 16  ;;  %v753_v1 = vshll.u32 %v749_v62, 16  ;;  %v752_v28 = vshrl.u32 %v748_v8, 16  ;;  %v778_v48 = vsel %vm777_vm9, 1, %v8224_v16 }
 0x21f   : > { %v6426_v37 = vand.u32 8388607, %v8223_v39  ;;  %v6432_v15 = vld.sshfl [vmem:[#allocation1 + $0x10] sm:$0xff pattern:$0x75316420]  ;;  %v780_v39 = vadd.s32 %v778_v48, %v772_v61  ;;  %v782_v61 = vsel %vm781_vm13, 1, %v8224_v16 }
 0x220   : > { %v6418_v43 = vld.sshfl [vmem:[#allocation1] sm:$0xff pattern:$0x75316420]  ;;  %v6420_v63 = vld.sshfl [vmem:[#allocation1 + $0x8] sm:$0xff pattern:$0x75316420]  ;;  %vm755_vm10 = vc.u32 %v747_v46, %v751_v6 }
 0x221   : > { %8221 = vst [vmem:[#allocation32_spill] sm:$0xff] %v6418_v43  ;;  %v4169_v30 = vld [vmem:[#allocation2 + $0x200] sm:$0xff]  ;;  %v757_v43 = vadd.s32 %v751_v6, %v747_v46  ;;  %v756_v54 = vsel %vm755_vm10, 1, %v8224_v16  ;;  %v6434_v33 = vld.sshfl [vmem:[#allocation1 + $0x18] sm:$0xff pattern:$0x75316420] }
 0x222   : > { %8222 = vst [vmem:[#allocation33_spill] sm:$0xff] %v6420_v63  ;;  %4380 = vxpose.xlu0.b32.cont [4/16] %v4169_v30, 128  ;;  %v774_v63 = vshrl.u32 %v770_v12, 16  ;;  %v758_v56 = vadd.s32 %v756_v54, %v750_v27  ;;  %v731_v6 = vsel %vm729_vm8, %v6365_v11, 2102212464  ;;  %v754_v46 = vshrl.u32 %v749_v62, 16 }
 0x223   : > { %4046 = vst [vmem:[#allocation1] ss:$2 sm:$0xff] %v4030_v35  ;;  %v710_v35 = vshrl.u32 %v8213_v55, %v6326_v36  ;;  %vm759_vm12 = vc.u32 %v757_v43, %v753_v1  ;;  %v732_v36 = vsel %vm728_vm7, %v6360_v49, %v731_v6  ;;  %v776_v8 = vshrl.u32 %v771_v25, 16 }
 0x224   : > { %8225 = vst [vmem:[#allocation34_spill] sm:$0xff] %v6432_v15  ;;  %v760_v12 = vsel %vm759_vm12, 1, %v8224_v16  ;;  %v784_v43 = vadd.s32 %v782_v61, %v780_v39  ;;  %v8226_v48 = vsub.f32 1.0, %v6383_v9  ;;  %v8227_v25 = vsub.f32 1.0, %v6395_v38 }
 0x225   : > { %3090 = vst [vmem:[#allocation1 + $0x10] ss:$2 sm:$0xff] %v3063_v18  ;;  %v730_v30 = vsel %vm726_vm5, %v710_v35, %v6348_v26  ;;  %v762_v54 = vadd.s32 %v760_v12, %v758_v56  ;;  %v1326_v26 = vsel %vm1325_vm11, %v1324_v34, 0  ;;  %v6450_v35 = vadd.s32 %v779_v44, %v775_v47 }
 0x226   : > { %v733_v11 = vsel %vm727_vm6, %v730_v30, %v732_v36  ;;  %v3166_v49 = vmul.f32 %v5991_v50, %v8226_v48  ;;  %v785_v62 = vadd.s32 %v784_v43, %v774_v63  ;;  %v6455_v56 = vshrl.u32 %v1326_v26, 5 }
 0x227   : > { %v763_v1 = vadd.s32 %v762_v54, %v752_v28  ;;  %v1328_v6 = vand.u32 31, %v1326_v26  ;;  %v3170_v34 = vmul.f32 %v5991_v50, %v8227_v25  ;;  %v3257_v39 = vmul.f32 2.0, %v6358_v0 }
 0x228   : > { %v1322_v44 = vor.u32 8388608, %v6426_v37  ;;  %v786_v47 = vadd.s32 %v785_v62, %v776_v8  ;;  %v787_v28 = vmul.u32 %v6378_v31, %v733_v11  ;;  %vm1346_vm15 = vcmp.lt.s32.totalorder %v6455_v56, 1 }
 0x229   : > { %v6461_v2 = vadd.s32 %v763_v1, %v754_v46  ;;  %v1329_v30 = vsub.s32 32, %v1328_v6  ;;  %v1331_v63 = vshll.u32 %v8213_v55, %v1328_v6  ;;  %v1334_v54 = vshll.u32 %v8214_v53, %v1328_v6 }
 0x22a   : > { %v4053_v18 = vld.sshfl [vmem:[#allocation1] sm:$0xff pattern:$0x75316420]  ;;  %v1337_v46 = vshll.u32 %v8215_v24, %v1328_v6  ;;  %v1340_v61 = vshll.u32 %v8212_v29, %v1328_v6  ;;  %v790_v37 = vadd.s32 1, %v786_v47  ;;  %v1343_v26 = vshll.u32 %v8216_v5, %v1328_v6 }
 0x22b   : > { %v4073_v27 = vrot.slane %v4053_v18, 7  ;;  %vm789_vm14 = vc.u32 %v6461_v2, %v6450_v35  ;;  %v1332_v31 = vshrl.u32 %v8214_v53, %v1329_v30  ;;  %v1335_v18 = vshrl.u32 %v8215_v24, %v1329_v30 }
 0x22c   : > { %v6466_v12 = vld.sshfl [vmem:[#allocation1 + $0x10] sm:$0xff pattern:$0x75316420]  ;;  %v6468_v36 = vld.sshfl [vmem:[#allocation1 + $0x18] sm:$0xff pattern:$0x75316420]  ;;  %v1338_v8 = vshrl.u32 %v8212_v29, %v1329_v30  ;;  %v1341_v43 = vshrl.u32 %v8216_v5, %v1329_v30  ;;  %v791_v11 = vsel %vm789_vm14, %v790_v37, %v786_v47 }
 0x22d   : > { %4105 = vst [vmem:[#allocation2 + $0x4b0] sm:$0xe] %v4073_v27  ;;  %v1344_v27 = vshrl.u32 %v8217_v59, %v1329_v30  ;;  %v6482_v1 = vor.u32 %v1332_v31, %v1331_v63  ;;  %v6484_v48 = vor.u32 %v1335_v18, %v1334_v54  ;;  %vm1348_vm0 = vcmp.lt.s32.totalorder %v6455_v56, 3 }
 0x22e   : > { %8228 = vst [vmem:[#allocation35_spill] sm:$0xff] %v6466_v12  ;;  %v1339_v62 = vor.u32 %v1338_v8, %v1337_v46  ;;  %v1342_v25 = vor.u32 %v1341_v43, %v1340_v61  ;;  %vm1347_vm1 = vcmp.lt.s32.totalorder %v6455_v56, 2  ;;  %vm1349_vm2 = vcmp.lt.s32.totalorder %v6455_v56, 4 }
 0x22f   : > { %8229 = vst [vmem:[#allocation36_spill] sm:$0xff] %v6468_v36  ;;  %v1345_v36 = vor.u32 %v1344_v27, %v1343_v26  ;;  %v1354_v6 = vsel %vm1346_vm15, %v6482_v1, %v6484_v48  ;;  %v6493_v47 = vshll.u32 %v1322_v44, 8  ;;  %v6501_v46 = vmul.f32 2.0, %v6411_v42 }
 0x230   : > { %3183 = vst [vmem:[#allocation1 + $0x10] ss:$2 sm:$0xff] %v3166_v49  ;;  %v792_v49 = vadd.s32 %v791_v11, %v787_v28  ;;  %v1355_v28 = vsel %vm1349_vm2, %v1342_v25, 920167782  ;;  %v1358_v54 = vsel %vm1346_vm15, %v6484_v48, %v1339_v62  ;;  %v8230_v44 = vsub.f32 1.0, %v6383_v9 }
 0x231   : > { %v1356_v61 = vsel %vm1348_vm0, %v1339_v62, %v1355_v28  ;;  %v1359_v37 = vsel %vm1349_vm2, %v1345_v36, 1326507024  ;;  %v1363_v9 = vand.u32 65535, %v6493_v47  ;;  %v1364_v27 = vshrl.u32 %v6493_v47, 16 }
 0x232   : > { %v793_v63 = vadd.s32 536870912, %v792_v49  ;;  %v1357_v8 = vsel %vm1347_vm1, %v1354_v6, %v1356_v61  ;;  %v1360_v43 = vsel %vm1348_vm0, %v1342_v25, %v1359_v37  ;;  %v8232_v61 = vsub.f32 1.0, %v6395_v38 }
 0x233   : > { %v1361_v36 = vsel %vm1347_vm1, %v1358_v54, %v1360_v43  ;;  %v1387_v6 = vand.u32 65535, %v1357_v8  ;;  %v6532_v54 = vmul.f32 %v3257_v39, %v6358_v0  ;;  %v1351_v0 = vsel %vm1349_vm2, %v1339_v62, 2102212464 }
 0x234   : > { %v4185_v12 = vld [vmem:[#allocation2 + $0x4b0] sm:$0xff]  ;;  %v6519_v26 = vshrl.u32 %v793_v63, 30  ;;  %v1365_v11 = vand.u32 65535, %v1361_v36  ;;  %v1366_v28 = vshrl.u32 %v1361_v36, 16  ;;  %vm696_vm10 = vcmp.lt.s32.totalorder %v6299_v57, 0 }
 0x235   : > { %4381 = vxpose.xlu0.b32.cont [5/16] %v4185_v12, 128  ;;  %v6509_v12 = vmul.f32 %v3257_v39, %v8230_v44  ;;  %v1388_v44 = vshrl.u32 %v1357_v8, 16  ;;  %v1330_v8 = vshrl.u32 %v8213_v55, %v1329_v30  ;;  %v1391_v39 = vmul.u32 %v1387_v6, %v1364_v27 }
 0x236   : > { %v795_v41 = vshll.u32 %v6519_v26, 30  ;;  %v1367_v25 = vmul.u32 %v1365_v11, %v1363_v9  ;;  %v1368_v63 = vmul.u32 %v1366_v28, %v1363_v9  ;;  %v1369_v37 = vmul.u32 %v1365_v11, %v1364_v27 }
 0x237   : > { %v6511_v31 = vld.sshfl [vmem:[#allocation1 + $0x10] sm:$0xff pattern:$0x75316420]  ;;  %v6513_v18 = vld.sshfl [vmem:[#allocation1 + $0x18] sm:$0xff pattern:$0x75316420]  ;;  %v3291_v43 = vmul.f32 %v6109_v19, %v6509_v12  ;;  %v1390_v32 = vmul.u32 %v1388_v44, %v1363_v9  ;;  %v1370_v50 = vmul.u32 %v1366_v28, %v1364_v27  ;;  %v1389_v30 = vmul.u32 %v1387_v6, %v1363_v9 }
 0x238   : > { %8231 = vst [vmem:[#allocation37_spill] sm:$0xff] %v6511_v31  ;;  %v6536_v36 = vsub.s32 %v792_v49, %v795_v41  ;;  %v1371_v38 = vshll.u32 %v1368_v63, 16  ;;  %v1373_v3 = vshll.u32 %v1369_v37, 16  ;;  %v1372_v17 = vshrl.u32 %v1368_v63, 16 }
 0x239   : > { %3197 = vst [vmem:[#allocation1 + $0x10] ss:$2 sm:$0xff] %v3170_v34  ;;  %v6529_v34 = vmul.f32 %v6501_v46, %v8232_v61  ;;  %v1393_v13 = vshll.u32 %v1390_v32, 16  ;;  %v1392_v58 = vmul.u32 %v1388_v44, %v1364_v27  ;;  %v3281_v15 = vsub.f32 1.0, %v6532_v54 }
 0x23a   : > { %vm797_vm3 = vcmp.lt.s32.totalorder %v6536_v36, 0  ;;  %v798_v61 = vsub.s32 0, %v6536_v36  ;;  %vm1375_vm4 = vc.u32 %v1367_v25, %v1371_v38  ;;  %v1395_v6 = vshll.u32 %v1391_v39, 16 }
 0x23b   : > { %v3295_v11 = vmul.f32 %v6109_v19, %v6529_v34  ;;  %v1376_v51 = vsel %vm1375_vm4, 1, %v8224_v16  ;;  %vm1397_vm6 = vc.u32 %v1389_v30, %v1393_v13  ;;  %v1399_v63 = vadd.s32 %v1393_v13, %v1389_v30 }
 0x23c   : > { %v799_v28 = vsel %vm797_vm3, %v798_v61, %v6536_v36  ;;  %v1378_v62 = vadd.s32 %v1376_v51, %v1370_v50  ;;  %v1352_v50 = vsel %vm1348_vm0, %v6484_v48, %v1351_v0  ;;  %v1394_v51 = vshrl.u32 %v1390_v32, 16 }
 0x23d   : > { %4382 = vxpose.xlu0.b32.cont [6/16] %v4201_v10, 128  ;;  %v1377_v10 = vadd.s32 %v1371_v38, %v1367_v25  ;;  %v800_v31 = vclz %v799_v28  ;;  %v1398_v27 = vsel %vm1397_vm6, 1, %v8224_v16  ;;  %vm1401_vm8 = vc.u32 %v1399_v63, %v1395_v6 }
 0x23e   : > { %v1400_v38 = vadd.s32 %v1398_v27, %v1392_v58  ;;  %v1402_v13 = vsel %vm1401_vm8, 1, %v8224_v16  ;;  %v6563_v30 = vadd.s32 %v1399_v63, %v1395_v6  ;;  %v6572_v0 = vmul.f32 %v6501_v46, %v6411_v42 }
 0x23f   : > { %vm1379_vm5 = vc.u32 %v1377_v10, %v1373_v3  ;;  %v5246_v25 = vadd.s32 4294967294, %v800_v31  ;;  %v1374_v3 = vshrl.u32 %v1369_v37, 16  ;;  %v4233_v37 = vld [vmem:[#allocation2 + $0x170] sm:$0xff]  ;;  %vm837_vm2 = vweird.f32 %v6299_v57 }
 0x240   : > { %v6545_v41 = vld.sshfl [vmem:[#allocation1 + $0x10] sm:$0xff pattern:$0x75316420]  ;;  %v6547_v49 = vld.sshfl [vmem:[#allocation1 + $0x18] sm:$0xff pattern:$0x75316420]  ;;  %v1404_v48 = vadd.s32 %v1402_v13, %v1400_v38 }
 0x241   : > { %8233 = vst [vmem:[#allocation38_spill] sm:$0xff] %v6547_v49  ;;  %v1350_v49 = vsel %vm1346_vm15, %v1330_v8, %v6482_v1  ;;  %v1380_v9 = vsel %vm1379_vm5, 1, %v8224_v16  ;;  %vm5247_vm7 = vcmp.lt.s32.totalorder %v5246_v25, 0  ;;  %v788_v1 = vadd.s32 %v6450_v35, %v6461_v2 }
 0x242   : > { %3309 = vst [vmem:[#allocation1 + $0x11] ss:$2 sm:$0xff] %v3291_v43  ;;  %v1382_v43 = vadd.s32 %v1380_v9, %v1378_v62  ;;  %v803_v31 = vsel %vm5247_vm7, 0, %v5246_v25  ;;  %v1396_v8 = vshrl.u32 %v1391_v39, 16  ;;  %v1353_v35 = vsel %vm1347_vm1, %v1350_v49, %v1352_v50  ;;  %v6578_v62 = vld [vmem:[%s5545_s24 + $0x18] sm:$0x77] }
 0x243   : > { %v804_v32 = vsub.s32 32, %v803_v31  ;;  %v1405_v2 = vadd.s32 %v1404_v48, %v1394_v51  ;;  %v1407_v56 = vmul.u32 %v6493_v47, %v1353_v35  ;;  %v3285_v46 = vsub.f32 1.0, %v6572_v0 }
 0x244   : > { %v1383_v44 = vadd.s32 %v1382_v43, %v1372_v17  ;;  %v808_v17 = vsub.s32 4294967266, %v803_v31  ;;  %v852_v43 = vand.u32 2139095040, %v6578_v62  ;;  %v8234_v13 = vand.u32 2147483647, %v6299_v57 }
 0x245   : > { %4383 = vxpose.xlu0.b32.cont [7/16] %v4217_v7, 128  ;;  %v805_v7 = vshll.u32 %v6536_v36, %v803_v31  ;;  %v806_v39 = vshrl.u32 %v788_v1, %v804_v32  ;;  %v3367_v36 = vmul.f32 %v6109_v19, %v3281_v15  ;;  %v3371_v31 = vmul.f32 %v6109_v19, %v3285_v46 }
 0x246   : > { %v6566_v58 = vadd.s32 %v1383_v44, %v1374_v3  ;;  %v809_v28 = vadd.s32 127, %v808_v17  ;;  %v4249_v44 = vld [vmem:[#allocation2 + $0x738] sm:$0xff]  ;;  %v853_v1 = vshrl.u32 %v852_v43, 23  ;;  %vm6590_vm11 = vcmp.le.f32.partialorder %v8234_v13, 0.7853982 }
 0x247   : > { %v807_v9 = vor.u32 %v806_v39, %v805_v7  ;;  %v818_v39 = vsub.s32 4, %v6519_v26  ;;  %vm1316_vm3 = vcmp.lt.s32.totalorder %v6323_v60, 0 }
 0x248   : > { %v810_v6 = vshll.u32 %v809_v28, 23  ;;  %vm1409_vm9 = vc.u32 %v6566_v58, %v6563_v30  ;;  %v5248_v17 = vadd.s32 4294967169, %v853_v1 }
 0x249   : > { %v3316_v61 = vld.sshfl [vmem:[#allocation1 + $0x10] sm:$0xff pattern:$0x75316420]  ;;  %v3317_v10 = vld.sshfl [vmem:[#allocation1 + $0x18] sm:$0xff pattern:$0x75316420]  ;;  %v814_v25 = vcvt.s32.f32 %v807_v9  ;;  %v819_v9 = vsel %vm696_vm10, %v818_v39, %v6519_v26 }
 0x24a   : > { %3323 = vst [vmem:[#allocation1 + $0x11] ss:$2 sm:$0xff] %v3295_v11  ;;  %v1406_v11 = vadd.s32 %v1405_v2, %v1396_v8  ;;  %v811_v49 = vor.u32 4788187, %v810_v6  ;;  %v3474_v8 = vmul.f32 2.0, %v6509_v12 }
 0x24b   : > { %3353 = vst [vmem:[#allocation2 + $0x308] sm:$0x70] %v3317_v10  ;;  %v8178_v39 = vand.u32 2147483647, %v6578_v62 }
 0x24c   : > { %3352 = vst [vmem:[#allocation2 + $0x500] sm:$0x70] %v3316_v61  ;;  %v1410_v42 = vadd.s32 1, %v1406_v11  ;;  %v812_v51 = vand.u32 2147483647, %v811_v49  ;;  %v6608_v0 = vmul.f32 %v3474_v8, %v3281_v15  ;;  %v6615_v49 = vmul.f32 2.0, %v6529_v34 }
 0x24d   : > { %4384 = vxpose.xlu0.b32.cont [8/16] %v4233_v37, 128  ;;  %v6619_v15 = vsel %vm6590_vm11, 0, %v819_v9  ;;  %v6632_v1 = vmul.f32 %v3474_v8, %v6509_v12 }
 0x24e   : > { %v1411_v3 = vsel %vm1409_vm9, %v1410_v42, %v1406_v11  ;;  %v815_v47 = vmul.f32 %v814_v25, %v812_v51  ;;  %v4265_v11 = vld [vmem:[#allocation2 + $0x598] sm:$0xff]  ;;  %v859_v42 = vadd.s32 1, %v5248_v17  ;;  %v3508_v25 = vmul.f32 %v6204_v20, %v6608_v0 }
 0x24f   : > { %v1412_v27 = vadd.s32 %v1411_v3, %v1407_v56  ;;  %v838_v26 = vadd.s32 3, %v6619_v15  ;;  %v3498_v8 = vsub.f32 1.0, %v6632_v1 }
 0x250   : > { %v816_v10 = vxor.u32 2147483648, %v815_v47  ;;  %vm860_vm13 = vcmp.gt.s32.totalorder %v859_v42, 0 }
 0x251   : > { %v3328_v63 = vld.sshfl [vmem:[#allocation1 + $0x10] sm:$0xff pattern:$0x75316420]  ;;  %v3329_v50 = vld.sshfl [vmem:[#allocation1 + $0x18] sm:$0xff pattern:$0x75316420] }
 0x252   : > { %3384 = vst [vmem:[#allocation1 + $0x10] ss:$2 sm:$0xff] %v3367_v36  ;;  %v1413_v38 = vadd.s32 536870912, %v1412_v27  ;;  %v817_v32 = vsel %vm696_vm10, %v816_v10, %v815_v47  ;;  %v839_v61 = vand.u32 3, %v838_v26  ;;  %v6640_v12 = vsel %vm860_vm13, %v859_v42, 0 }
 0x253   : > { %3360 = vst [vmem:[#allocation2 + $0x1e8] sm:$0x70] %v3328_v63  ;;  %v820_v37 = vsel %vm6590_vm11, %v6299_v57, %v817_v32  ;;  %v4281_v32 = vld [vmem:[#allocation2 + $0x618] sm:$0xff] }
 0x254   : > { %3361 = vst [vmem:[#allocation2 + $0x560] sm:$0x70] %v3329_v50  ;;  %v6594_v48 = vshrl.u32 %v1413_v38, 30  ;;  %v822_v28 = vmul.f32 %v820_v37, %v820_v37  ;;  %vm844_vm15 = vcmp.eq.s32.totalorder %v839_v61, 2  ;;  %vm841_vm0 = vcmp.eq.s32.totalorder %v839_v61, 0 }
 0x255   : > { %4385 = vxpose.xlu0.b32.cont [9/16] %v4249_v44, 128  ;;  %vm840_vm1 = vcmp.lt.s32.totalorder %v839_v61, 2 }
 0x256   : > { %v1415_v7 = vshll.u32 %v6594_v48, 30  ;;  %v823_v6 = vmul.f32 -0.001358992, %v822_v28  ;;  %v830_v56 = vmul.f32 -0.00019511016, %v822_v28 }
 0x258   : > { %v1416_v36 = vsub.s32 %v1412_v27, %v1415_v7  ;;  %v824_v43 = vadd.f32 0.041655596, %v823_v6  ;;  %v831_v63 = vadd.f32 0.008332121, %v830_v56  ;;  %v6625_v27 = vmul.f32 %v6615_v49, %v3285_v46 }
 0x259   : > { %v6599_v35 = vld.sshfl [vmem:[#allocation1 + $0x10] sm:$0xff pattern:$0x75316420]  ;;  %v6601_v2 = vld.sshfl [vmem:[#allocation1 + $0x18] sm:$0xff pattern:$0x75316420] }
 0x25a   : > { %3398 = vst [vmem:[#allocation1 + $0x10] ss:$2 sm:$0xff] %v3371_v31  ;;  %vm1417_vm12 = vcmp.lt.s32.totalorder %v1416_v36, 0  ;;  %v1418_v54 = vsub.s32 0, %v1416_v36  ;;  %v825_v3 = vmul.f32 %v824_v43, %v822_v28  ;;  %v832_v51 = vmul.f32 %v831_v63, %v822_v28 }
 0x25b   : > { %v3512_v46 = vmul.f32 %v6204_v20, %v6625_v27 }
 0x25c   : > { %v1419_v50 = vsel %vm1417_vm12, %v1418_v54, %v1416_v36  ;;  %v826_v31 = vadd.f32 -0.4999988, %v825_v3  ;;  %v833_v13 = vadd.f32 -0.16666654, %v832_v51  ;;  %v6659_v51 = vand.u32 8388607, %v8178_v39 }
 0x25d   : > { %4386 = vxpose.xlu0.b32.cont [10/16] %v4265_v11, 128  ;;  %v1420_v38 = vclz %v1419_v50  ;;  %v1408_v11 = vadd.s32 %v6563_v30, %v6566_v58  ;;  %v863_v58 = vand.u32 31, %v6640_v12  ;;  %vm1457_vm12 = vweird.f32 %v6323_v60 }
 0x25e   : > { %v827_v7 = vmul.f32 %v826_v31, %v822_v28  ;;  %v834_v17 = vmul.f32 %v833_v13, %v822_v28 }
 0x25f   : > { %v5258_v10 = vadd.s32 4294967294, %v1420_v38  ;;  %v4297_v38 = vld [vmem:[#allocation2 + $0x570] sm:$0xff]  ;;  %v6665_v61 = vsub.s32 32, %v863_v58 }
 0x260   : > { %v6643_v9 = vadd.f32 1.0, %v827_v7  ;;  %v835_v6 = vadd.f32 1.0, %v834_v17  ;;  %v3599_v7 = vmul.f32 %v6204_v20, %v3498_v8 }
 0x261   : > { %v6627_v44 = vld.sshfl [vmem:[#allocation1 + $0x10] sm:$0xff pattern:$0x75316420]  ;;  %v6629_v47 = vld.sshfl [vmem:[#allocation1 + $0x18] sm:$0xff pattern:$0x75316420] }
 0x262   : > { %8237 = vst [vmem:[#allocation39_spill] sm:$0xff] %v6627_v44  ;;  %vm5259_vm14 = vcmp.lt.s32.totalorder %v5258_v10, 0  ;;  %v6645_v43 = vmul.f32 %v835_v6, %v820_v37  ;;  %v8179_v30 = vxor.u32 2147483648, %v6643_v9 }
 0x263   : > { %8238 = vst [vmem:[#allocation40_spill] sm:$0xff] %v6629_v47  ;;  %v1423_v56 = vsel %vm5259_vm14, 0, %v5258_v10  ;;  %v2977_v10 = vrot.slane %v5980_v4, 5  ;;  %v3104_v4 = vrot.slane %v6434_v33, 2  ;;  %v870_v33 = vshrl.u32 %v8215_v24, %v6665_v61 }
 0x264   : > { %3525 = vst [vmem:[#allocation1 + $0x10] ss:$2 sm:$0xff] %v3508_v25  ;;  %v1424_v28 = vsub.s32 32, %v1423_v56  ;;  %v1425_v54 = vshll.u32 %v1416_v36, %v1423_v56  ;;  %v1428_v25 = vsub.s32 4294967266, %v1423_v56  ;;  %v8180_v50 = vxor.u32 2147483648, %v6645_v43 }
 0x265   : > { %4387 = vxpose.xlu0.b32.cont [11/16] %v4281_v32, 128  ;;  %v846_v36 = vsel %vm844_vm15, %v8179_v30, %v6645_v43  ;;  %v3102_v32 = vrot.slane %v6054_v22, 2  ;;  %3009 = vst [vmem:[#allocation2 + $0x298] sm:$0x38] %v2977_v10  ;;  %v2979_v56 = vrot.slane %v6356_v23, 5  ;;  %v3690_v23 = vmul.f32 2.0, %v6608_v0 }
 0x266   : > { %v1426_v26 = vshrl.u32 %v1408_v11, %v1424_v28  ;;  %v1429_v37 = vadd.s32 127, %v1428_v25  ;;  %v843_v31 = vsel %vm841_vm0, %v6643_v9, %v8180_v50  ;;  %v1438_v28 = vsub.s32 4, %v6594_v48  ;;  %3136 = vst [vmem:[#allocation2 + $0x610] sm:$0xc0] %v3104_v4 }
 0x267   : > { %v847_v17 = vsel %vm840_vm1, %v843_v31, %v846_v36  ;;  %3134 = vst [vmem:[#allocation2 + $0x298] sm:$0xc0] %v3102_v32  ;;  %v869_v25 = vshll.u32 %v8214_v53, %v863_v58  ;;  %v875_v36 = vshll.u32 %v8212_v29, %v863_v58  ;;  %v879_v10 = vshrl.u32 %v8217_v59, %v6665_v61 }
 0x268   : > { %v1427_v3 = vor.u32 %v1426_v26, %v1425_v54  ;;  %v1430_v13 = vshll.u32 %v1429_v37, 23  ;;  %v6681_v22 = vsel %vm837_vm2, nan, %v847_v17  ;;  %3150 = vst [vmem:[#allocation2 + $0xb0] sm:$0x1] %v3102_v32  ;;  %v876_v37 = vshrl.u32 %v8216_v5, %v6665_v61 }
 0x269   : > { %3011 = vst [vmem:[#allocation2 + $0x610] sm:$0x38] %v2979_v56  ;;  %v2860_v31 = vmul.f32 %v5909_v40, %v6681_v22  ;;  %v1439_v32 = vsel %vm1316_vm3, %v1438_v28, %v6594_v48  ;;  %v6707_v17 = vshrl.u32 %v6640_v12, 5  ;;  %v4313_v56 = vld [vmem:[#allocation2 + $0x6a8] sm:$0xff]  ;;  %v857_v30 = vor.u32 8388608, %v6659_v51 }
 0x26a   : > { %v1431_v11 = vor.u32 4788187, %v1430_v13  ;;  %v1434_v6 = vcvt.s32.f32 %v1427_v3  ;;  %v878_v13 = vshll.u32 %v8216_v5, %v863_v58  ;;  %3152 = vst [vmem:[#allocation2 + $0x308] sm:$0x1] %v3104_v4  ;;  %v6716_v50 = vmul.f32 %v3690_v23, %v3498_v8 }
 0x26b   : > { %v6649_v42 = vld.sshfl [vmem:[#allocation1 + $0x10] sm:$0xff pattern:$0x75316420]  ;;  %v6651_v63 = vld.sshfl [vmem:[#allocation1 + $0x18] sm:$0xff pattern:$0x75316420]  ;;  %v6726_v28 = vor.u32 %v870_v33, %v869_v25  ;;  %v877_v1 = vor.u32 %v876_v37, %v875_v36 }
 0x26c   : > { %3539 = vst [vmem:[#allocation1 + $0x10] ss:$2 sm:$0xff] %v3512_v46  ;;  %v6674_v46 = vmul.f32 %v6615_v49, %v6529_v34  ;;  %v1432_v54 = vand.u32 2147483647, %v1431_v11  ;;  %v866_v34 = vshll.u32 %v8213_v55, %v863_v58  ;;  %v867_v49 = vshrl.u32 %v8214_v53, %v6665_v61  ;;  %v4329_v36 = vld [vmem:[#allocation2 + $0x660] sm:$0xff] }
 0x26d   : > { %4388 = vxpose.xlu0.b32.cont [12/16] %v4297_v38, 128  ;;  %v872_v11 = vshll.u32 %v8215_v24, %v863_v58  ;;  %v8241_v48 = vand.u32 2147483647, %v6323_v60  ;;  %2878 = vst [vmem:[#allocation1 + $0x20] ss:$2 sm:$0xff] %v2860_v31  ;;  %v880_v8 = vor.u32 %v879_v10, %v878_v13  ;;  %vm884_vm5 = vcmp.lt.s32.totalorder %v6707_v17, 4 }
 0x26e   : > { %v1435_v38 = vmul.f32 %v1434_v6, %v1432_v54  ;;  %v873_v6 = vshrl.u32 %v8212_v29, %v6665_v61  ;;  %v6724_v58 = vor.u32 %v867_v49, %v866_v34  ;;  %v3410_v54 = vrot.slane %v6195_v21, 1 }
 0x26f   : > { %vm6720_vm4 = vcmp.le.f32.partialorder %v8241_v48, 0.7853982  ;;  %v3209_v48 = vrot.slane %v6111_v14, 7  ;;  %v3211_v49 = vrot.slane %v6513_v18, 7  ;;  %vm881_vm6 = vcmp.lt.s32.totalorder %v6707_v17, 1 }
 0x270   : > { %v1436_v39 = vxor.u32 2147483648, %v1435_v38  ;;  %v6732_v51 = vsel %vm6720_vm4, 0, %v1439_v32  ;;  %v6736_v34 = vor.u32 %v873_v6, %v872_v11  ;;  %v3412_v14 = vrot.slane %v6601_v2, 1  ;;  %3442 = vst [vmem:[#allocation2 + $0xb0] sm:$0x80] %v3410_v54 }
 0x271   : > { %3241 = vst [vmem:[#allocation2 + $0xb0] sm:$0xe] %v3209_v48  ;;  %v1458_v33 = vadd.s32 3, %v6732_v51  ;;  %vm883_vm7 = vcmp.lt.s32.totalorder %v6707_v17, 3  ;;  %v890_v18 = vsel %vm884_vm5, %v877_v1, 920167782  ;;  %v6760_v10 = vmul.f32 %v3690_v23, %v6608_v0 }
 0x272   : > { %v1437_v4 = vsel %vm1316_vm3, %v1436_v39, %v1435_v38  ;;  %v3694_v39 = vmul.f32 2.0, %v6625_v27  ;;  %v894_v37 = vsel %vm884_vm5, %v880_v8, 1326507024  ;;  %v8244_v38 = vsub.f32 1.0, %v6674_v46  ;;  %3458 = vst [vmem:[#allocation2 + $0x68] sm:$0x3] %v3410_v54 }
 0x273   : > { %v6689_v26 = vld.sshfl [vmem:[#allocation1 + $0x10] sm:$0xff pattern:$0x75316420]  ;;  %v6696_v3 = vld.sshfl [vmem:[#allocation1 + $0x18] sm:$0xff pattern:$0x75316420]  ;;  %v6744_v25 = vsel %vm6720_vm4, %v6323_v60, %v1437_v4  ;;  %v6767_v11 = vmul.f32 %v6265_v45, %v6716_v50  ;;  %v889_v54 = vsel %vm881_vm6, %v6724_v58, %v6726_v28  ;;  %v893_v0 = vsel %vm881_vm6, %v6726_v28, %v6736_v34 }
 0x274   : > { %8239 = vst [vmem:[#allocation41_spill] sm:$0xff] %v6689_v26  ;;  %v1442_v21 = vmul.f32 %v6744_v25, %v6744_v25  ;;  %v3603_v31 = vmul.f32 %v6204_v20, %v8244_v38  ;;  %vm882_vm8 = vcmp.lt.s32.totalorder %v6707_v17, 2  ;;  %v6780_v23 = vmul.f32 %v3694_v39, %v6625_v27  ;;  %v8245_v48 = vld [vmem:[#allocation34_spill] sm:$0xff] }
 0x275   : > { %8240 = vst [vmem:[#allocation42_spill] sm:$0xff] %v6696_v3  ;;  %4389 = vxpose.xlu0.b32.cont [13/16] %v4313_v56, 128  ;;  %v6769_v56 = vand.u32 3, %v1458_v33  ;;  %v891_v8 = vsel %vm883_vm7, %v6736_v34, %v890_v18  ;;  %v895_v33 = vsel %vm883_vm7, %v877_v1, %v894_v37  ;;  %v6789_v38 = vshll.u32 %v857_v30, 8 }
 0x276   : > { %3616 = vst [vmem:[#allocation1 + $0x10] ss:$2 sm:$0xff] %v3599_v7  ;;  %v4122_v7 = vld [vmem:[#allocation2 + $0x298] sm:$0xff]  ;;  %v1443_v2 = vmul.f32 -0.001358992, %v1442_v21  ;;  %v8247_v47 = vsub.f32 1.0, %v6674_v46 }
 0x277   : > { %4409 = vxpose.xlu1.b32.start [1/16] %v4122_v7, 128  ;;  %v1450_v13 = vmul.f32 -0.00019511016, %v1442_v21  ;;  %3243 = vst [vmem:[#allocation2 + $0x308] sm:$0xe] %v3211_v49  ;;  %v2978_v7 = vrot.slane %v6354_v52, 5  ;;  %v3103_v49 = vrot.slane %v8245_v48, 2 }
 0x278   : > { %3444 = vst [vmem:[#allocation2 + $0x308] sm:$0x80] %v3412_v14  ;;  %v1444_v12 = vadd.f32 0.041655596, %v1443_v2  ;;  %v6795_v18 = vmul.f32 %v3694_v39, %v8247_v47  ;;  %v6798_v52 = vmul.f32 2.0, %v6716_v50  ;;  %v3553_v30 = vrot.slane %v6651_v63, 6 }
 0x279   : > { %3460 = vst [vmem:[#allocation2 + $0x4d8] sm:$0x3] %v3412_v14  ;;  %v1451_v4 = vadd.f32 0.008332121, %v1450_v13  ;;  %v8246_v14 = vld [vmem:[#allocation19_spill] sm:$0xff]  ;;  %v896_v47 = vsel %vm882_vm8, %v893_v0, %v895_v33  ;;  %vm1461_vm9 = vcmp.eq.s32.totalorder %v6769_v56, 0 }
 0x27a   : > { %v3551_v2 = vrot.slane %v8246_v14, 6  ;;  %v1445_v13 = vmul.f32 %v1444_v12, %v1442_v21  ;;  %3010 = vst [vmem:[#allocation2 + $0x670] sm:$0x38] %v2978_v7  ;;  %v6804_v12 = vsel %vm882_vm8, %v889_v54, %v891_v8  ;;  %v4345_v63 = vld [vmem:[#allocation2 + $0x540] sm:$0xff]  ;;  %vm1460_vm10 = vcmp.lt.s32.totalorder %v6769_v56, 2 }
 0x27b   : > { %v1452_v3 = vmul.f32 %v1451_v4, %v1442_v21  ;;  %3135 = vst [vmem:[#allocation2 + $0x670] sm:$0xc0] %v3103_v49  ;;  %v898_v4 = vand.u32 65535, %v6789_v38  ;;  %v900_v54 = vand.u32 65535, %v896_v47  ;;  %vm1464_vm11 = vcmp.eq.s32.totalorder %v6769_v56, 2 }
 0x27c   : > { %v1446_v1 = vadd.f32 -0.4999988, %v1445_v13  ;;  %3151 = vst [vmem:[#allocation2 + $0x500] sm:$0x1] %v3103_v49  ;;  %v901_v0 = vshrl.u32 %v896_v47, 16  ;;  %v922_v8 = vand.u32 65535, %v6804_v12  ;;  %v6818_v49 = vmul.f32 %v6265_v45, %v6795_v18 }
 0x27d   : > { %v6762_v32 = vld.sshfl [vmem:[#allocation1 + $0x10] sm:$0xff pattern:$0x75316420]  ;;  %v3624_v6 = vld.sshfl [vmem:[#allocation1 + $0x18] sm:$0xff pattern:$0x75316420]  ;;  %4390 = vxpose.xlu0.b32.cont [14/16] %v4329_v36, 128 }
 0x27e   : > { %3630 = vst [vmem:[#allocation1 + $0x10] ss:$2 sm:$0xff] %v3603_v31  ;;  %v4138_v36 = vld [vmem:[#allocation2 + $0xb0] sm:$0xff]  ;;  %v8248_v31 = vld [vmem:[#allocation22_spill] sm:$0xff]  ;;  %v1453_v37 = vadd.f32 -0.16666654, %v1452_v3  ;;  %v1447_v7 = vmul.f32 %v1446_v1, %v1442_v21  ;;  %v902_v1 = vmul.u32 %v900_v54, %v898_v4 }
 0x27f   : > { %v3642_v48 = vrot.slane %v8248_v31, 3  ;;  %4410 = vxpose.xlu1.b32.cont [2/16] %v4138_v36, 128  ;;  %v3644_v39 = vrot.slane %v3624_v6, 3  ;;  %3583 = vst [vmem:[#allocation2 + $0x68] sm:$0x1c] %v3551_v2  ;;  %v899_v3 = vshrl.u32 %v6789_v38, 16  ;;  %v923_v6 = vshrl.u32 %v6804_v12, 16 }
 0x280   : > { %v1454_v14 = vmul.f32 %v1453_v37, %v1442_v21  ;;  %3585 = vst [vmem:[#allocation2 + $0x4d8] sm:$0x1c] %v3553_v30  ;;  %v6822_v33 = vadd.f32 1.0, %v1447_v7  ;;  %v865_v2 = vshrl.u32 %v8213_v55, %v6665_v61  ;;  %v8251_v31 = vld [vmem:[#allocation37_spill] sm:$0xff]  ;;  %v6832_v30 = vmul.u32 %v901_v0, %v898_v4  ;;  %v6838_v7 = vld [vmem:[%s5545_s24 + $0x38] sm:$0x77] }
 0x281   : > { %3674 = vst [vmem:[#allocation2 + $0x68] sm:$0xe0] %v3642_v48  ;;  %v6826_v13 = vmul.u32 %v900_v54, %v899_v3  ;;  %v3210_v48 = vrot.slane %v8251_v31, 7  ;;  %v3411_v37 = vrot.slane %v6599_v35, 1  ;;  %v8252_v12 = vld [vmem:[#allocation25_spill] sm:$0xff]  ;;  %v927_v26 = vmul.u32 %v923_v6, %v899_v3 }
 0x282   : > { %3676 = vst [vmem:[#allocation2 + $0x4d8] sm:$0xe0] %v3644_v39  ;;  %v3842_v47 = vrot.slane %v8252_v12, 5  ;;  %v1455_v61 = vadd.f32 1.0, %v1454_v14  ;;  %v4123_v46 = vld [vmem:[#allocation2 + $0x670] sm:$0xff]  ;;  %v8253_v39 = vld [vmem:[#allocation29_spill] sm:$0xff] }
 0x283   : > { %3242 = vst [vmem:[#allocation2 + $0x500] sm:$0xe] %v3210_v48  ;;  %v3967_v27 = vrot.slane %v8253_v39, 2  ;;  %v906_v54 = vshll.u32 %v6832_v30, 16  ;;  %4441 = vxpose.xlu2.b32.start [1/16] %v4123_v46, 128  ;;  %v908_v14 = vshll.u32 %v6826_v13, 16  ;;  %v4361_v48 = vld [vmem:[#allocation2 + $0x7d0] sm:$0xff]  ;;  %v924_v39 = vmul.u32 %v922_v8, %v898_v4 }
 0x284   : > { %3443 = vst [vmem:[#allocation2 + $0x500] sm:$0x80] %v3411_v37  ;;  %v6846_v35 = vmul.f32 %v1455_v61, %v6744_v25  ;;  %v8254_v61 = vxor.u32 2147483648, %v6822_v33  ;;  %v1469_v17 = vand.u32 2147483647, %v6838_v7 }
 0x285   : > { %v6820_v21 = vld.sshfl [vmem:[#allocation1 + $0x10] sm:$0xff pattern:$0x75316420]  ;;  %4391 = vxpose.xlu0.b32.cont [15/16] %v4345_v63, 128  ;;  %v6828_v36 = vld.sshfl [vmem:[#allocation1 + $0x18] sm:$0xff pattern:$0x75316420]  ;;  %v905_v63 = vmul.u32 %v901_v0, %v899_v3  ;;  %v6852_v0 = vmul.u32 %v922_v8, %v899_v3  ;;  %vm910_vm13 = vc.u32 %v902_v1, %v906_v54  ;;  %v912_v12 = vadd.s32 %v906_v54, %v902_v1 }
 0x286   : > { %8249 = vst [vmem:[#allocation34_spill] sm:$0xff] %v6820_v21  ;;  %v1462_v25 = vxor.u32 2147483648, %v6846_v35  ;;  %v6862_v21 = vand.u32 3, %v6619_v15  ;;  %v1472_v1 = vand.u32 2139095040, %v6838_v7 }
 0x287   : > { %8250 = vst [vmem:[#allocation19_spill] sm:$0xff] %v6828_v36  ;;  %v6843_v36 = vmul.u32 %v923_v6, %v898_v4  ;;  %v6866_v4 = vand.u32 3, %v6732_v51  ;;  %vm914_vm14 = vc.u32 %v912_v12, %v908_v14  ;;  %v2885_v54 = vld.sshfl [vmem:[#allocation1 + $0x20] sm:$0xff pattern:$0x75316420]  ;;  %v8255_v51 = vsub.f32 1.0, %v6760_v10 }
 0x288   : > { %3741 = vst [vmem:[#allocation1 + $0x10] ss:$2 sm:$0xff] %v6767_v11  ;;  %v886_v11 = vsel %vm884_vm5, %v6736_v34, 2102212464  ;;  %v4154_v46 = vld [vmem:[#allocation2 + $0x68] sm:$0xff]  ;;  %v1466_v34 = vsel %vm1464_vm11, %v8254_v61, %v6846_v35  ;;  %v915_v15 = vsel %vm914_vm14, 1, %v8224_v16 }
 0x289   : > { %3459 = vst [vmem:[#allocation2 + $0x470] sm:$0x3] %v3411_v37  ;;  %v928_v31 = vshll.u32 %v6843_v36, 16  ;;  %v911_v37 = vsel %vm910_vm13, 1, %v8224_v16  ;;  %4411 = vxpose.xlu1.b32.cont [3/16] %v4154_v46, 128  ;;  %v930_v46 = vshll.u32 %v6852_v0, 16  ;;  %v907_v6 = vshrl.u32 %v6832_v30, 16 }
 0x28a   : > { %3874 = vst [vmem:[#allocation2 + $0x4d0] sm:$0x38] %v3842_v47  ;;  %v913_v8 = vadd.s32 %v911_v37, %v905_v63  ;;  %v1463_v47 = vsel %vm1461_vm9, %v6822_v33, %v1462_v25  ;;  %v2886_v61 = vld.sshfl [vmem:[#allocation1 + $0x28] sm:$0xff pattern:$0x75316420]  ;;  %v3799_v63 = vmul.f32 %v6265_v45, %v8255_v51  ;;  %v885_v37 = vsel %vm881_vm6, %v865_v2, %v6724_v58 }
 0x28b   : > { %3999 = vst [vmem:[#allocation2 + $0x4d0] sm:$0xc0] %v3967_v27  ;;  %vm932_vm15 = vc.u32 %v924_v39, %v928_v31  ;;  %v4139_v44 = vld [vmem:[#allocation2 + $0x500] sm:$0xff]  ;;  %vm2077_vm0 = vcmp.lt.s32.totalorder %v6862_v21, 2  ;;  %vm2078_vm1 = vcmp.eq.s32.totalorder %v6862_v21, 0  ;;  %v934_v56 = vadd.s32 %v928_v31, %v924_v39 }
 0x28c   : > { %4015 = vst [vmem:[#allocation2 + $0x5b0] sm:$0x1] %v3967_v27  ;;  %v1467_v27 = vsel %vm1460_vm10, %v1463_v47, %v1466_v34  ;;  %v933_v51 = vsel %vm932_vm15, 1, %v8224_v16  ;;  %4442 = vxpose.xlu2.b32.cont [2/16] %v4139_v44, 128  ;;  %vm2081_vm3 = vcmp.eq.s32.totalorder %v6862_v21, 2  ;;  %v1473_v30 = vshrl.u32 %v1472_v1, 23  ;;  %v4124_v34 = vld [vmem:[#allocation2 + $0x610] sm:$0xff] }
 0x28d   : > { %4392 = vxpose.xlu0.b32.end [16/16] %v4361_v48, 128  ;;  %v6885_v3 = vsel %vm1457_vm12, nan, %v1467_v27  ;;  %v917_v48 = vadd.s32 %v915_v15, %v913_v8  ;;  %v935_v2 = vadd.s32 %v933_v51, %v927_v26  ;;  %vm2694_vm4 = vcmp.eq.s32.totalorder %v6866_v4, 0  ;;  %2921 = vst [vmem:[#allocation2 + $0x448] sm:$0x7] %v2885_v54 }
 0x28e   : > { %v2864_v58 = vmul.f32 %v5909_v40, %v6885_v3  ;;  %vm2697_vm5 = vcmp.eq.s32.totalorder %v6866_v4, 2  ;;  %v929_v8 = vshrl.u32 %v6843_v36, 16  ;;  %vm936_vm6 = vc.u32 %v934_v56, %v930_v46  ;;  %2922 = vst [vmem:[#allocation2 + $0x748] sm:$0x7] %v2886_v61 }
 0x28f   : > { %v3748_v14 = vld.sshfl [vmem:[#allocation1 + $0x10] sm:$0xff pattern:$0x75316420]  ;;  %v3749_v12 = vld.sshfl [vmem:[#allocation1 + $0x18] sm:$0xff pattern:$0x75316420]  ;;  %v918_v39 = vadd.s32 %v917_v48, %v907_v6  ;;  %v2696_v54 = vsel %vm2694_vm4, %v6822_v33, %v1462_v25  ;;  %v6928_v25 = vadd.s32 %v934_v56, %v930_v46 }
 0x290   : > { %3755 = vst [vmem:[#allocation1 + $0x10] ss:$2 sm:$0xff] %v6818_v49  ;;  %v887_v49 = vsel %vm883_vm7, %v6726_v28, %v886_v11  ;;  %v909_v44 = vshrl.u32 %v6826_v13, 16  ;;  %v937_v47 = vsel %vm936_vm6, 1, %v8224_v16  ;;  %v5260_v15 = vadd.s32 4294967169, %v1473_v30 }
 0x291   : > { %3785 = vst [vmem:[#allocation2 + $0x680] sm:$0x7] %v3749_v12  ;;  %v8256_v26 = vxor.u32 2147483648, %v6645_v43  ;;  %v8257_v11 = vxor.u32 2147483648, %v6643_v9  ;;  %v931_v13 = vshrl.u32 %v6852_v0, 16  ;;  %v939_v1 = vadd.s32 %v937_v47, %v935_v2 }
 0x292   : > { %3784 = vst [vmem:[#allocation2 + $0x50] sm:$0x7] %v3748_v14  ;;  %v4170_v31 = vld [vmem:[#allocation2 + $0x4d0] sm:$0xff]  ;;  %vm2693_vm7 = vcmp.lt.s32.totalorder %v6866_v4, 2  ;;  %v8258_v14 = vxor.u32 2147483648, %v6822_v33  ;;  %v888_v0 = vsel %vm882_vm8, %v885_v37, %v887_v49  ;;  %v6926_v48 = vadd.s32 %v918_v39, %v909_v44  ;;  %v8259_v33 = vld [vmem:[#allocation10_spill] sm:$0xff] }
 0x293   : > { %2891 = vst [vmem:[#allocation1 + $0x20] ss:$2 sm:$0xff] %v2864_v58  ;;  %4412 = vxpose.xlu1.b32.cont [4/16] %v4170_v31, 128  ;;  %v2080_v28 = vsel %vm2078_vm1, %v6643_v9, %v8256_v26  ;;  %v2083_v36 = vsel %vm2081_vm3, %v8257_v11, %v6645_v43  ;;  %v1479_v9 = vadd.s32 1, %v5260_v15  ;;  %v940_v61 = vadd.s32 %v939_v1, %v929_v8  ;;  %v4054_v30 = vld.sshfl [vmem:[#allocation1 + $0x8] sm:$0xff pattern:$0x75316420] }
 0x294   : > { %v2699_v12 = vsel %vm2697_vm5, %v8258_v14, %v6846_v35  ;;  %v2084_v6 = vsel %vm2077_vm0, %v2080_v28, %v2083_v36  ;;  %v3917_v51 = vsub.f32 1.0, %v8259_v33  ;;  %v6935_v37 = vmul.f32 2.0, %v6795_v18  ;;  %v4140_v31 = vld [vmem:[#allocation2 + $0x308] sm:$0xff] }
 0x295   : > { %4473 = vxpose.xlu0.b32.start [1/16] %v4124_v34, 128  ;;  %vm1480_vm9 = vcmp.gt.s32.totalorder %v1479_v9, 0  ;;  %v2700_v35 = vsel %vm2693_vm7, %v2696_v54, %v2699_v12  ;;  %v941_v58 = vadd.s32 %v940_v61, %v931_v13  ;;  %v3552_v21 = vrot.slane %v6649_v42, 6 }
 0x296   : > { %v1481_v46 = vsel %vm1480_vm9, %v1479_v9, 0  ;;  %v8260_v56 = vsub.f32 1.0, %v6780_v23  ;;  %v8261_v2 = vsub.f32 1.0, %v6760_v10  ;;  %v6947_v34 = vsel %vm837_vm2, nan, %v2084_v6  ;;  %v8262_v10 = vld [vmem:[#allocation26_spill] sm:$0xff] }
 0x297   : > { %v3760_v27 = vld.sshfl [vmem:[#allocation1 + $0x10] sm:$0xff pattern:$0x75316420]  ;;  %v3761_v43 = vld.sshfl [vmem:[#allocation1 + $0x18] sm:$0xff pattern:$0x75316420]  ;;  %v942_v8 = vmul.u32 %v6789_v38, %v888_v0  ;;  %vm944_vm8 = vc.u32 %v6926_v48, %v6928_v25  ;;  %v4034_v39 = vmul.f32 %v8262_v10, %v3917_v51  ;;  %v2935_v13 = vmul.f32 %v5909_v40, %v6947_v34 }
 0x298   : > { %3816 = vst [vmem:[#allocation1 + $0x10] ss:$2 sm:$0xff] %v3799_v63  ;;  %v3643_v63 = vrot.slane %v6762_v32, 3  ;;  %v3803_v49 = vmul.f32 %v6265_v45, %v8260_v56  ;;  %v3898_v4 = vmul.f32 %v6798_v52, %v8261_v2  ;;  %v4074_v42 = vrot.slane %v4054_v30, 7 }
 0x299   : > { %3792 = vst [vmem:[#allocation2 + $0x4b8] sm:$0x7] %v3760_v27  ;;  %v6952_v32 = vsel %vm1457_vm12, nan, %v2700_v35  ;;  %v6955_v44 = vmul.f32 2.0, %v6681_v22  ;;  %v945_v57 = vadd.s32 1, %v941_v58  ;;  %v1483_v47 = vand.u32 31, %v1481_v46 }
 0x29a   : > { %3793 = vst [vmem:[#allocation2 + $0x438] sm:$0x7] %v3761_v43  ;;  %v1476_v38 = vand.u32 8388607, %v1469_v17  ;;  %v6962_v60 = vshrl.u32 %v1481_v46, 5  ;;  %v3924_v28 = vmul.f32 %v8262_v10, %v3898_v4  ;;  %v6992_v2 = vmul.f32 2.0, %v6885_v3 }
 0x29b   : > { %3584 = vst [vmem:[#allocation2 + $0x470] sm:$0x1c] %v3552_v21  ;;  %v2897_v15 = vld.sshfl [vmem:[#allocation1 + $0x20] sm:$0xff pattern:$0x75316420]  ;;  %v6969_v1 = vmul.f32 %v6955_v44, %v6681_v22  ;;  %v946_v54 = vsel %vm944_vm8, %v945_v57, %v941_v58  ;;  %v6974_v9 = vsub.s32 32, %v1483_v47  ;;  %v1489_v27 = vshll.u32 %v8214_v53, %v1483_v47 }
 0x29c   : > { %3675 = vst [vmem:[#allocation2 + $0x470] sm:$0xe0] %v3643_v63  ;;  %v2898_v26 = vld.sshfl [vmem:[#allocation1 + $0x28] sm:$0xff pattern:$0x75316420]  ;;  %v947_v12 = vadd.s32 %v946_v54, %v942_v8  ;;  %v1477_v43 = vor.u32 8388608, %v1476_v38  ;;  %v1492_v0 = vshll.u32 %v8215_v24, %v1483_v47  ;;  %v1495_v61 = vshll.u32 %v8212_v29, %v1483_v47 }
 0x29d   : > { %4106 = vst [vmem:[#allocation2 + $0x5b0] sm:$0xe] %v4074_v42  ;;  %4474 = vxpose.xlu0.b32.cont [2/16] %v4140_v31, 128  ;;  %v1498_v22 = vshll.u32 %v8216_v5, %v1483_v47  ;;  %v1486_v33 = vshll.u32 %v8213_v55, %v1483_v47  ;;  %v1487_v51 = vshrl.u32 %v8214_v53, %v6974_v9  ;;  %v4156_v58 = vld [vmem:[#allocation2 + $0x4d8] sm:$0xff]  ;;  %vm1501_vm2 = vcmp.lt.s32.totalorder %v6962_v60, 1 }
 0x29e   : > { %4061 = vst [vmem:[#allocation1] ss:$2 sm:$0xff] %v4034_v39  ;;  %v948_v6 = vadd.s32 536870912, %v947_v12  ;;  %v1490_v35 = vshrl.u32 %v8215_v24, %v6974_v9  ;;  %v1493_v63 = vshrl.u32 %v8212_v29, %v6974_v9  ;;  %v1496_v46 = vshrl.u32 %v8216_v5, %v6974_v9 }
 0x29f   : > { %v3823_v11 = vld.sshfl [vmem:[#allocation1 + $0x10] sm:$0xff pattern:$0x75316420]  ;;  %v3824_v36 = vld.sshfl [vmem:[#allocation1 + $0x18] sm:$0xff pattern:$0x75316420]  ;;  %v1499_v56 = vshrl.u32 %v8217_v59, %v6974_v9  ;;  %v7003_v8 = vor.u32 %v1487_v51, %v1486_v33  ;;  %v2939_v47 = vmul.f32 %v5909_v40, %v6952_v32  ;;  %v7060_v51 = vmul.f32 %v6955_v44, %v6947_v34 }
 0x2a0   : > { %3830 = vst [vmem:[#allocation1 + $0x10] ss:$2 sm:$0xff] %v3803_v49  ;;  %v3844_v14 = vrot.slane %v3824_v36, 5  ;;  %v3843_v21 = vrot.slane %v3823_v11, 5  ;;  %v6994_v53 = vshrl.u32 %v948_v6, 30  ;;  %v6996_v24 = vor.u32 %v1490_v35, %v1489_v27 }
 0x2a1   : > { %2953 = vst [vmem:[#allocation1 + $0x20] ss:$2 sm:$0xff] %v2935_v13  ;;  %v6999_v29 = vor.u32 %v1493_v63, %v1492_v0  ;;  %v1497_v5 = vor.u32 %v1496_v46, %v1495_v61  ;;  %v1500_v30 = vor.u32 %v1499_v56, %v1498_v22  ;;  %vm1504_vm10 = vcmp.lt.s32.totalorder %v6962_v60, 4 }
 0x2a2   : > { %3876 = vst [vmem:[#allocation2 + $0x680] sm:$0x38] %v3844_v14  ;;  %v950_v59 = vshll.u32 %v6994_v53, 30  ;;  %vm1503_vm11 = vcmp.lt.s32.totalorder %v6962_v60, 3  ;;  %v7006_v31 = vshll.u32 %v1477_v43, 8  ;;  %v8263_v42 = vsub.f32 1.0, %v6780_v23 }
 0x2a3   : > { %v4155_v49 = vld [vmem:[#allocation2 + $0x470] sm:$0xff]  ;;  %2929 = vst [vmem:[#allocation2 + $0x1e0] sm:$0x7] %v2897_v15  ;;  %v7019_v15 = vmul.f32 %v6992_v2, %v6885_v3  ;;  %vm1502_vm12 = vcmp.lt.s32.totalorder %v6962_v60, 2  ;;  %v1510_v23 = vsel %vm1504_vm10, %v1497_v5, 920167782  ;;  %v1513_v11 = vsel %vm1501_vm2, %v6996_v24, %v6999_v29 }
 0x2a4   : > { %4443 = vxpose.xlu2.b32.cont [3/16] %v4155_v49, 128  ;;  %v4186_v4 = vld [vmem:[#allocation2 + $0x5b0] sm:$0xff]  ;;  %3875 = vst [vmem:[#allocation2 + $0x50] sm:$0x38] %v3843_v21  ;;  %v3902_v39 = vmul.f32 %v6935_v37, %v8263_v42  ;;  %v3906_v36 = vmul.f32 %v6798_v52, %v6716_v50  ;;  %v1514_v3 = vsel %vm1504_vm10, %v1500_v30, 1326507024  ;;  %v7043_v14 = vand.u32 65535, %v7006_v31 }
 0x2a5   : > { %4413 = vxpose.xlu1.b32.cont [5/16] %v4186_v4, 128  ;;  %2930 = vst [vmem:[#allocation2 + $0x220] sm:$0x7] %v2898_v26  ;;  %4475 = vxpose.xlu0.b32.cont [3/16] %v4156_v58, 128  ;;  %v7021_v26 = vsub.s32 %v947_v12, %v950_v59  ;;  %v1515_v54 = vsel %vm1503_vm11, %v1497_v5, %v1514_v3  ;;  %v7046_v12 = vshrl.u32 %v7006_v31, 16  ;;  %v4202_v50 = vld [vmem:[#allocation2 + $0x188] sm:$0xff]  ;;  %v3050_v58 = vsub.f32 1.0, %v6969_v1 }
 0x2a6   : > { %v1511_v43 = vsel %vm1503_vm11, %v6999_v29, %v1510_v23  ;;  %v1516_v0 = vsel %vm1502_vm12, %v1513_v11, %v1515_v54  ;;  %v3928_v61 = vmul.f32 %v8262_v10, %v3902_v39  ;;  %v3914_v33 = vsub.f32 1.0, %v3906_v36  ;;  %v8264_v39 = vld [vmem:[#allocation9_spill] sm:$0xff] }
 0x2a7   : > { %v7011_v57 = vld.sshfl [vmem:[#allocation1 + $0x10] sm:$0xff pattern:$0x75316420]  ;;  %v7013_v38 = vld.sshfl [vmem:[#allocation1 + $0x18] sm:$0xff pattern:$0x75316420]  ;;  %v3910_v56 = vmul.f32 %v6935_v37, %v6795_v18  ;;  %v943_v3 = vadd.s32 %v6928_v25, %v6926_v48 }
 0x2a8   : > { %3941 = vst [vmem:[#allocation1 + $0x10] ss:$2 sm:$0xff] %v3924_v28  ;;  %v7034_v13 = vld.sshfl [vmem:[#allocation1 + $0x20] sm:$0xff pattern:$0x75316420]  ;;  %v1509_v28 = vsel %vm1501_vm2, %v7003_v8, %v6996_v24  ;;  %vm952_vm13 = vcmp.lt.s32.totalorder %v7021_v26, 0 }
 0x2a9   : > { %v7048_v52 = vld.sshfl [vmem:[#allocation1 + $0x28] sm:$0xff pattern:$0x75316420]  ;;  %v953_v27 = vsub.s32 0, %v7021_v26  ;;  %v1520_v22 = vand.u32 65535, %v1516_v0  ;;  %v1521_v6 = vshrl.u32 %v1516_v0, 16  ;;  %v7066_v63 = vsel %vm1502_vm12, %v1509_v28, %v1511_v43 }
 0x2aa   : > { %2966 = vst [vmem:[#allocation1 + $0x20] ss:$2 sm:$0xff] %v2939_v47  ;;  %v7078_v59 = vmul.f32 2.0, %v7060_v51  ;;  %v3060_v47 = vmul.f32 %v8264_v39, %v7060_v51  ;;  %v1543_v37 = vshrl.u32 %v7066_v63, 16  ;;  %v4218_v11 = vld [vmem:[#allocation2 + $0x5c0] sm:$0xff]  ;;  %v1542_v28 = vand.u32 65535, %v7066_v63 }
 0x2ab   : > { %v954_v35 = vsel %vm952_vm13, %v953_v27, %v7021_v26  ;;  %v7069_v46 = vmul.u32 %v1521_v6, %v7043_v14  ;;  %v1522_v34 = vmul.u32 %v1520_v22, %v7043_v14  ;;  %v7075_v44 = vmul.u32 %v1520_v22, %v7046_v12 }
 0x2ac   : > { %v955_v21 = vclz %v954_v35  ;;  %v7088_v36 = vmul.f32 %v7078_v59, %v3050_v58  ;;  %v1525_v27 = vmul.u32 %v1521_v6, %v7046_v12  ;;  %v4031_v0 = vmul.f32 %v8262_v10, %v3914_v33 }
 0x2ad   : > { %4414 = vxpose.xlu1.b32.cont [6/16] %v4202_v50, 128  ;;  %v1526_v23 = vshll.u32 %v7069_v46, 16  ;;  %v1528_v18 = vshll.u32 %v7075_v44, 16  ;;  %v7106_v6 = vmul.u32 %v1543_v37, %v7043_v14  ;;  %v3918_v63 = vsub.f32 1.0, %v3910_v56 }
 0x2ae   : > { %v5249_v42 = vadd.s32 4294967294, %v955_v21  ;;  %v7110_v33 = vmul.f32 %v6992_v2, %v6952_v32  ;;  %vm4889_vm1 = vcmask 293888   ;;  %vm1471_vm13 = vcmp.lt.s32.totalorder %v6838_v7, 0 }
 0x2af   : > { %v3948_v49 = vld.sshfl [vmem:[#allocation1 + $0x10] sm:$0xff pattern:$0x75316420]  ;;  %v3949_v4 = vld.sshfl [vmem:[#allocation1 + $0x18] sm:$0xff pattern:$0x75316420]  ;;  %vm1530_vm15 = vc.u32 %v1522_v34, %v1526_v23  ;;  %v1532_v43 = vadd.s32 %v1526_v23, %v1522_v34 }
 0x2b0   : > { %3955 = vst [vmem:[#allocation1 + $0x10] ss:$2 sm:$0xff] %v3928_v61  ;;  %v3969_v5 = vrot.slane %v3949_v4, 2  ;;  %v3968_v30 = vrot.slane %v3948_v49, 2  ;;  %vm5250_vm14 = vcmp.lt.s32.totalorder %v5249_v42, 0  ;;  %v1531_v25 = vsel %vm1530_vm15, 1, %v8224_v16 }
 0x2b1   : > { %v7093_v54 = vld.sshfl [vmem:[#allocation1 + $0x20] sm:$0xff pattern:$0x75316420]  ;;  %v958_v50 = vsel %vm5250_vm14, 0, %v5249_v42  ;;  %vm7101_vm0 = vc.u32 %v1532_v43, %v1528_v18  ;;  %v8181_v49 = vsub.f32 1.0, %v7019_v15  ;;  %v7119_v42 = vmul.u32 %v1542_v28, %v7046_v12  ;;  %v4234_v43 = vld [vmem:[#allocation2 + $0x720] sm:$0xff] }
 0x2b2   : > { %4001 = vst [vmem:[#allocation2 + $0x680] sm:$0xc0] %v3969_v5  ;;  %v7097_v61 = vld.sshfl [vmem:[#allocation1 + $0x28] sm:$0xff pattern:$0x75316420]  ;;  %v959_v22 = vsub.s32 32, %v958_v50  ;;  %v960_v35 = vshll.u32 %v7021_v26, %v958_v50 }
 0x2b3   : > { %4017 = vst [vmem:[#allocation2 + $0x218] sm:$0x1] %v3969_v5  ;;  %v963_v48 = vsub.s32 4294967266, %v958_v50  ;;  %v1533_v5 = vadd.s32 %v1531_v25, %v1525_v27  ;;  %v7122_v56 = vmul.f32 2.0, %v7110_v33  ;;  %v1548_v18 = vshll.u32 %v7106_v6, 16 }
 0x2b4   : > { %4000 = vst [vmem:[#allocation2 + $0x50] sm:$0xc0] %v3968_v30  ;;  %v961_v26 = vshrl.u32 %v943_v3, %v959_v22  ;;  %vm7257_vm14 = vcmp.le.f32.partialorder %v1469_v17, 0.7853982 }
 0x2b5   : > { %4016 = vst [vmem:[#allocation2 + $0x6d8] sm:$0x1] %v3968_v30  ;;  %4415 = vxpose.xlu1.b32.cont [7/16] %v4218_v11, 128  ;;  %v1544_v30 = vmul.u32 %v1542_v28, %v7043_v14  ;;  %v964_v2 = vadd.s32 127, %v963_v48  ;;  %v4035_v14 = vmul.f32 %v8262_v10, %v3918_v63  ;;  %v3064_v11 = vmul.f32 %v8264_v39, %v7110_v33 }
 0x2b6   : > { %3078 = vst [vmem:[#allocation1 + $0x20] ss:$2 sm:$0xff] %v3060_v47  ;;  %v962_v32 = vor.u32 %v961_v26, %v960_v35  ;;  %v1535_v47 = vsel %vm7101_vm0, 1, %v8224_v16  ;;  %v7134_v3 = vmul.f32 %v7122_v56, %v8181_v49  ;;  %v1547_v35 = vmul.u32 %v1543_v37, %v7046_v12 }
 0x2b7   : > { %v7113_v4 = vld.sshfl [vmem:[#allocation1 + $0x10] sm:$0xff pattern:$0x75316420]  ;;  %v7115_v34 = vld.sshfl [vmem:[#allocation1 + $0x18] sm:$0xff pattern:$0x75316420]  ;;  %v1537_v22 = vadd.s32 %v1535_v47, %v1533_v5  ;;  %vm1552_vm3 = vc.u32 %v1544_v30, %v1548_v18  ;;  %v1554_v12 = vadd.s32 %v1548_v18, %v1544_v30 }
 0x2b8   : > { %4048 = vst [vmem:[#allocation1 + $0x10] ss:$2 sm:$0xff] %v4031_v0  ;;  %v965_v28 = vshll.u32 %v964_v2, 23  ;;  %v1527_v0 = vshrl.u32 %v7069_v46, 16  ;;  %v1550_v48 = vshll.u32 %v7119_v42, 16  ;;  %v969_v21 = vcvt.s32.f32 %v962_v32 }
 0x2b9   : > { %v4172_v23 = vld [vmem:[#allocation2 + $0x680] sm:$0xff]  ;;  %v4393_v27 = vpop.trf.xlu0  ;;  %v1506_v63 = vsel %vm1504_vm10, %v6999_v29, 2102212464  ;;  %v1485_v46 = vshrl.u32 %v8213_v55, %v6974_v9  ;;  %v1529_v5 = vshrl.u32 %v7075_v44, 16  ;;  %v1553_v32 = vsel %vm1552_vm3, 1, %v8224_v16 }
 0x2ba   : > { %4476 = vxpose.xlu0.b32.cont [4/16] %v4172_v23, 128  ;;  %4890 = vst.msk [vmem:[%s5555_s28] sm:$0xff] %vm4889_vm1, %v4393_v27  ;;  %v966_v25 = vor.u32 4788187, %v965_v28  ;;  %v1538_v29 = vadd.s32 %v1537_v22, %v1527_v0  ;;  %v1555_v28 = vadd.s32 %v1553_v32, %v1547_v35  ;;  %vm1556_vm4 = vc.u32 %v1554_v12, %v1550_v48  ;;  %v7161_v18 = vld [vmem:[%s5545_s24 + $0x18] sm:$0x77] }
 0x2bb   : > { %v4171_v50 = vld [vmem:[#allocation2 + $0x50] sm:$0xff]  ;;  %v1549_v55 = vshrl.u32 %v7106_v6, 16  ;;  %v1505_v9 = vsel %vm1501_vm2, %v1485_v46, %v7003_v8  ;;  %v1507_v44 = vsel %vm1503_vm11, %v6996_v24, %v1506_v63  ;;  %v1557_v30 = vsel %vm1556_vm4, 1, %v8224_v16 }
 0x2bc   : > { %4444 = vxpose.xlu2.b32.cont [4/16] %v4171_v50, 128  ;;  %v967_v37 = vand.u32 2147483647, %v966_v25  ;;  %vm851_vm5 = vcmp.lt.s32.totalorder %v7161_v18, 0  ;;  %v1551_v6 = vshrl.u32 %v7119_v42, 16  ;;  %v4250_v8 = vld [vmem:[#allocation2 + $0x2f0] sm:$0xff]  ;;  %v7172_v24 = vadd.s32 %v1538_v29, %v1529_v5  ;;  %v4266_v29 = vld [vmem:[#allocation2 + $0x3a8] sm:$0xff] }
 0x2bd   : > { %v7144_v26 = vld.sshfl [vmem:[#allocation1 + $0x20] sm:$0xff pattern:$0x75316420]  ;;  %v7146_v2 = vld.sshfl [vmem:[#allocation1 + $0x28] sm:$0xff pattern:$0x75316420]  ;;  %4416 = vxpose.xlu1.b32.cont [8/16] %v4234_v43, 128  ;;  %v7174_v35 = vadd.s32 %v1554_v12, %v1550_v48  ;;  %v1508_v42 = vsel %vm1502_vm12, %v1505_v9, %v1507_v44  ;;  %vm992_vm11 = vweird.f32 %v7161_v18 }
 0x2be   : > { %3091 = vst [vmem:[#allocation1 + $0x20] ss:$2 sm:$0xff] %v3064_v11  ;;  %v970_v49 = vmul.f32 %v969_v21, %v967_v37  ;;  %v1559_v11 = vadd.s32 %v1557_v30, %v1555_v28  ;;  %v8267_v0 = vand.u32 2147483647, %v6578_v62  ;;  %v1562_v12 = vmul.u32 %v7006_v31, %v1508_v42 }
 0x2bf   : > { %v4056_v47 = vld.sshfl [vmem:[#allocation1 + $0x18] sm:$0xff pattern:$0x75316420]  ;;  %v4055_v23 = vld.sshfl [vmem:[#allocation1 + $0x10] sm:$0xff pattern:$0x75316420]  ;;  %vm1564_vm7 = vc.u32 %v7172_v24, %v7174_v35 }
 0x2c0   : > { %v4076_v50 = vrot.slane %v4056_v47, 7  ;;  %v4075_v27 = vrot.slane %v4055_v23, 7  ;;  %4062 = vst [vmem:[#allocation1 + $0x10] ss:$2 sm:$0xff] %v4035_v14  ;;  %v973_v14 = vsub.s32 4, %v6994_v53  ;;  %v971_v16 = vxor.u32 2147483648, %v970_v49 }
 0x2c1   : > { %v4394_v43 = vpop.trf.xlu0  ;;  %vm7168_vm6 = vcmp.le.f32.partialorder %v8267_v0, 0.7853982  ;;  %v1560_v25 = vadd.s32 %v1559_v11, %v1549_v55  ;;  %v7206_v22 = vmul.f32 2.0, %v7088_v36 }
 0x2c2   : > { %4108 = vst [vmem:[#allocation2 + $0x218] sm:$0xe] %v4076_v50  ;;  %v972_v21 = vsel %vm851_vm5, %v971_v16, %v970_v49  ;;  %v974_v62 = vsel %vm851_vm5, %v973_v14, %v6994_v53  ;;  %v4204_v14 = vld [vmem:[#allocation2 + $0x140] sm:$0xff] }
 0x2c3   : > { %4107 = vst [vmem:[#allocation2 + $0x6d8] sm:$0xe] %v4075_v27  ;;  %v975_v63 = vsel %vm7168_vm6, %v7161_v18, %v972_v21  ;;  %v1561_v48 = vadd.s32 %v1560_v25, %v1551_v6  ;;  %v7193_v49 = vsel %vm7168_vm6, 0, %v974_v62  ;;  %v7199_v27 = vmul.f32 %v7078_v59, %v7060_v51  ;;  %v4282_v62 = vld [vmem:[#allocation2 + $0x1f0] sm:$0xff] }
 0x2c4   : > { %4891 = vst.msk [vmem:[%s5555_s28 + $0x8] sm:$0xff] %vm4889_vm1, %v4394_v43  ;;  %v977_v46 = vmul.f32 %v975_v63, %v975_v63  ;;  %v993_v55 = vadd.s32 3, %v7193_v49  ;;  %vm1612_vm6 = vweird.f32 %v6838_v7 }
 0x2c5   : > { %4417 = vxpose.xlu1.b32.cont [9/16] %v4250_v8, 128  ;;  %v1565_v60 = vadd.s32 1, %v1561_v48  ;;  %v4203_v8 = vld [vmem:[#allocation2 + $0x538] sm:$0xff]  ;;  %v3282_v0 = vsub.f32 1.0, %v7199_v27 }
 0x2c6   : > { %v978_v5 = vmul.f32 -0.001358992, %v977_v46  ;;  %v985_v53 = vmul.f32 -0.00019511016, %v977_v46  ;;  %v994_v51 = vand.u32 3, %v993_v55 }
 0x2c7   : > { %v1566_v47 = vsel %vm1564_vm7, %v1565_v60, %v1561_v48  ;;  %v7212_v25 = vmul.f32 %v7206_v22, %v3282_v0 }
 0x2c8   : > { %v979_v28 = vadd.f32 0.041655596, %v978_v5  ;;  %v986_v31 = vadd.f32 0.008332121, %v985_v53  ;;  %v1567_v50 = vadd.s32 %v1566_v47, %v1562_v12  ;;  %vm999_vm9 = vcmp.eq.s32.totalorder %v994_v51, 2 }
 0x2c9   : > { %v4188_v37 = vld [vmem:[#allocation2 + $0x218] sm:$0xff]  ;;  %v4395_v23 = vpop.trf.xlu0  ;;  %vm996_vm2 = vcmp.eq.s32.totalorder %v994_v51, 0  ;;  %vm995_vm10 = vcmp.lt.s32.totalorder %v994_v51, 2 }
 0x2ca   : > { %4477 = vxpose.xlu0.b32.cont [5/16] %v4188_v37, 128  ;;  %v4187_v32 = vld [vmem:[#allocation2 + $0x6d8] sm:$0xff]  ;;  %4892 = vst.msk [vmem:[%s5555_s28 + $0x10] sm:$0xff] %vm4889_vm1, %v4395_v23  ;;  %v980_v9 = vmul.f32 %v979_v28, %v977_v46  ;;  %v987_v44 = vmul.f32 %v986_v31, %v977_v46  ;;  %v1568_v30 = vadd.s32 536870912, %v1567_v50 }
 0x2cb   : > { %4445 = vxpose.xlu2.b32.cont [5/16] %v4187_v32, 128  ;;  %v4220_v32 = vld [vmem:[#allocation2 + $0x5e0] sm:$0xff] }
 0x2cc   : > { %v981_v6 = vadd.f32 -0.4999988, %v980_v9  ;;  %v988_v11 = vadd.f32 -0.16666654, %v987_v44  ;;  %v7202_v43 = vshrl.u32 %v1568_v30, 30  ;;  %v4298_v30 = vld [vmem:[#allocation2 + $0x3e0] sm:$0xff] }
 0x2cd   : > { %4418 = vxpose.xlu1.b32.cont [10/16] %v4266_v29, 128  ;;  %v7231_v29 = vmul.f32 2.0, %v7134_v3 }
 0x2ce   : > { %v982_v59 = vmul.f32 %v981_v6, %v977_v46  ;;  %v989_v16 = vmul.f32 %v988_v11, %v977_v46  ;;  %v1570_v42 = vshll.u32 %v7202_v43, 30  ;;  %v7220_v46 = vmul.f32 %v7122_v56, %v7110_v33  ;;  %v4219_v56 = vld [vmem:[#allocation2 + $0x758] sm:$0xff] }
 0x2cf   : > { %v1563_v6 = vadd.s32 %v7174_v35, %v7172_v24  ;;  %v4314_v35 = vld [vmem:[#allocation2 + $0x7c8] sm:$0xff] }
 0x2d0   : > { %v7214_v48 = vadd.f32 1.0, %v982_v59  ;;  %v990_v12 = vadd.f32 1.0, %v989_v16  ;;  %v1571_v60 = vsub.s32 %v1567_v50, %v1570_v42  ;;  %v4236_v42 = vld [vmem:[#allocation2 + $0x450] sm:$0xff] }
 0x2d1   : > { %v4396_v21 = vpop.trf.xlu0 }
 0x2d2   : > { %4478 = vxpose.xlu0.b32.cont [6/16] %v4204_v14, 128  ;;  %4893 = vst.msk [vmem:[%s5555_s28 + $0x18] sm:$0xff] %vm4889_vm1, %v4396_v21  ;;  %v7222_v37 = vmul.f32 %v990_v12, %v975_v63  ;;  %v1000_v5 = vxor.u32 2147483648, %v7214_v48  ;;  %vm1572_vm8 = vcmp.lt.s32.totalorder %v1571_v60, 0  ;;  %v1573_v53 = vsub.s32 0, %v1571_v60  ;;  %v4235_v21 = vld [vmem:[#allocation2 + $0x40] sm:$0xff] }
 0x2d3   : > { %4446 = vxpose.xlu2.b32.cont [6/16] %v4203_v8, 128  ;;  %v3286_v63 = vsub.f32 1.0, %v7220_v46  ;;  %v3509_v46 = vmul.f32 %v6204_v20, %v7212_v25 }
 0x2d4   : > { %v997_v47 = vxor.u32 2147483648, %v7222_v37  ;;  %v1001_v23 = vsel %vm999_vm9, %v1000_v5, %v7222_v37  ;;  %v1574_v33 = vsel %vm1572_vm8, %v1573_v53, %v1571_v60 }
 0x2d5   : > { %4419 = vxpose.xlu1.b32.cont [11/16] %v4282_v62, 128  ;;  %v1575_v28 = vclz %v1574_v33  ;;  %v7240_v50 = vmul.f32 %v7231_v29, %v3286_v63  ;;  %v3372_v27 = vmul.f32 %v6109_v19, %v3286_v63 }
 0x2d6   : > { %v998_v31 = vsel %vm996_vm2, %v7214_v48, %v997_v47 }
 0x2d7   : > { %v1002_v55 = vsel %vm995_vm10, %v998_v31, %v1001_v23  ;;  %v5261_v9 = vadd.s32 4294967294, %v1575_v28  ;;  %v4252_v28 = vld [vmem:[#allocation2 + $0x80] sm:$0xff] }
 0x2d8   : > { %v7244_v14 = vsel %vm992_vm11, nan, %v1002_v55  ;;  %v4251_v55 = vld [vmem:[#allocation2 + $0x190] sm:$0xff] }
 0x2d9   : > { %v4397_v44 = vpop.trf.xlu0  ;;  %vm5262_vm12 = vcmp.lt.s32.totalorder %v5261_v9, 0  ;;  %v2861_v8 = vmul.f32 %v5909_v40, %v7244_v14 }
 0x2da   : > { %4479 = vxpose.xlu0.b32.cont [7/16] %v4220_v32, 128  ;;  %4894 = vst.msk [vmem:[%s5555_s28 + $0x20] sm:$0xff] %vm4889_vm1, %v4397_v44  ;;  %v1578_v11 = vsel %vm5262_vm12, 0, %v5261_v9  ;;  %v4283_v44 = vld [vmem:[#allocation2 + $0x6b0] sm:$0xff] }
 0x2db   : > { %4447 = vxpose.xlu2.b32.cont [7/16] %v4219_v56, 128  ;;  %v1579_v51 = vsub.s32 32, %v1578_v11  ;;  %v1580_v59 = vshll.u32 %v1571_v60, %v1578_v11  ;;  %v1583_v16 = vsub.s32 4294967266, %v1578_v11  ;;  %2880 = vst [vmem:[#allocation1 + $0x30] ss:$2 sm:$0xff] %v2861_v8  ;;  %v4330_v11 = vld [vmem:[#allocation2 + $0x6f0] sm:$0xff]  ;;  %v1593_v8 = vsub.s32 4, %v7202_v43 }
 0x2dd   : > { %4420 = vxpose.xlu1.b32.cont [12/16] %v4298_v30, 128  ;;  %v1581_v62 = vshrl.u32 %v1563_v6, %v1579_v51  ;;  %v1584_v12 = vadd.s32 127, %v1583_v16  ;;  %v7266_v51 = vmul.f32 %v7206_v22, %v7088_v36  ;;  %v3691_v22 = vmul.f32 2.0, %v7212_v25 }
 0x2df   : > { %v1582_v53 = vor.u32 %v1581_v62, %v1580_v59  ;;  %v1585_v32 = vshll.u32 %v1584_v12, 23  ;;  %v1594_v62 = vsel %vm1471_vm13, %v1593_v8, %v7202_v43  ;;  %v3499_v12 = vsub.f32 1.0, %v7266_v51 }
 0x2e0   : > { %v7288_v43 = vmul.f32 %v7231_v29, %v7134_v3  ;;  %v3695_v8 = vmul.f32 2.0, %v7240_v50 }
 0x2e1   : > { %v4398_v24 = vpop.trf.xlu0  ;;  %v1586_v23 = vor.u32 4788187, %v1585_v32  ;;  %v1589_v33 = vcvt.s32.f32 %v1582_v53 }
 0x2e2   : > { %4480 = vxpose.xlu0.b32.cont [8/16] %v4236_v42, 128  ;;  %4895 = vst.msk [vmem:[%s5555_s28 + $0x28] sm:$0xff] %vm4889_vm1, %v4398_v24  ;;  %v2887_v60 = vld.sshfl [vmem:[#allocation1 + $0x30] sm:$0xff pattern:$0x75316420]  ;;  %v4268_v42 = vld [vmem:[#allocation2 + $0x5b8] sm:$0xff]  ;;  %v7280_v24 = vmul.f32 %v3691_v22, %v3499_v12 }
 0x2e3   : > { %4448 = vxpose.xlu2.b32.cont [8/16] %v4235_v21, 128  ;;  %v1587_v56 = vand.u32 2147483647, %v1586_v23  ;;  %v2888_v31 = vld.sshfl [vmem:[#allocation1 + $0x38] sm:$0xff pattern:$0x75316420]  ;;  %v4267_v21 = vld [vmem:[#allocation2 + $0x98] sm:$0xff] }
 0x2e4   : > { %2923 = vst [vmem:[#allocation2 + $0x420] sm:$0x7] %v2887_v60 }
 0x2e5   : > { %4421 = vxpose.xlu1.b32.cont [13/16] %v4314_v35, 128  ;;  %v1590_v9 = vmul.f32 %v1589_v33, %v1587_v56  ;;  %2924 = vst [vmem:[#allocation2 + $0x180] sm:$0x7] %v2888_v31  ;;  %v1596_v35 = vsel %vm7257_vm14, 0, %v1594_v62  ;;  %v4346_v56 = vld [vmem:[#allocation2 + $0x7a0] sm:$0xff]  ;;  %v2230_v62 = vand.u32 3, %v7193_v49 }
 0x2e6   : > { %v4300_v49 = vld [vmem:[#allocation2 + $0xc0] sm:$0xff] }
 0x2e7   : > { %v1591_v30 = vxor.u32 2147483648, %v1590_v9  ;;  %vm2232_vm0 = vcmp.eq.s32.totalorder %v2230_v62, 0  ;;  %vm2235_vm9 = vcmp.eq.s32.totalorder %v2230_v62, 2  ;;  %vm2231_vm8 = vcmp.lt.s32.totalorder %v2230_v62, 2 }
 0x2e9   : > { %v4399_v6 = vpop.trf.xlu0  ;;  %v1592_v59 = vsel %vm1471_vm13, %v1591_v30, %v1590_v9  ;;  %v4284_v30 = vld [vmem:[#allocation2 + $0x518] sm:$0xff] }
 0x2ea   : > { %4481 = vxpose.xlu0.b32.cont [9/16] %v4252_v28, 128  ;;  %4896 = vst.msk [vmem:[%s5555_s28 + $0x30] sm:$0xff] %vm4889_vm1, %v4399_v6  ;;  %v1595_v17 = vsel %vm7257_vm14, %v6838_v7, %v1592_v59 }
 0x2eb   : > { %4449 = vxpose.xlu2.b32.cont [9/16] %v4251_v55, 128  ;;  %v1597_v16 = vmul.f32 %v1595_v17, %v1595_v17  ;;  %v1613_v55 = vadd.s32 3, %v1596_v35 }
 0x2ed   : > { %4422 = vxpose.xlu1.b32.cont [14/16] %v4330_v11, 128  ;;  %v1598_v53 = vmul.f32 -0.001358992, %v1597_v16  ;;  %v1605_v32 = vmul.f32 -0.00019511016, %v1597_v16  ;;  %v8185_v11 = vsub.f32 1.0, %v7288_v43 }
 0x2ef   : > { %v1599_v23 = vadd.f32 0.041655596, %v1598_v53  ;;  %v1606_v60 = vadd.f32 0.008332121, %v1605_v32  ;;  %v7295_v29 = vmul.f32 %v3695_v8, %v8185_v11  ;;  %v2846_v32 = vand.u32 3, %v1596_v35  ;;  %v4299_v35 = vld [vmem:[#allocation2 + $0x1b0] sm:$0xff] }
 0x2f1   : > { %v4400_v33 = vpop.trf.xlu0  ;;  %v1600_v28 = vmul.f32 %v1599_v23, %v1597_v16  ;;  %v1607_v31 = vmul.f32 %v1606_v60, %v1597_v16  ;;  %vm2848_vm4 = vcmp.eq.s32.totalorder %v2846_v32, 0  ;;  %vm2851_vm5 = vcmp.eq.s32.totalorder %v2846_v32, 2 }
 0x2f2   : > { %4482 = vxpose.xlu0.b32.cont [10/16] %v4268_v42, 128  ;;  %4897 = vst.msk [vmem:[%s5555_s28 + $0x38] sm:$0xff] %vm4889_vm1, %v4400_v33  ;;  %v4362_v33 = vld [vmem:[#allocation2 + $0x428] sm:$0xff]  ;;  %vm2847_vm2 = vcmp.lt.s32.totalorder %v2846_v32, 2  ;;  %v4316_v32 = vld [vmem:[#allocation2 + $0x550] sm:$0xff] }
 0x2f3   : > { %4450 = vxpose.xlu2.b32.cont [10/16] %v4267_v21, 128  ;;  %v1601_v9 = vadd.f32 -0.4999988, %v1600_v28  ;;  %v1608_v6 = vadd.f32 -0.16666654, %v1607_v31  ;;  %v1614_v21 = vand.u32 3, %v1613_v55  ;;  %v7301_v31 = vmul.f32 %v3691_v22, %v7212_v25 }
 0x2f4   : > { %v2237_v22 = vsel %vm2235_vm9, %v1000_v5, %v7222_v37 }
 0x2f5   : > { %4423 = vxpose.xlu1.b32.cont [15/16] %v4346_v56, 128  ;;  %v1602_v59 = vmul.f32 %v1601_v9, %v1597_v16  ;;  %v1609_v42 = vmul.f32 %v1608_v6, %v1597_v16  ;;  %vm1619_vm15 = vcmp.eq.s32.totalorder %v1614_v21, 2  ;;  %vm1616_vm3 = vcmp.eq.s32.totalorder %v1614_v21, 0 }
 0x2f6   : > { %vm1615_vm7 = vcmp.lt.s32.totalorder %v1614_v21, 2 }
 0x2f7   : > { %v1603_v53 = vadd.f32 1.0, %v1602_v59  ;;  %v1610_v56 = vadd.f32 1.0, %v1609_v42  ;;  %v3105_v59 = vrot.slane %v7144_v26, 2  ;;  %v7309_v42 = vmul.f32 %v3695_v8, %v7240_v50 }
 0x2f9   : > { %v4401_v23 = vpop.trf.xlu0  ;;  %v1620_v60 = vxor.u32 2147483648, %v1603_v53  ;;  %v1611_v28 = vmul.f32 %v1610_v56, %v1595_v17  ;;  %v2234_v17 = vsel %vm2232_vm0, %v7214_v48, %v997_v47  ;;  %v8184_v47 = vsub.f32 1.0, %v7301_v31  ;;  %3137 = vst [vmem:[#allocation2 + $0x448] sm:$0xc0] %v3105_v59 }
 0x2fa   : > { %4483 = vxpose.xlu0.b32.cont [11/16] %v4284_v30, 128  ;;  %4898 = vst.msk [vmem:[%s5555_s28 + $0x40] sm:$0xff] %vm4889_vm1, %v4401_v23  ;;  %v8182_v26 = vsub.f32 1.0, %v7309_v42  ;;  %v2238_v56 = vsel %vm2231_vm8, %v2234_v17, %v2237_v22 }
 0x2fb   : > { %4451 = vxpose.xlu2.b32.cont [11/16] %v4283_v44, 128  ;;  %v1617_v16 = vxor.u32 2147483648, %v1611_v28  ;;  %v1621_v55 = vsel %vm1619_vm15, %v1620_v60, %v1611_v28  ;;  %v2853_v6 = vsel %vm2851_vm5, %v1620_v60, %v1611_v28  ;;  %v2980_v44 = vrot.slane %v7034_v13, 5  ;;  %3153 = vst [vmem:[#allocation2 + $0x380] sm:$0x1] %v3105_v59 }
 0x2fd   : > { %4424 = vxpose.xlu1.b32.end [16/16] %v4362_v33, 128  ;;  %v1618_v9 = vsel %vm1616_vm3, %v1603_v53, %v1617_v16  ;;  %v2850_v30 = vsel %vm2848_vm4, %v1603_v53, %v1617_v16  ;;  %v7316_v33 = vmul.f32 2.0, %v7280_v24  ;;  %v7319_v53 = vmul.f32 2.0, %v7295_v29  ;;  %3012 = vst [vmem:[#allocation2 + $0x448] sm:$0x38] %v2980_v44  ;;  %v4332_v44 = vld [vmem:[#allocation2 + $0x458] sm:$0xff] }
 0x2fe   : > { %v1622_v13 = vsel %vm1615_vm7, %v1618_v9, %v1621_v55  ;;  %v2854_v37 = vsel %vm2847_vm2, %v2850_v30, %v2853_v6  ;;  %v2239_v55 = vsel %vm992_vm11, nan, %v2238_v56 }
 0x2ff   : > { %v1623_v48 = vsel %vm1612_vm6, nan, %v1622_v13  ;;  %v7331_v5 = vmul.f32 %v7316_v33, %v8184_v47  ;;  %v7337_v21 = vmul.f32 %v7319_v53, %v8182_v26  ;;  %v2855_v28 = vsel %vm1612_vm6, nan, %v2854_v37 }
 0x300   : > { %v2865_v8 = vmul.f32 %v5909_v40, %v1623_v48  ;;  %v3031_v60 = vmul.f32 2.0, %v1623_v48  ;;  %v2936_v17 = vmul.f32 %v5909_v40, %v2239_v55  ;;  %v3167_v37 = vmul.f32 %v8264_v39, %v3050_v58 }
 0x301   : > { %v4402_v23 = vpop.trf.xlu0  ;;  %v2940_v1 = vmul.f32 %v5909_v40, %v2855_v28  ;;  %v3027_v58 = vmul.f32 2.0, %v7244_v14 }
 0x302   : > { %4484 = vxpose.xlu0.b32.cont [12/16] %v4300_v49, 128  ;;  %4899 = vst.msk [vmem:[%s5555_s28 + $0x48] sm:$0xff] %vm4889_vm1, %v4402_v23  ;;  %v4315_v49 = vld [vmem:[#allocation2 + $0x638] sm:$0xff]  ;;  %v7342_v16 = vmul.f32 %v3031_v60, %v2855_v28  ;;  %v4331_v23 = vld [vmem:[#allocation2 + $0x728] sm:$0xff] }
 0x303   : > { %4452 = vxpose.xlu2.b32.cont [12/16] %v4299_v35, 128  ;;  %2892 = vst [vmem:[#allocation1 + $0x30] ss:$2 sm:$0xff] %v2865_v8  ;;  %v7344_v35 = vmul.f32 %v3031_v60, %v1623_v48  ;;  %v7372_v60 = vld.sshfl [vmem:[#allocation1 + $0x20] sm:$0xff pattern:$0x75316420]  ;;  %v7391_v28 = vmul.f32 %v3027_v58, %v2239_v55  ;;  %v3043_v47 = vmul.f32 %v3027_v58, %v7244_v14 }
 0x304   : > { %v3263_v9 = vmul.f32 2.0, %v7342_v16  ;;  %v4125_v30 = vld [vmem:[#allocation2 + $0x448] sm:$0xff] }
 0x305   : > { %v3055_v7 = vsub.f32 1.0, %v7344_v35  ;;  %4505 = vxpose.xlu1.b32.start [1/16] %v4125_v30, 128 }
 0x306   : > { %v7354_v6 = vmul.f32 %v3263_v9, %v7342_v16 }
 0x307   : > { %v7358_v18 = vmul.f32 %v3263_v9, %v3055_v7 }
 0x308   : > { %v8186_v13 = vsub.f32 1.0, %v7354_v6 }
 0x309   : > { %v4403_v62 = vpop.trf.xlu0  ;;  %v3480_v48 = vmul.f32 2.0, %v7358_v18 }
 0x30a   : > { %4485 = vxpose.xlu0.b32.cont [13/16] %v4316_v32, 128  ;;  %4900 = vst.msk [vmem:[%s5555_s28 + $0x50] sm:$0xff] %vm4889_vm1, %v4403_v62  ;;  %v2899_v59 = vld.sshfl [vmem:[#allocation1 + $0x30] sm:$0xff pattern:$0x75316420] }
 0x30b   : > { %4453 = vxpose.xlu2.b32.cont [13/16] %v4315_v49, 128  ;;  %v2900_v22 = vld.sshfl [vmem:[#allocation1 + $0x38] sm:$0xff pattern:$0x75316420]  ;;  %2931 = vst [vmem:[#allocation2 + $0x508] sm:$0x7] %v2899_v59  ;;  %v7367_v8 = vmul.f32 %v3480_v48, %v8186_v13  ;;  %v7370_v56 = vmul.f32 %v3480_v48, %v7358_v18  ;;  %v8272_v48 = vsub.f32 1.0, %v7019_v15 }
 0x30c   : > { %2955 = vst [vmem:[#allocation1 + $0x30] ss:$2 sm:$0xff] %v2936_v17  ;;  %v7374_v32 = vld.sshfl [vmem:[#allocation1 + $0x28] sm:$0xff pattern:$0x75316420]  ;;  %v4348_v17 = vld [vmem:[#allocation2 + $0x430] sm:$0xff] }
 0x30d   : > { %2932 = vst [vmem:[#allocation2 + $0x288] sm:$0x7] %v2900_v22  ;;  %v7381_v9 = vmul.f32 2.0, %v7367_v8  ;;  %v8183_v62 = vsub.f32 1.0, %v7370_v56  ;;  %v4347_v22 = vld [vmem:[#allocation2 + $0x5d0] sm:$0xff] }
 0x30e   : > { %3185 = vst [vmem:[#allocation1 + $0x20] ss:$2 sm:$0xff] %v3167_v37  ;;  %v3171_v37 = vmul.f32 %v8264_v39, %v8272_v48  ;;  %v3292_v48 = vmul.f32 %v6109_v19, %v7088_v36  ;;  %v3296_v36 = vmul.f32 %v6109_v19, %v7134_v3 }
 0x30f   : > { %v7389_v59 = vmul.f32 %v7381_v9, %v8183_v62 }
 0x311   : > { %v4404_v49 = vpop.trf.xlu0 }
 0x312   : > { %4486 = vxpose.xlu0.b32.cont [14/16] %v4332_v44, 128  ;;  %4901 = vst.msk [vmem:[%s5555_s28 + $0x58] sm:$0xff] %vm4889_vm1, %v4404_v49 }
 0x313   : > { %4454 = vxpose.xlu2.b32.cont [14/16] %v4331_v23, 128  ;;  %v2962_v30 = vld.sshfl [vmem:[#allocation1 + $0x30] sm:$0xff pattern:$0x75316420]  ;;  %v7384_v44 = vld.sshfl [vmem:[#allocation1 + $0x38] sm:$0xff pattern:$0x75316420] }
 0x314   : > { %2967 = vst [vmem:[#allocation1 + $0x30] ss:$2 sm:$0xff] %v2940_v1  ;;  %v2982_v40 = vrot.slane %v2962_v30, 5  ;;  %v7394_v23 = vmul.f32 2.0, %v7389_v59  ;;  %v3061_v1 = vmul.f32 %v8264_v39, %v7391_v28 }
 0x315   : > { %v3192_v55 = vld.sshfl [vmem:[#allocation1 + $0x20] sm:$0xff pattern:$0x75316420]  ;;  %v7407_v30 = vld.sshfl [vmem:[#allocation1 + $0x28] sm:$0xff pattern:$0x75316420] }
 0x316   : > { %3014 = vst [vmem:[#allocation2 + $0x420] sm:$0x38] %v2982_v40  ;;  %v7401_v49 = vmul.f32 %v7394_v23, %v7389_v59  ;;  %v3212_v15 = vrot.slane %v3192_v55, 7 }
 0x317   : > { %3198 = vst [vmem:[#allocation1 + $0x20] ss:$2 sm:$0xff] %v3171_v37 }
 0x318   : > { %3244 = vst [vmem:[#allocation2 + $0x380] sm:$0xe] %v3212_v15 }
 0x319   : > { %v4405_v26 = vpop.trf.xlu0 }
 0x31a   : > { %4487 = vxpose.xlu0.b32.cont [15/16] %v4348_v17, 128  ;;  %4902 = vst.msk [vmem:[%s5555_s28 + $0x60] sm:$0xff] %vm4889_vm1, %v4405_v26  ;;  %v4364_v17 = vld [vmem:[#allocation2 + $0x490] sm:$0xff]  ;;  %v3065_v26 = vmul.f32 %v8264_v39, %v7342_v16 }
 0x31b   : > { %4455 = vxpose.xlu2.b32.cont [15/16] %v4347_v22, 128  ;;  %v7409_v62 = vld.sshfl [vmem:[#allocation1 + $0x30] sm:$0xff pattern:$0x75316420]  ;;  %v7411_v40 = vld.sshfl [vmem:[#allocation1 + $0x38] sm:$0xff pattern:$0x75316420] }
 0x31c   : > { %3080 = vst [vmem:[#allocation1 + $0x30] ss:$2 sm:$0xff] %v3061_v1  ;;  %v4363_v22 = vld [vmem:[#allocation2 + $0x408] sm:$0xff] }
 0x31e   : > { %v7418_v11 = vld.sshfl [vmem:[#allocation1 + $0x20] sm:$0xff pattern:$0x75316420]  ;;  %v7420_v37 = vld.sshfl [vmem:[#allocation1 + $0x28] sm:$0xff pattern:$0x75316420] }
 0x31f   : > { %3311 = vst [vmem:[#allocation1 + $0x21] ss:$2 sm:$0xff] %v3292_v48 }
 0x322   : > { %4488 = vxpose.xlu0.b32.end [16/16] %v4364_v17, 128  ;;  %v3051_v17 = vsub.f32 1.0, %v3043_v47  ;;  %v3368_v47 = vmul.f32 %v6109_v19, %v3282_v0 }
 0x323   : > { %4456 = vxpose.xlu2.b32.end [16/16] %v4363_v22, 128  ;;  %v3087_v55 = vld.sshfl [vmem:[#allocation1 + $0x30] sm:$0xff pattern:$0x75316420]  ;;  %v7422_v13 = vld.sshfl [vmem:[#allocation1 + $0x38] sm:$0xff pattern:$0x75316420] }
 0x324   : > { %v3107_v1 = vrot.slane %v3087_v55, 2  ;;  %3092 = vst [vmem:[#allocation1 + $0x30] ss:$2 sm:$0xff] %v3065_v26  ;;  %v3168_v16 = vmul.f32 %v8264_v39, %v3051_v17  ;;  %v3172_v55 = vmul.f32 %v8264_v39, %v3055_v7 }
 0x326   : > { %3139 = vst [vmem:[#allocation2 + $0x420] sm:$0xc0] %v3107_v1  ;;  %v3318_v15 = vld.sshfl [vmem:[#allocation1 + $0x20] sm:$0xff pattern:$0x75316420] }
 0x327   : > { %3155 = vst [vmem:[#allocation2 + $0x770] sm:$0x1] %v3107_v1  ;;  %v3319_v14 = vld.sshfl [vmem:[#allocation1 + $0x28] sm:$0xff pattern:$0x75316420]  ;;  %v3259_v1 = vmul.f32 2.0, %v7391_v28 }
 0x328   : > { %3324 = vst [vmem:[#allocation1 + $0x21] ss:$2 sm:$0xff] %v3296_v36 }
 0x329   : > { %3354 = vst [vmem:[#allocation2 + $0x380] sm:$0x70] %v3318_v15  ;;  %v7443_v0 = vmul.f32 %v3259_v1, %v3051_v17 }
 0x32a   : > { %3355 = vst [vmem:[#allocation2 + $0x690] sm:$0x70] %v3319_v14 }
 0x32b   : > { %v7427_v58 = vld.sshfl [vmem:[#allocation1 + $0x30] sm:$0xff pattern:$0x75316420]  ;;  %v7429_v22 = vld.sshfl [vmem:[#allocation1 + $0x38] sm:$0xff pattern:$0x75316420]  ;;  %v3293_v7 = vmul.f32 %v6109_v19, %v7443_v0 }
 0x32c   : > { %3187 = vst [vmem:[#allocation1 + $0x30] ss:$2 sm:$0xff] %v3168_v16 }
 0x32d   : > { %v4127_v48 = vld [vmem:[#allocation2 + $0x420] sm:$0xff] }
 0x32e   : > { %4569 = vxpose.xlu0.b32.start [1/16] %v4127_v48, 128 }
 0x32f   : > { %v3330_v3 = vld.sshfl [vmem:[#allocation1 + $0x20] sm:$0xff pattern:$0x75316420]  ;;  %v3331_v26 = vld.sshfl [vmem:[#allocation1 + $0x28] sm:$0xff pattern:$0x75316420] }
 0x330   : > { %3386 = vst [vmem:[#allocation1 + $0x20] ss:$2 sm:$0xff] %v3368_v47 }
 0x331   : > { %3362 = vst [vmem:[#allocation2 + $0x260] sm:$0x70] %v3330_v3  ;;  %v4406_v3 = vpop.trf.xlu0 }
 0x332   : > { %3363 = vst [vmem:[#allocation2 + $0x410] sm:$0x70] %v3331_v26  ;;  %v2981_v26 = vrot.slane %v7048_v52, 5 }
 0x333   : > { %v3194_v36 = vld.sshfl [vmem:[#allocation1 + $0x30] sm:$0xff pattern:$0x75316420]  ;;  %v7438_v15 = vld.sshfl [vmem:[#allocation1 + $0x38] sm:$0xff pattern:$0x75316420] }
 0x334   : > { %v3214_v16 = vrot.slane %v3194_v36, 7  ;;  %3199 = vst [vmem:[#allocation1 + $0x30] ss:$2 sm:$0xff] %v3172_v55  ;;  %v3106_v55 = vrot.slane %v7146_v2, 2  ;;  %v3275_v36 = vmul.f32 %v3259_v1, %v7391_v28 }
 0x335   : > { %4903 = vst.msk [vmem:[%s5555_s28 + $0x68] sm:$0xff] %vm4889_vm1, %v4406_v3 }
 0x336   : > { %3246 = vst [vmem:[#allocation2 + $0x770] sm:$0xe] %v3214_v16  ;;  %v3297_v16 = vmul.f32 %v6109_v19, %v7358_v18 }
 0x337   : > { %v3393_v35 = vld.sshfl [vmem:[#allocation1 + $0x20] sm:$0xff pattern:$0x75316420]  ;;  %v7445_v14 = vld.sshfl [vmem:[#allocation1 + $0x28] sm:$0xff pattern:$0x75316420] }
 0x338   : > { %3399 = vst [vmem:[#allocation1 + $0x20] ss:$2 sm:$0xff] %v3372_v27  ;;  %v3413_v39 = vrot.slane %v3393_v35, 1 }
 0x339   : > { %3013 = vst [vmem:[#allocation2 + $0x748] sm:$0x38] %v2981_v26 }
 0x33a   : > { %3445 = vst [vmem:[#allocation2 + $0x380] sm:$0x80] %v3413_v39 }
 0x33b   : > { %3461 = vst [vmem:[#allocation2 + $0x2c8] sm:$0x3] %v3413_v39  ;;  %v7449_v48 = vld.sshfl [vmem:[#allocation1 + $0x30] sm:$0xff pattern:$0x75316420]  ;;  %v3513_v39 = vmul.f32 %v6204_v20, %v7240_v50  ;;  %v3600_v50 = vmul.f32 %v6204_v20, %v3499_v12 }
 0x33c   : > { %v7453_v63 = vld.sshfl [vmem:[#allocation1 + $0x38] sm:$0xff pattern:$0x75316420]  ;;  %3138 = vst [vmem:[#allocation2 + $0x748] sm:$0xc0] %v3106_v55 }
 0x33d   : > { %3313 = vst [vmem:[#allocation1 + $0x31] ss:$2 sm:$0xff] %v3293_v7  ;;  %v3283_v7 = vsub.f32 1.0, %v3275_v36  ;;  %v8273_v36 = vsub.f32 1.0, %v7354_v6 }
 0x33e   : > { %3154 = vst [vmem:[#allocation2 + $0x690] sm:$0x1] %v3106_v55 }
 0x33f   : > { %v7455_v17 = vld.sshfl [vmem:[#allocation1 + $0x20] sm:$0xff pattern:$0x75316420]  ;;  %v7457_v47 = vld.sshfl [vmem:[#allocation1 + $0x28] sm:$0xff pattern:$0x75316420]  ;;  %v3369_v28 = vmul.f32 %v6109_v19, %v3283_v7 }
 0x340   : > { %3527 = vst [vmem:[#allocation1 + $0x20] ss:$2 sm:$0xff] %v3509_v46 }
 0x341   : > { %v4141_v27 = vld [vmem:[#allocation2 + $0x380] sm:$0xff] }
 0x342   : > { %4506 = vxpose.xlu1.b32.cont [2/16] %v4141_v27, 128  ;;  %v3476_v27 = vmul.f32 2.0, %v7443_v0 }
 0x343   : > { %v4126_v1 = vld [vmem:[#allocation2 + $0x748] sm:$0xff] }
 0x344   : > { %v3320_v25 = vld.sshfl [vmem:[#allocation1 + $0x30] sm:$0xff pattern:$0x75316420]  ;;  %v3321_v35 = vld.sshfl [vmem:[#allocation1 + $0x38] sm:$0xff pattern:$0x75316420]  ;;  %4537 = vxpose.xlu2.b32.start [1/16] %v4126_v1, 128  ;;  %v7484_v51 = vmul.f32 %v3476_v27, %v3283_v7 }
 0x345   : > { %3325 = vst [vmem:[#allocation1 + $0x31] ss:$2 sm:$0xff] %v3297_v16  ;;  %v3373_v16 = vmul.f32 %v6109_v19, %v8273_v36  ;;  %v3492_v36 = vmul.f32 %v3476_v27, %v7443_v0  ;;  %v3729_v0 = vmul.f32 %v6265_v45, %v7295_v29 }
 0x346   : > { %3356 = vst [vmem:[#allocation2 + $0x770] sm:$0x70] %v3320_v25  ;;  %v3510_v19 = vmul.f32 %v6204_v20, %v7484_v51 }
 0x347   : > { %3357 = vst [vmem:[#allocation2 + $0x700] sm:$0x70] %v3321_v35  ;;  %v3534_v52 = vld.sshfl [vmem:[#allocation1 + $0x20] sm:$0xff pattern:$0x75316420] }
 0x348   : > { %v7468_v2 = vld.sshfl [vmem:[#allocation1 + $0x28] sm:$0xff pattern:$0x75316420]  ;;  %v3554_v18 = vrot.slane %v3534_v52, 6 }
 0x349   : > { %3540 = vst [vmem:[#allocation1 + $0x20] ss:$2 sm:$0xff] %v3513_v39  ;;  %v8274_v39 = vsub.f32 1.0, %v7288_v43  ;;  %v3725_v43 = vmul.f32 %v6265_v45, %v7280_v24 }
 0x34a   : > { %3586 = vst [vmem:[#allocation2 + $0x2c8] sm:$0x1c] %v3554_v18 }
 0x34b   : > { %v3604_v52 = vmul.f32 %v6204_v20, %v8274_v39 }
 0x34c   : > { %v3332_v46 = vld.sshfl [vmem:[#allocation1 + $0x30] sm:$0xff pattern:$0x75316420]  ;;  %v3333_v3 = vld.sshfl [vmem:[#allocation1 + $0x38] sm:$0xff pattern:$0x75316420] }
 0x34d   : > { %3388 = vst [vmem:[#allocation1 + $0x30] ss:$2 sm:$0xff] %v3369_v28 }
 0x34e   : > { %3364 = vst [vmem:[#allocation2 + $0x6a0] sm:$0x70] %v3332_v46 }
 0x34f   : > { %3365 = vst [vmem:[#allocation2 + $0x148] sm:$0x70] %v3333_v3  ;;  %v3213_v3 = vrot.slane %v7407_v30, 7 }
 0x350   : > { %v7474_v26 = vld.sshfl [vmem:[#allocation1 + $0x20] sm:$0xff pattern:$0x75316420]  ;;  %v7476_v55 = vld.sshfl [vmem:[#allocation1 + $0x28] sm:$0xff pattern:$0x75316420] }
 0x351   : > { %3618 = vst [vmem:[#allocation1 + $0x20] ss:$2 sm:$0xff] %v3600_v50  ;;  %v4407_v50 = vpop.trf.xlu0 }
 0x352   : > { %4904 = vst.msk [vmem:[%s5555_s28 + $0x70] sm:$0xff] %vm4889_vm1, %v4407_v50 }
 0x353   : > { %3245 = vst [vmem:[#allocation2 + $0x690] sm:$0xe] %v3213_v3 }
 0x354   : > { %v3395_v25 = vld.sshfl [vmem:[#allocation1 + $0x30] sm:$0xff pattern:$0x75316420]  ;;  %v7482_v35 = vld.sshfl [vmem:[#allocation1 + $0x38] sm:$0xff pattern:$0x75316420] }
 0x355   : > { %3400 = vst [vmem:[#allocation1 + $0x30] ss:$2 sm:$0xff] %v3373_v16  ;;  %v3415_v12 = vrot.slane %v3395_v25, 1  ;;  %v3514_v16 = vmul.f32 %v6204_v20, %v7367_v8 }
 0x357   : > { %3447 = vst [vmem:[#allocation2 + $0x770] sm:$0x80] %v3415_v12 }
 0x358   : > { %3463 = vst [vmem:[#allocation2 + $0x248] sm:$0x3] %v3415_v12  ;;  %v3625_v6 = vld.sshfl [vmem:[#allocation1 + $0x20] sm:$0xff pattern:$0x75316420] }
 0x359   : > { %v7491_v18 = vld.sshfl [vmem:[#allocation1 + $0x28] sm:$0xff pattern:$0x75316420]  ;;  %v3645_v28 = vrot.slane %v3625_v6, 3 }
 0x35a   : > { %3631 = vst [vmem:[#allocation1 + $0x20] ss:$2 sm:$0xff] %v3604_v52  ;;  %v3414_v52 = vrot.slane %v7445_v14, 1 }
 0x35b   : > { %3677 = vst [vmem:[#allocation2 + $0x2c8] sm:$0xe0] %v3645_v28 }
 0x35c   : > { %v7493_v7 = vld.sshfl [vmem:[#allocation1 + $0x30] sm:$0xff pattern:$0x75316420]  ;;  %v7495_v1 = vld.sshfl [vmem:[#allocation1 + $0x38] sm:$0xff pattern:$0x75316420] }
 0x35d   : > { %3529 = vst [vmem:[#allocation1 + $0x30] ss:$2 sm:$0xff] %v3510_v19  ;;  %v3500_v19 = vsub.f32 1.0, %v3492_v36  ;;  %v8276_v36 = vsub.f32 1.0, %v7301_v31 }
 0x35e   : > { %v4143_v46 = vld [vmem:[#allocation2 + $0x770] sm:$0xff]  ;;  %3446 = vst [vmem:[#allocation2 + $0x690] sm:$0x80] %v3414_v52 }
 0x35f   : > { %4570 = vxpose.xlu0.b32.cont [2/16] %v4143_v46, 128  ;;  %3462 = vst [vmem:[#allocation2 + $0x2a0] sm:$0x3] %v3414_v52  ;;  %v3601_v27 = vmul.f32 %v6204_v20, %v3500_v19  ;;  %v8277_v52 = vsub.f32 1.0, %v7370_v56 }
 0x361   : > { %v7505_v25 = vld.sshfl [vmem:[#allocation1 + $0x20] sm:$0xff pattern:$0x75316420]  ;;  %v7507_v12 = vld.sshfl [vmem:[#allocation1 + $0x28] sm:$0xff pattern:$0x75316420] }
 0x362   : > { %v4157_v39 = vld [vmem:[#allocation2 + $0x2c8] sm:$0xff]  ;;  %3743 = vst [vmem:[#allocation1 + $0x20] ss:$2 sm:$0xff] %v3725_v43 }
 0x363   : > { %4507 = vxpose.xlu1.b32.cont [3/16] %v4157_v39, 128  ;;  %v3692_v39 = vmul.f32 2.0, %v7484_v51 }
 0x364   : > { %v3536_v6 = vld.sshfl [vmem:[#allocation1 + $0x30] sm:$0xff pattern:$0x75316420]  ;;  %v7510_v30 = vld.sshfl [vmem:[#allocation1 + $0x38] sm:$0xff pattern:$0x75316420] }
 0x365   : > { %3541 = vst [vmem:[#allocation1 + $0x30] ss:$2 sm:$0xff] %v3514_v16  ;;  %v3556_v28 = vrot.slane %v3536_v6, 6  ;;  %v4142_v50 = vld [vmem:[#allocation2 + $0x690] sm:$0xff]  ;;  %v3800_v16 = vmul.f32 %v6265_v45, %v8276_v36  ;;  %v3605_v6 = vmul.f32 %v6204_v20, %v8277_v52 }
 0x366   : > { %4538 = vxpose.xlu2.b32.cont [2/16] %v4142_v50, 128  ;;  %v8278_v50 = vsub.f32 1.0, %v7309_v42  ;;  %v3925_v42 = vmul.f32 %v8262_v10, %v7331_v5  ;;  %v3929_v5 = vmul.f32 %v8262_v10, %v7337_v21 }
 0x367   : > { %3588 = vst [vmem:[#allocation2 + $0x248] sm:$0x1c] %v3556_v28 }
 0x369   : > { %v3750_v46 = vld.sshfl [vmem:[#allocation1 + $0x20] sm:$0xff pattern:$0x75316420]  ;;  %v3751_v43 = vld.sshfl [vmem:[#allocation1 + $0x28] sm:$0xff pattern:$0x75316420] }
 0x36a   : > { %3756 = vst [vmem:[#allocation1 + $0x20] ss:$2 sm:$0xff] %v3729_v0 }
 0x36b   : > { %3786 = vst [vmem:[#allocation2 + $0x5d8] sm:$0x7] %v3750_v46 }
 0x36c   : > { %v7515_v14 = vld.sshfl [vmem:[#allocation1 + $0x30] sm:$0xff pattern:$0x75316420]  ;;  %v7517_v3 = vld.sshfl [vmem:[#allocation1 + $0x38] sm:$0xff pattern:$0x75316420] }
 0x36d   : > { %8275 = vst [vmem:[#allocation22_spill] sm:$0xff] %v7515_v14 }
 0x36e   : > { %3620 = vst [vmem:[#allocation1 + $0x30] ss:$2 sm:$0xff] %v3601_v27  ;;  %v7528_v27 = vmul.f32 %v3692_v39, %v3500_v19 }
 0x36f   : > { %3787 = vst [vmem:[#allocation2 + $0x118] sm:$0x7] %v3751_v43  ;;  %v3804_v43 = vmul.f32 %v6265_v45, %v8278_v50 }
 0x370   : > { %v3726_v20 = vmul.f32 %v6265_v45, %v7528_v27 }
 0x371   : > { %v3762_v28 = vld.sshfl [vmem:[#allocation1 + $0x20] sm:$0xff pattern:$0x75316420]  ;;  %v3763_v0 = vld.sshfl [vmem:[#allocation1 + $0x28] sm:$0xff pattern:$0x75316420] }
 0x372   : > { %3818 = vst [vmem:[#allocation1 + $0x20] ss:$2 sm:$0xff] %v3800_v16 }
 0x373   : > { %3794 = vst [vmem:[#allocation2 + $0x3b0] sm:$0x7] %v3762_v28  ;;  %v3730_v28 = vmul.f32 %v6265_v45, %v7389_v59 }
 0x374   : > { %3795 = vst [vmem:[#allocation2 + $0x7e0] sm:$0x7] %v3763_v0 }
 0x375   : > { %v3627_v46 = vld.sshfl [vmem:[#allocation1 + $0x30] sm:$0xff pattern:$0x75316420]  ;;  %v7526_v14 = vld.sshfl [vmem:[#allocation1 + $0x38] sm:$0xff pattern:$0x75316420] }
 0x376   : > { %3632 = vst [vmem:[#allocation1 + $0x30] ss:$2 sm:$0xff] %v3605_v6  ;;  %v3647_v31 = vrot.slane %v3627_v46, 3 }
 0x378   : > { %3679 = vst [vmem:[#allocation2 + $0x248] sm:$0xe0] %v3647_v31  ;;  %v3708_v31 = vmul.f32 %v3692_v39, %v7484_v51 }
 0x379   : > { %v3825_v56 = vld.sshfl [vmem:[#allocation1 + $0x20] sm:$0xff pattern:$0x75316420]  ;;  %v7535_v36 = vld.sshfl [vmem:[#allocation1 + $0x28] sm:$0xff pattern:$0x75316420] }
 0x37a   : > { %3831 = vst [vmem:[#allocation1 + $0x20] ss:$2 sm:$0xff] %v3804_v43  ;;  %v3845_v16 = vrot.slane %v3825_v56, 5  ;;  %v3716_v56 = vsub.f32 1.0, %v3708_v31  ;;  %v3646_v31 = vrot.slane %v7491_v18, 3 }
 0x37c   : > { %3877 = vst [vmem:[#allocation2 + $0x5d8] sm:$0x38] %v3845_v16  ;;  %v3801_v51 = vmul.f32 %v6265_v45, %v3716_v56 }
 0x37d   : > { %v7537_v52 = vld.sshfl [vmem:[#allocation1 + $0x30] sm:$0xff pattern:$0x75316420]  ;;  %v7539_v19 = vld.sshfl [vmem:[#allocation1 + $0x38] sm:$0xff pattern:$0x75316420] }
 0x37e   : > { %8279 = vst [vmem:[#allocation37_spill] sm:$0xff] %v7537_v52  ;;  %v3712_v52 = vmul.f32 %v7381_v9, %v7367_v8 }
 0x37f   : > { %3745 = vst [vmem:[#allocation1 + $0x30] ss:$2 sm:$0xff] %v3726_v20  ;;  %v4159_v6 = vld [vmem:[#allocation2 + $0x248] sm:$0xff]  ;;  %v3907_v20 = vmul.f32 %v7316_v33, %v7280_v24 }
 0x380   : > { %4571 = vxpose.xlu0.b32.cont [3/16] %v4159_v6, 128  ;;  %v3720_v21 = vsub.f32 1.0, %v3712_v52  ;;  %3678 = vst [vmem:[#allocation2 + $0x2a0] sm:$0xe0] %v3646_v31  ;;  %v4408_v52 = vpop.trf.xlu0 }
 0x381   : > { %v7545_v0 = vld.sshfl [vmem:[#allocation1 + $0x20] sm:$0xff pattern:$0x75316420]  ;;  %v7547_v46 = vld.sshfl [vmem:[#allocation1 + $0x28] sm:$0xff pattern:$0x75316420] }
 0x382   : > { %3943 = vst [vmem:[#allocation1 + $0x20] ss:$2 sm:$0xff] %v3925_v42  ;;  %v3915_v6 = vsub.f32 1.0, %v3907_v20  ;;  %v3904_v31 = vmul.f32 %v7394_v23, %v3720_v21 }
 0x383   : > { %4905 = vst.msk [vmem:[%s5555_s28 + $0x78] sm:$0xff] %vm4889_vm1, %v4408_v52 }
 0x384   : > { %v4032_v33 = vmul.f32 %v8262_v10, %v3915_v6  ;;  %v3930_v52 = vmul.f32 %v8262_v10, %v3904_v31 }
 0x386   : > { %v3752_v50 = vld.sshfl [vmem:[#allocation1 + $0x30] sm:$0xff pattern:$0x75316420]  ;;  %v3753_v43 = vld.sshfl [vmem:[#allocation1 + $0x38] sm:$0xff pattern:$0x75316420] }
 0x387   : > { %3757 = vst [vmem:[#allocation1 + $0x30] ss:$2 sm:$0xff] %v3730_v28  ;;  %v3555_v28 = vrot.slane %v7468_v2, 6 }
 0x388   : > { %3788 = vst [vmem:[#allocation2 + $0x1d0] sm:$0x7] %v3752_v50  ;;  %v3805_v50 = vmul.f32 %v6265_v45, %v3720_v21  ;;  %v3846_v45 = vrot.slane %v7535_v36, 5 }
 0x389   : > { %3789 = vst [vmem:[#allocation2 + $0x390] sm:$0x7] %v3753_v43  ;;  %v3950_v59 = vld.sshfl [vmem:[#allocation1 + $0x20] sm:$0xff pattern:$0x75316420]  ;;  %v3892_v43 = vmul.f32 2.0, %v7528_v27 }
 0x38a   : > { %v3951_v16 = vld.sshfl [vmem:[#allocation1 + $0x28] sm:$0xff pattern:$0x75316420]  ;;  %v3970_v39 = vrot.slane %v3950_v59, 2  ;;  %3587 = vst [vmem:[#allocation2 + $0x2a0] sm:$0x1c] %v3555_v28 }
 0x38b   : > { %3956 = vst [vmem:[#allocation1 + $0x20] ss:$2 sm:$0xff] %v3929_v5  ;;  %v3900_v2 = vmul.f32 %v3892_v43, %v3716_v56 }
 0x38c   : > { %4002 = vst [vmem:[#allocation2 + $0x5d8] sm:$0xc0] %v3970_v39 }
 0x38d   : > { %4018 = vst [vmem:[#allocation2 + $0x650] sm:$0x1] %v3970_v39 }
 0x38e   : > { %v3764_v42 = vld.sshfl [vmem:[#allocation1 + $0x30] sm:$0xff pattern:$0x75316420]  ;;  %v3765_v24 = vld.sshfl [vmem:[#allocation1 + $0x38] sm:$0xff pattern:$0x75316420] }
 0x38f   : > { %3820 = vst [vmem:[#allocation1 + $0x30] ss:$2 sm:$0xff] %v3801_v51  ;;  %v3926_v51 = vmul.f32 %v8262_v10, %v3900_v2 }
 0x390   : > { %3796 = vst [vmem:[#allocation2 + $0x780] sm:$0x7] %v3764_v42  ;;  %v3911_v42 = vmul.f32 %v7319_v53, %v7295_v29  ;;  %v4489_v29 = vpop.trf.xlu0 }
 0x391   : > { %3797 = vst [vmem:[#allocation2 + $0x350] sm:$0x7] %v3765_v24  ;;  %v4158_v24 = vld [vmem:[#allocation2 + $0x2a0] sm:$0xff] }
 0x392   : > { %v7560_v8 = vld.sshfl [vmem:[#allocation1 + $0x20] sm:$0xff pattern:$0x75316420]  ;;  %v7562_v9 = vld.sshfl [vmem:[#allocation1 + $0x28] sm:$0xff pattern:$0x75316420]  ;;  %4539 = vxpose.xlu2.b32.cont [3/16] %v4158_v24, 128 }
 0x393   : > { %4050 = vst [vmem:[#allocation1 + $0x20] ss:$2 sm:$0xff] %v4032_v33  ;;  %v4173_v20 = vld [vmem:[#allocation2 + $0x5d8] sm:$0xff]  ;;  %v3971_v33 = vrot.slane %v3951_v16, 2  ;;  %v3919_v36 = vsub.f32 1.0, %v3911_v42  ;;  %v3908_v16 = vmul.f32 %v3892_v43, %v7528_v27 }
 0x394   : > { %4508 = vxpose.xlu1.b32.cont [4/16] %v4173_v20, 128  ;;  %3878 = vst [vmem:[#allocation2 + $0x118] sm:$0x38] %v3846_v45  ;;  %v4425_v20 = vpop.trf.xlu1 }
 0x395   : > { %4003 = vst [vmem:[#allocation2 + $0x118] sm:$0xc0] %v3971_v33  ;;  %v4036_v23 = vmul.f32 %v8262_v10, %v3919_v36 }
 0x396   : > { %v3827_v5 = vld.sshfl [vmem:[#allocation1 + $0x30] sm:$0xff pattern:$0x75316420]  ;;  %v7566_v59 = vld.sshfl [vmem:[#allocation1 + $0x38] sm:$0xff pattern:$0x75316420] }
 0x397   : > { %3832 = vst [vmem:[#allocation1 + $0x30] ss:$2 sm:$0xff] %v3805_v50  ;;  %v3847_v18 = vrot.slane %v3827_v5, 5  ;;  %v4457_v50 = vpop.trf.xlu2 }
 0x398   : > { %4019 = vst [vmem:[#allocation2 + $0x168] sm:$0x1] %v3971_v33  ;;  %v4490_v42 = vpop.trf.xlu0 }
 0x399   : > { %3879 = vst [vmem:[#allocation2 + $0x1d0] sm:$0x38] %v3847_v18 }
 0x39a   : > { %v4057_v6 = vld.sshfl [vmem:[#allocation1 + $0x20] sm:$0xff pattern:$0x75316420]  ;;  %4922 = vst.msk [vmem:[%s5555_s28 + $0x100] sm:$0xff] %vm4889_vm1, %v4457_v50 }
 0x39b   : > { %v4077_v39 = vrot.slane %v4057_v6, 7  ;;  %v4058_v53 = vld.sshfl [vmem:[#allocation1 + $0x28] sm:$0xff pattern:$0x75316420]  ;;  %4906 = vst.msk [vmem:[%s5555_s28 + $0x80] sm:$0xff] %vm4889_vm1, %v4425_v20  ;;  %v3916_v6 = vsub.f32 1.0, %v3908_v16 }
 0x39c   : > { %v4078_v5 = vrot.slane %v4058_v53, 7  ;;  %4938 = vst.msk [vmem:[%s5555_s28 + $0x180] sm:$0xff] %vm4889_vm1, %v4489_v29  ;;  %v4174_v43 = vld [vmem:[#allocation2 + $0x118] sm:$0xff] }
 0x39d   : > { %4109 = vst [vmem:[#allocation2 + $0x650] sm:$0xe] %v4077_v39  ;;  %4540 = vxpose.xlu2.b32.cont [4/16] %v4174_v43, 128  ;;  %v4205_v39 = vld [vmem:[#allocation2 + $0x4e0] sm:$0xff]  ;;  %v4033_v24 = vmul.f32 %v8262_v10, %v3916_v6  ;;  %v4221_v53 = vld [vmem:[#allocation2 + $0x18] sm:$0xff]  ;;  %v4237_v6 = vld [vmem:[#allocation2 + $0x548] sm:$0xff] }
 0x39e   : > { %v7574_v56 = vld.sshfl [vmem:[#allocation1 + $0x30] sm:$0xff pattern:$0x75316420]  ;;  %v7576_v28 = vld.sshfl [vmem:[#allocation1 + $0x38] sm:$0xff pattern:$0x75316420] }
 0x39f   : > { %3945 = vst [vmem:[#allocation1 + $0x30] ss:$2 sm:$0xff] %v3926_v51  ;;  %v4458_v45 = vpop.trf.xlu2  ;;  %v4426_v51 = vpop.trf.xlu1  ;;  %v4222_v43 = vld [vmem:[#allocation2 + $0x6c0] sm:$0xff] }
 0x3a0   : > { %4110 = vst [vmem:[#allocation2 + $0x168] sm:$0xe] %v4078_v5  ;;  %v4491_v16 = vpop.trf.xlu0 }
 0x3a1   : > { %4063 = vst [vmem:[#allocation1 + $0x20] ss:$2 sm:$0xff] %v4036_v23 }
 0x3a2   : > { %4923 = vst.msk [vmem:[%s5555_s28 + $0x108] sm:$0xff] %vm4889_vm1, %v4458_v45 }
 0x3a3   : > { %4907 = vst.msk [vmem:[%s5555_s28 + $0x88] sm:$0xff] %vm4889_vm1, %v4426_v51 }
 0x3a4   : > { %v4189_v21 = vld [vmem:[#allocation2 + $0x650] sm:$0xff]  ;;  %4939 = vst.msk [vmem:[%s5555_s28 + $0x188] sm:$0xff] %vm4889_vm1, %v4490_v42  ;;  %v4253_v42 = vld [vmem:[#allocation2 + $0x2b8] sm:$0xff] }
 0x3a5   : > { %4509 = vxpose.xlu1.b32.cont [5/16] %v4189_v21, 128  ;;  %4940 = vst.msk [vmem:[%s5555_s28 + $0x190] sm:$0xff] %vm4889_vm1, %v4491_v16 }
 0x3a6   : > { %v3952_v2 = vld.sshfl [vmem:[#allocation1 + $0x30] sm:$0xff pattern:$0x75316420]  ;;  %v7588_v18 = vld.sshfl [vmem:[#allocation1 + $0x38] sm:$0xff pattern:$0x75316420] }
 0x3a7   : > { %3957 = vst [vmem:[#allocation1 + $0x30] ss:$2 sm:$0xff] %v3930_v52  ;;  %v3972_v27 = vrot.slane %v3952_v2, 2  ;;  %v4190_v33 = vld [vmem:[#allocation2 + $0x168] sm:$0xff]  ;;  %v4459_v20 = vpop.trf.xlu2  ;;  %v4427_v29 = vpop.trf.xlu1 }
 0x3a8   : > { %4541 = vxpose.xlu2.b32.cont [5/16] %v4190_v33, 128  ;;  %4924 = vst.msk [vmem:[%s5555_s28 + $0x110] sm:$0xff] %vm4889_vm1, %v4459_v20  ;;  %v4206_v52 = vld [vmem:[#allocation2 + $0x7a8] sm:$0xff]  ;;  %v4238_v33 = vld [vmem:[#allocation2 + $0x620] sm:$0xff] }
 0x3a9   : > { %4004 = vst [vmem:[#allocation2 + $0x1d0] sm:$0xc0] %v3972_v27 }
 0x3aa   : > { %4020 = vst [vmem:[#allocation2 + $0x530] sm:$0x1] %v3972_v27  ;;  %v4492_v27 = vpop.trf.xlu0 }
 0x3ab   : > { %4908 = vst.msk [vmem:[%s5555_s28 + $0x90] sm:$0xff] %vm4889_vm1, %v4427_v29 }
 0x3ac   : > { %4941 = vst.msk [vmem:[%s5555_s28 + $0x198] sm:$0xff] %vm4889_vm1, %v4492_v27  ;;  %v4270_v27 = vld [vmem:[#allocation2 + $0x10] sm:$0xff] }
 0x3ad   : > { %4510 = vxpose.xlu1.b32.cont [6/16] %v4205_v39, 128 }
 0x3ae   : > { %v7597_v31 = vld.sshfl [vmem:[#allocation1 + $0x30] sm:$0xff pattern:$0x75316420]  ;;  %v7599_v36 = vld.sshfl [vmem:[#allocation1 + $0x38] sm:$0xff pattern:$0x75316420] }
 0x3af   : > { %4052 = vst [vmem:[#allocation1 + $0x30] ss:$2 sm:$0xff] %v4033_v24  ;;  %v4460_v21 = vpop.trf.xlu2  ;;  %v4428_v2 = vpop.trf.xlu1 }
 0x3b0   : > { %v4175_v50 = vld [vmem:[#allocation2 + $0x1d0] sm:$0xff]  ;;  %4542 = vxpose.xlu2.b32.cont [6/16] %v4206_v52, 128  ;;  %4925 = vst.msk [vmem:[%s5555_s28 + $0x118] sm:$0xff] %vm4889_vm1, %v4460_v21  ;;  %v4254_v52 = vld [vmem:[#allocation2 + $0x320] sm:$0xff] }
 0x3b1   : > { %4572 = vxpose.xlu0.b32.cont [4/16] %v4175_v50, 128  ;;  %4909 = vst.msk [vmem:[%s5555_s28 + $0x98] sm:$0xff] %vm4889_vm1, %v4428_v2  ;;  %v4207_v50 = vld [vmem:[#allocation2 + $0x7b8] sm:$0xff]  ;;  %v4285_v2 = vld [vmem:[#allocation2 + $0x290] sm:$0xff] }
 0x3b2   : > { %v4493_v24 = vpop.trf.xlu0 }
 0x3b3   : > { %4942 = vst.msk [vmem:[%s5555_s28 + $0x1a0] sm:$0xff] %vm4889_vm1, %v4493_v24  ;;  %v4286_v24 = vld [vmem:[#allocation2 + $0x740] sm:$0xff] }
 0x3b5   : > { %4511 = vxpose.xlu1.b32.cont [7/16] %v4221_v53, 128  ;;  %v4269_v53 = vld [vmem:[#allocation2 + $0x7d8] sm:$0xff] }
 0x3b6   : > { %v4059_v5 = vld.sshfl [vmem:[#allocation1 + $0x30] sm:$0xff pattern:$0x75316420] }
 0x3b7   : > { %v4079_v23 = vrot.slane %v4059_v5, 7  ;;  %v4461_v51 = vpop.trf.xlu2  ;;  %v4429_v39 = vpop.trf.xlu1  ;;  %v4223_v5 = vld [vmem:[#allocation2 + $0x270] sm:$0xff] }
 0x3b8   : > { %4543 = vxpose.xlu2.b32.cont [7/16] %v4222_v43, 128  ;;  %4926 = vst.msk [vmem:[%s5555_s28 + $0x120] sm:$0xff] %vm4889_vm1, %v4461_v51  ;;  %v4239_v43 = vld [vmem:[#allocation2 + $0x2e0] sm:$0xff] }
 0x3b9   : > { %4111 = vst [vmem:[#allocation2 + $0x530] sm:$0xe] %v4079_v23 }
 0x3ba   : > { %4910 = vst.msk [vmem:[%s5555_s28 + $0xa0] sm:$0xff] %vm4889_vm1, %v4429_v39  ;;  %v4494_v16 = vpop.trf.xlu0  ;;  %v4301_v39 = vld [vmem:[#allocation2 + $0x2d8] sm:$0xff] }
 0x3bb   : > { %4943 = vst.msk [vmem:[%s5555_s28 + $0x1a8] sm:$0xff] %vm4889_vm1, %v4494_v16  ;;  %v4302_v16 = vld [vmem:[#allocation2 + $0xb8] sm:$0xff] }
 0x3bd   : > { %4512 = vxpose.xlu1.b32.cont [8/16] %v4237_v6, 128 }
 0x3bf   : > { %v4462_v20 = vpop.trf.xlu2  ;;  %v4430_v29 = vpop.trf.xlu1 }
 0x3c0   : > { %v4191_v45 = vld [vmem:[#allocation2 + $0x530] sm:$0xff]  ;;  %4544 = vxpose.xlu2.b32.cont [8/16] %v4238_v33, 128  ;;  %4927 = vst.msk [vmem:[%s5555_s28 + $0x128] sm:$0xff] %vm4889_vm1, %v4462_v20 }
 0x3c1   : > { %4573 = vxpose.xlu0.b32.cont [5/16] %v4191_v45, 128  ;;  %4911 = vst.msk [vmem:[%s5555_s28 + $0xa8] sm:$0xff] %vm4889_vm1, %v4430_v29  ;;  %v4255_v33 = vld [vmem:[#allocation2 + $0x2d0] sm:$0xff]  ;;  %v4317_v29 = vld [vmem:[#allocation2 + $0x4c8] sm:$0xff] }
 0x3c2   : > { %v4495_v6 = vpop.trf.xlu0 }
 0x3c3   : > { %4944 = vst.msk [vmem:[%s5555_s28 + $0x1b0] sm:$0xff] %vm4889_vm1, %v4495_v6  ;;  %v4318_v6 = vld [vmem:[#allocation2 + $0x2f8] sm:$0xff] }
 0x3c5   : > { %4513 = vxpose.xlu1.b32.cont [9/16] %v4253_v42, 128 }
 0x3c7   : > { %v4463_v23 = vpop.trf.xlu2  ;;  %v4431_v21 = vpop.trf.xlu1 }
 0x3c8   : > { %4545 = vxpose.xlu2.b32.cont [9/16] %v4254_v52, 128  ;;  %4928 = vst.msk [vmem:[%s5555_s28 + $0x130] sm:$0xff] %vm4889_vm1, %v4463_v23  ;;  %v4271_v52 = vld [vmem:[#allocation2 + $0x418] sm:$0xff] }
 0x3c9   : > { %4574 = vxpose.xlu0.b32.cont [6/16] %v4207_v50, 128  ;;  %4912 = vst.msk [vmem:[%s5555_s28 + $0xb0] sm:$0xff] %vm4889_vm1, %v4431_v21  ;;  %v4333_v21 = vld [vmem:[#allocation2 + $0x6d0] sm:$0xff] }
 0x3ca   : > { %v4496_v42 = vpop.trf.xlu0 }
 0x3cb   : > { %4945 = vst.msk [vmem:[%s5555_s28 + $0x1b8] sm:$0xff] %vm4889_vm1, %v4496_v42  ;;  %v4334_v42 = vld [vmem:[#allocation2 + $0x6f8] sm:$0xff] }
 0x3cd   : > { %4514 = vxpose.xlu1.b32.cont [10/16] %v4269_v53, 128 }
 0x3cf   : > { %v4464_v45 = vpop.trf.xlu2  ;;  %v4432_v51 = vpop.trf.xlu1 }
 0x3d0   : > { %4546 = vxpose.xlu2.b32.cont [10/16] %v4270_v27, 128  ;;  %4929 = vst.msk [vmem:[%s5555_s28 + $0x138] sm:$0xff] %vm4889_vm1, %v4464_v45  ;;  %v4287_v27 = vld [vmem:[#allocation2 + $0x788] sm:$0xff] }
 0x3d1   : > { %4575 = vxpose.xlu0.b32.cont [7/16] %v4223_v5, 128  ;;  %4913 = vst.msk [vmem:[%s5555_s28 + $0xb8] sm:$0xff] %vm4889_vm1, %v4432_v51  ;;  %v4349_v51 = vld [vmem:[#allocation2 + $0x760] sm:$0xff] }
 0x3d2   : > { %v4497_v53 = vpop.trf.xlu0 }
 0x3d3   : > { %4946 = vst.msk [vmem:[%s5555_s28 + $0x1c0] sm:$0xff] %vm4889_vm1, %v4497_v53  ;;  %v4365_v53 = vld [vmem:[#allocation2 + $0x1a0] sm:$0xff] }
 0x3d5   : > { %4515 = vxpose.xlu1.b32.cont [11/16] %v4285_v2, 128 }
 0x3d7   : > { %v4465_v50 = vpop.trf.xlu2  ;;  %v4433_v20 = vpop.trf.xlu1 }
 0x3d8   : > { %4547 = vxpose.xlu2.b32.cont [11/16] %v4286_v24, 128  ;;  %4930 = vst.msk [vmem:[%s5555_s28 + $0x140] sm:$0xff] %vm4889_vm1, %v4465_v50  ;;  %v4303_v24 = vld [vmem:[#allocation2 + $0x340] sm:$0xff] }
 0x3d9   : > { %4576 = vxpose.xlu0.b32.cont [8/16] %v4239_v43, 128  ;;  %4914 = vst.msk [vmem:[%s5555_s28 + $0xc0] sm:$0xff] %vm4889_vm1, %v4433_v20 }
 0x3da   : > { %v4498_v2 = vpop.trf.xlu0 }
 0x3db   : > { %4947 = vst.msk [vmem:[%s5555_s28 + $0x1c8] sm:$0xff] %vm4889_vm1, %v4498_v2  ;;  %v4319_v2 = vld [vmem:[#allocation2 + $0x688] sm:$0xff] }
 0x3dd   : > { %4516 = vxpose.xlu1.b32.cont [12/16] %v4301_v39, 128 }
 0x3df   : > { %v4466_v5 = vpop.trf.xlu2  ;;  %v4434_v23 = vpop.trf.xlu1 }
 0x3e0   : > { %4548 = vxpose.xlu2.b32.cont [12/16] %v4302_v16, 128  ;;  %4931 = vst.msk [vmem:[%s5555_s28 + $0x148] sm:$0xff] %vm4889_vm1, %v4466_v5 }
 0x3e1   : > { %4577 = vxpose.xlu0.b32.cont [9/16] %v4255_v33, 128  ;;  %4915 = vst.msk [vmem:[%s5555_s28 + $0xc8] sm:$0xff] %vm4889_vm1, %v4434_v23  ;;  %v2983_v33 = vrot.slane %v7384_v44, 5  ;;  %v8281_v23 = vld [vmem:[#allocation14_spill] sm:$0xff] }
 0x3e2   : > { %v4499_v39 = vpop.trf.xlu0  ;;  %v3110_v44 = vrot.slane %v8281_v23, 2 }
 0x3e3   : > { %4948 = vst.msk [vmem:[%s5555_s28 + $0x1d0] sm:$0xff] %vm4889_vm1, %v4499_v39  ;;  %v8282_v39 = vld [vmem:[#allocation16_spill] sm:$0xff] }
 0x3e4   : > { %3015 = vst [vmem:[#allocation2 + $0x180] sm:$0x38] %v2983_v33  ;;  %v8283_v33 = vld [vmem:[#allocation18_spill] sm:$0xff] }
 0x3e5   : > { %4517 = vxpose.xlu1.b32.cont [13/16] %v4317_v29, 128  ;;  %v3108_v29 = vrot.slane %v7422_v13, 2  ;;  %3142 = vst [vmem:[#allocation2 + $0x208] sm:$0xc0] %v3110_v44 }
 0x3e6   : > { %3158 = vst [vmem:[#allocation2 + $0x4f0] sm:$0x1] %v3110_v44  ;;  %v3557_v44 = vrot.slane %v7510_v30, 6  ;;  %v8289_v30 = vld [vmem:[#allocation17_spill] sm:$0xff] }
 0x3e7   : > { %v4467_v43 = vpop.trf.xlu2  ;;  %v4435_v45 = vpop.trf.xlu1  ;;  %3140 = vst [vmem:[#allocation2 + $0x180] sm:$0xc0] %v3108_v29 }
 0x3e8   : > { %4549 = vxpose.xlu2.b32.cont [13/16] %v4318_v6, 128  ;;  %4932 = vst.msk [vmem:[%s5555_s28 + $0x150] sm:$0xff] %vm4889_vm1, %v4467_v43 }
 0x3e9   : > { %4578 = vxpose.xlu0.b32.cont [10/16] %v4271_v52, 128  ;;  %4916 = vst.msk [vmem:[%s5555_s28 + $0xd0] sm:$0xff] %vm4889_vm1, %v4435_v45  ;;  %v8280_v52 = vld [vmem:[#allocation12_spill] sm:$0xff]  ;;  %v3416_v45 = vrot.slane %v7482_v35, 1  ;;  %v8285_v35 = vld [vmem:[#allocation13_spill] sm:$0xff] }
 0x3ea   : > { %v4500_v16 = vpop.trf.xlu0  ;;  %v2985_v5 = vrot.slane %v8280_v52, 5  ;;  %3156 = vst [vmem:[#allocation2 + $0x700] sm:$0x1] %v3108_v29 }
 0x3eb   : > { %4949 = vst.msk [vmem:[%s5555_s28 + $0x1d8] sm:$0xff] %vm4889_vm1, %v4500_v16 }
 0x3ec   : > { %3017 = vst [vmem:[#allocation2 + $0x208] sm:$0x38] %v2985_v5 }
 0x3ed   : > { %4518 = vxpose.xlu1.b32.cont [14/16] %v4333_v21, 128  ;;  %v4350_v21 = vld [vmem:[#allocation2 + $0x1f8] sm:$0xff]  ;;  %3448 = vst [vmem:[#allocation2 + $0x700] sm:$0x80] %v3416_v45 }
 0x3ee   : > { %3464 = vst [vmem:[#allocation2 + $0x528] sm:$0x3] %v3416_v45  ;;  %v8288_v45 = vld [vmem:[#allocation15_spill] sm:$0xff] }
 0x3ef   : > { %v4468_v50 = vpop.trf.xlu2  ;;  %v4436_v20 = vpop.trf.xlu1  ;;  %3589 = vst [vmem:[#allocation2 + $0x528] sm:$0x1c] %v3557_v44 }
 0x3f0   : > { %4550 = vxpose.xlu2.b32.cont [14/16] %v4334_v42, 128  ;;  %4933 = vst.msk [vmem:[%s5555_s28 + $0x158] sm:$0xff] %vm4889_vm1, %v4468_v50  ;;  %v3217_v42 = vrot.slane %v8282_v39, 7  ;;  %v3418_v50 = vrot.slane %v8283_v33, 1  ;;  %v3417_v39 = vrot.slane %v8289_v30, 1  ;;  %v4367_v33 = vld [vmem:[#allocation2 + $0x6c8] sm:$0xff] }
 0x3f1   : > { %4579 = vxpose.xlu0.b32.cont [11/16] %v4287_v27, 128  ;;  %4917 = vst.msk [vmem:[%s5555_s28 + $0xd8] sm:$0xff] %vm4889_vm1, %v4436_v20  ;;  %v3215_v27 = vrot.slane %v7438_v15, 7  ;;  %v4335_v20 = vld [vmem:[#allocation2 + $0x278] sm:$0xff]  ;;  %v8284_v15 = vld [vmem:[#allocation11_spill] sm:$0xff] }
 0x3f2   : > { %v4501_v43 = vpop.trf.xlu0  ;;  %v2984_v29 = vrot.slane %v8284_v15, 5  ;;  %3249 = vst [vmem:[#allocation2 + $0x4f0] sm:$0xe] %v3217_v42  ;;  %v3973_v15 = vrot.slane %v7588_v18, 2  ;;  %v8293_v18 = vld [vmem:[#allocation23_spill] sm:$0xff] }
 0x3f3   : > { %4950 = vst.msk [vmem:[%s5555_s28 + $0x1e0] sm:$0xff] %vm4889_vm1, %v4501_v43  ;;  %v4130_v44 = vld [vmem:[#allocation2 + $0x208] sm:$0xff] }
 0x3f4   : > { %3247 = vst [vmem:[#allocation2 + $0x700] sm:$0xe] %v3215_v27  ;;  %v8287_v27 = vld [vmem:[#allocation24_spill] sm:$0xff] }
 0x3f5   : > { %4519 = vxpose.xlu1.b32.cont [15/16] %v4349_v51, 128  ;;  %v4128_v51 = vld [vmem:[#allocation2 + $0x180] sm:$0xff]  ;;  %3450 = vst [vmem:[#allocation2 + $0x4f0] sm:$0x80] %v3418_v50  ;;  %v3650_v43 = vrot.slane %v8287_v27, 3 }
 0x3f6   : > { %3466 = vst [vmem:[#allocation2 + $0x630] sm:$0x3] %v3418_v50  ;;  %v4060_v27 = vld.sshfl [vmem:[#allocation1 + $0x38] sm:$0xff pattern:$0x75316420] }
 0x3f7   : > { %v4469_v13 = vpop.trf.xlu2  ;;  %v4437_v6 = vpop.trf.xlu1  ;;  %3016 = vst [vmem:[#allocation2 + $0x108] sm:$0x38] %v2984_v29 }
 0x3f8   : > { %4551 = vxpose.xlu2.b32.cont [15/16] %v4350_v21, 128  ;;  %4934 = vst.msk [vmem:[%s5555_s28 + $0x160] sm:$0xff] %vm4889_vm1, %v4469_v13  ;;  %v4351_v21 = vld [vmem:[#allocation2 + $0x6e0] sm:$0xff] }
 0x3f9   : > { %4580 = vxpose.xlu0.b32.cont [12/16] %v4303_v24, 128  ;;  %4918 = vst.msk [vmem:[%s5555_s28 + $0xe0] sm:$0xff] %vm4889_vm1, %v4437_v6  ;;  %v4366_v24 = vld [vmem:[#allocation2 + $0x280] sm:$0xff] }
 0x3fa   : > { %v4502_v23 = vpop.trf.xlu0  ;;  %v8286_v13 = vld [vmem:[#allocation21_spill] sm:$0xff]  ;;  %3682 = vst [vmem:[#allocation2 + $0x630] sm:$0xe0] %v3650_v43 }
 0x3fb   : > { %v4144_v5 = vld [vmem:[#allocation2 + $0x700] sm:$0xff]  ;;  %v3559_v6 = vrot.slane %v8286_v13, 6  ;;  %4951 = vst.msk [vmem:[%s5555_s28 + $0x1e8] sm:$0xff] %vm4889_vm1, %v4502_v23 }
 0x3fc   : > { %3449 = vst [vmem:[#allocation2 + $0x2e8] sm:$0x80] %v3417_v39  ;;  %v4066_v43 = vld.sshfl [vmem:[#allocation1 + $0x8] sm:$0xff pattern:$0x75316420] }
 0x3fd   : > { %4520 = vxpose.xlu1.b32.end [16/16] %v4365_v53, 128  ;;  %v3109_v53 = vrot.slane %v8285_v35, 2  ;;  %3591 = vst [vmem:[#allocation2 + $0x630] sm:$0x1c] %v3559_v6  ;;  %v8290_v35 = vld [vmem:[#allocation28_spill] sm:$0xff] }
 0x3fe   : > { %3465 = vst [vmem:[#allocation2 + $0x1c8] sm:$0x3] %v3417_v39 }
 0x3ff   : > { %v4470_v16 = vpop.trf.xlu2  ;;  %v4438_v52 = vpop.trf.xlu1  ;;  %3141 = vst [vmem:[#allocation2 + $0x108] sm:$0xc0] %v3109_v53 }
 0x400   : > { %4552 = vxpose.xlu2.b32.end [16/16] %v4366_v24, 128  ;;  %3157 = vst [vmem:[#allocation2 + $0x2e8] sm:$0x1] %v3109_v53  ;;  %v3850_v53 = vrot.slane %v8290_v35, 5 }
 0x401   : > { %4581 = vxpose.xlu0.b32.cont [13/16] %v4319_v2, 128  ;;  %4935 = vst.msk [vmem:[%s5555_s28 + $0x168] sm:$0xff] %vm4889_vm1, %v4470_v16  ;;  %v3648_v2 = vrot.slane %v7526_v14, 3  ;;  %v8291_v16 = vld [vmem:[#allocation33_spill] sm:$0xff] }
 0x402   : > { %4919 = vst.msk [vmem:[%s5555_s28 + $0xe8] sm:$0xff] %vm4889_vm1, %v4438_v52  ;;  %v4503_v50 = vpop.trf.xlu0  ;;  %v3975_v52 = vrot.slane %v8291_v16, 2 }
 0x403   : > { %3680 = vst [vmem:[#allocation2 + $0x528] sm:$0xe0] %v3648_v2  ;;  %v3920_v2 = vsub.f32 1.0, %v7401_v49  ;;  %v4082_v49 = vrot.slane %v4066_v43, 7 }
 0x404   : > { %4952 = vst.msk [vmem:[%s5555_s28 + $0x1f0] sm:$0xff] %vm4889_vm1, %v4503_v50  ;;  %v4162_v16 = vld [vmem:[#allocation2 + $0x630] sm:$0xff] }
 0x405   : > { %4601 = vxpose.xlu1.b32.start [1/16] %v4128_v51, 128  ;;  %v3216_v51 = vrot.slane %v8288_v45, 7  ;;  %4005 = vst [vmem:[#allocation2 + $0x390] sm:$0xc0] %v3973_v15  ;;  %v4037_v30 = vmul.f32 %v8262_v10, %v3920_v2 }
 0x406   : > { %v4129_v42 = vld [vmem:[#allocation2 + $0x108] sm:$0xff]  ;;  %4021 = vst [vmem:[#allocation2 + $0x648] sm:$0x1] %v3973_v15 }
 0x407   : > { %3248 = vst [vmem:[#allocation2 + $0x2e8] sm:$0xe] %v3216_v51  ;;  %v4471_v14 = vpop.trf.xlu2  ;;  %v4439_v24 = vpop.trf.xlu1  ;;  %v4080_v51 = vrot.slane %v4060_v27, 7  ;;  %v4209_v27 = vld [vmem:[#allocation2 + $0x5e8] sm:$0xff] }
 0x408   : > { %4633 = vxpose.xlu2.b32.start [1/16] %v4129_v42, 128  ;;  %4936 = vst.msk [vmem:[%s5555_s28 + $0x170] sm:$0xff] %vm4889_vm1, %v4471_v14  ;;  %v8294_v42 = vld [vmem:[#allocation27_spill] sm:$0xff] }
 0x409   : > { %4582 = vxpose.xlu0.b32.cont [14/16] %v4335_v20, 128  ;;  %v3848_v20 = vrot.slane %v7566_v59, 5  ;;  %4920 = vst.msk [vmem:[%s5555_s28 + $0xf0] sm:$0xff] %vm4889_vm1, %v4439_v24  ;;  %v8292_v59 = vld [vmem:[#allocation20_spill] sm:$0xff]  ;;  %v3849_v14 = vrot.slane %v8294_v42, 5  ;;  %v4146_v24 = vld [vmem:[#allocation2 + $0x4f0] sm:$0xff] }
 0x40a   : > { %v4160_v29 = vld [vmem:[#allocation2 + $0x528] sm:$0xff]  ;;  %v3558_v23 = vrot.slane %v8292_v59, 6  ;;  %3882 = vst [vmem:[#allocation2 + $0x2a8] sm:$0x38] %v3850_v53  ;;  %v4504_v45 = vpop.trf.xlu0 }
 0x40b   : > { %3880 = vst [vmem:[#allocation2 + $0x390] sm:$0x38] %v3848_v20  ;;  %v4065_v20 = vld.sshfl [vmem:[#allocation1] sm:$0xff pattern:$0x75316420] }
 0x40c   : > { %4007 = vst [vmem:[#allocation2 + $0x2a8] sm:$0xc0] %v3975_v52  ;;  %v4081_v35 = vrot.slane %v4065_v20, 7  ;;  %v4241_v20 = vld [vmem:[#allocation2 + $0x348] sm:$0xff] }
 0x40d   : > { %4602 = vxpose.xlu1.b32.cont [2/16] %v4144_v5, 128  ;;  %4023 = vst [vmem:[#allocation2 + $0x310] sm:$0x1] %v3975_v52 }
 0x40e   : > { %v4145_v5 = vld [vmem:[#allocation2 + $0x2e8] sm:$0xff]  ;;  %3590 = vst [vmem:[#allocation2 + $0x1c8] sm:$0x1c] %v3558_v23 }
 0x40f   : > { %v4472_v13 = vpop.trf.xlu2  ;;  %v4440_v6 = vpop.trf.xlu1  ;;  %4953 = vst.msk [vmem:[%s5555_s28 + $0x1f8] sm:$0xff] %vm4889_vm1, %v4504_v45  ;;  %v4208_v23 = vld [vmem:[#allocation2 + $0x768] sm:$0xff] }
 0x410   : > { %4634 = vxpose.xlu2.b32.cont [2/16] %v4145_v5, 128  ;;  %4937 = vst.msk [vmem:[%s5555_s28 + $0x178] sm:$0xff] %vm4889_vm1, %v4472_v13  ;;  %v4224_v13 = vld [vmem:[#allocation2 + $0x1b8] sm:$0xff] }
 0x411   : > { %4583 = vxpose.xlu0.b32.cont [15/16] %v4351_v21, 128  ;;  %v3649_v21 = vrot.slane %v8293_v18, 3  ;;  %4921 = vst.msk [vmem:[%s5555_s28 + $0xf8] sm:$0xff] %vm4889_vm1, %v4440_v6 }
 0x412   : > { %v4176_v39 = vld [vmem:[#allocation2 + $0x390] sm:$0xff]  ;;  %4112 = vst [vmem:[#allocation2 + $0x648] sm:$0xe] %v4080_v51  ;;  %v4240_v51 = vld [vmem:[#allocation2 + $0x20] sm:$0xff] }
 0x413   : > { %3681 = vst [vmem:[#allocation2 + $0x1c8] sm:$0xe0] %v3649_v21 }
 0x414   : > { %4064 = vst [vmem:[#allocation1 + $0x30] ss:$2 sm:$0xff] %v4037_v30 }
 0x415   : > { %4603 = vxpose.xlu1.b32.cont [3/16] %v4160_v29, 128  ;;  %4114 = vst [vmem:[#allocation2 + $0x310] sm:$0xe] %v4082_v49  ;;  %v4225_v49 = vld [vmem:[#allocation2 + $0x600] sm:$0xff] }
 0x416   : > { %3881 = vst [vmem:[#allocation2 + $0x110] sm:$0x38] %v3849_v14 }
 0x417   : > { %4113 = vst [vmem:[#allocation2 + $0x580] sm:$0xe] %v4081_v35 }
 0x419   : > { %4584 = vxpose.xlu0.b32.end [16/16] %v4367_v33, 128  ;;  %v8295_v33 = vld [vmem:[#allocation32_spill] sm:$0xff]  ;;  %v4192_v53 = vld [vmem:[#allocation2 + $0x648] sm:$0xff] }
 0x41a   : > { %v3974_v50 = vrot.slane %v8295_v33, 2  ;;  %v4161_v10 = vld [vmem:[#allocation2 + $0x1c8] sm:$0xff] }
 0x41b   : > { %4635 = vxpose.xlu2.b32.cont [3/16] %v4161_v10, 128 }
 0x41c   : > { %4006 = vst [vmem:[#allocation2 + $0x110] sm:$0xc0] %v3974_v50  ;;  %v4194_v6 = vld [vmem:[#allocation2 + $0x310] sm:$0xff] }
 0x41d   : > { %4604 = vxpose.xlu1.b32.cont [4/16] %v4176_v39, 128  ;;  %4022 = vst [vmem:[#allocation2 + $0x580] sm:$0x1] %v3974_v50  ;;  %v4210_v39 = vld [vmem:[#allocation2 + $0xf8] sm:$0xff]  ;;  %v4226_v50 = vld [vmem:[#allocation2 + $0xa8] sm:$0xff] }
 0x421   : > { %4665 = vxpose.xlu0.b32.start [1/16] %v4130_v44, 128  ;;  %v4553_v15 = vpop.trf.xlu2  ;;  %v4178_v44 = vld [vmem:[#allocation2 + $0x2a8] sm:$0xff] }
 0x422   : > { %4970 = vst.msk [vmem:[%s5555_s28 + $0x280] sm:$0xff] %vm4889_vm1, %v4553_v15 }
 0x423   : > { %v4177_v52 = vld [vmem:[#allocation2 + $0x110] sm:$0xff] }
 0x424   : > { %4636 = vxpose.xlu2.b32.cont [4/16] %v4177_v52, 128  ;;  %v4193_v18 = vld [vmem:[#allocation2 + $0x580] sm:$0xff] }
 0x425   : > { %4605 = vxpose.xlu1.b32.cont [5/16] %v4192_v53, 128  ;;  %v4242_v53 = vld [vmem:[#allocation2 + $0x5a0] sm:$0xff] }
 0x429   : > { %4666 = vxpose.xlu0.b32.cont [2/16] %v4146_v24, 128  ;;  %v4521_v29 = vpop.trf.xlu1  ;;  %v4554_v5 = vpop.trf.xlu2  ;;  %v4256_v24 = vld [vmem:[#allocation2 + $0x240] sm:$0xff] }
 0x42a   : > { %4954 = vst.msk [vmem:[%s5555_s28 + $0x200] sm:$0xff] %vm4889_vm1, %v4521_v29  ;;  %v4272_v29 = vld [vmem:[#allocation2 + $0x3d8] sm:$0xff] }
 0x42b   : > { %4971 = vst.msk [vmem:[%s5555_s28 + $0x288] sm:$0xff] %vm4889_vm1, %v4554_v5 }
 0x42c   : > { %4637 = vxpose.xlu2.b32.cont [5/16] %v4193_v18, 128  ;;  %v4273_v18 = vld [vmem:[#allocation2 + $0x28] sm:$0xff] }
 0x42d   : > { %4606 = vxpose.xlu1.b32.cont [6/16] %v4208_v23, 128 }
 0x431   : > { %4667 = vxpose.xlu0.b32.cont [3/16] %v4162_v16, 128  ;;  %v4522_v59 = vpop.trf.xlu1  ;;  %v4555_v21 = vpop.trf.xlu2  ;;  %v4257_v16 = vld [vmem:[#allocation2 + $0xf0] sm:$0xff] }
 0x432   : > { %4955 = vst.msk [vmem:[%s5555_s28 + $0x208] sm:$0xff] %vm4889_vm1, %v4522_v59  ;;  %v4288_v59 = vld [vmem:[#allocation2 + $0x48] sm:$0xff] }
 0x433   : > { %4972 = vst.msk [vmem:[%s5555_s28 + $0x290] sm:$0xff] %vm4889_vm1, %v4555_v21 }
 0x434   : > { %4638 = vxpose.xlu2.b32.cont [6/16] %v4209_v27, 128  ;;  %v4274_v27 = vld [vmem:[#allocation2 + $0x3f8] sm:$0xff] }
 0x435   : > { %4607 = vxpose.xlu1.b32.cont [7/16] %v4224_v13, 128  ;;  %v4304_v13 = vld [vmem:[#allocation2 + $0x7b0] sm:$0xff] }
 0x439   : > { %4668 = vxpose.xlu0.b32.cont [4/16] %v4178_v44, 128  ;;  %v4523_v2 = vpop.trf.xlu1  ;;  %v4556_v43 = vpop.trf.xlu2  ;;  %v4258_v44 = vld [vmem:[#allocation2 + $0x4f8] sm:$0xff] }
 0x43a   : > { %4956 = vst.msk [vmem:[%s5555_s28 + $0x210] sm:$0xff] %vm4889_vm1, %v4523_v2 }
 0x43b   : > { %4973 = vst.msk [vmem:[%s5555_s28 + $0x298] sm:$0xff] %vm4889_vm1, %v4556_v43  ;;  %v4289_v43 = vld [vmem:[#allocation2 + $0x258] sm:$0xff] }
 0x43c   : > { %4639 = vxpose.xlu2.b32.cont [7/16] %v4225_v49, 128  ;;  %v4290_v49 = vld [vmem:[#allocation2 + $0x398] sm:$0xff] }
 0x43d   : > { %4608 = vxpose.xlu1.b32.cont [8/16] %v4240_v51, 128 }
 0x441   : > { %4669 = vxpose.xlu0.b32.cont [5/16] %v4194_v6, 128  ;;  %v4524_v45 = vpop.trf.xlu1  ;;  %v4557_v42 = vpop.trf.xlu2 }
 0x442   : > { %4957 = vst.msk [vmem:[%s5555_s28 + $0x218] sm:$0xff] %vm4889_vm1, %v4524_v45 }
 0x443   : > { %4974 = vst.msk [vmem:[%s5555_s28 + $0x2a0] sm:$0xff] %vm4889_vm1, %v4557_v42  ;;  %v4305_v42 = vld [vmem:[#allocation2 + $0x230] sm:$0xff] }
 0x444   : > { %4640 = vxpose.xlu2.b32.cont [8/16] %v4241_v20, 128  ;;  %v4306_v20 = vld [vmem:[#allocation2 + $0x328] sm:$0xff] }
 0x445   : > { %v4585_v30 = vpop.trf.xlu0  ;;  %4609 = vxpose.xlu1.b32.cont [9/16] %v4256_v24, 128 }
 0x446   : > { %4986 = vst.msk [vmem:[%s5555_s28 + $0x300] sm:$0xff] %vm4889_vm1, %v4585_v30  ;;  %v4320_v30 = vld [vmem:[#allocation2 + $0xa0] sm:$0xff] }
 0x449   : > { %4670 = vxpose.xlu0.b32.cont [6/16] %v4210_v39, 128  ;;  %v4525_v14 = vpop.trf.xlu1  ;;  %v4558_v10 = vpop.trf.xlu2 }
 0x44a   : > { %4958 = vst.msk [vmem:[%s5555_s28 + $0x220] sm:$0xff] %vm4889_vm1, %v4525_v14 }
 0x44b   : > { %4975 = vst.msk [vmem:[%s5555_s28 + $0x2a8] sm:$0xff] %vm4889_vm1, %v4558_v10  ;;  %v4321_v10 = vld [vmem:[#allocation2 + $0x5c8] sm:$0xff] }
 0x44c   : > { %4641 = vxpose.xlu2.b32.cont [9/16] %v4257_v16, 128 }
 0x44d   : > { %v4586_v33 = vpop.trf.xlu0  ;;  %4610 = vxpose.xlu1.b32.cont [10/16] %v4272_v29, 128 }
 0x44e   : > { %4987 = vst.msk [vmem:[%s5555_s28 + $0x308] sm:$0xff] %vm4889_vm1, %v4586_v33  ;;  %v4336_v33 = vld [vmem:[#allocation2 + $0x4a0] sm:$0xff] }
 0x451   : > { %4671 = vxpose.xlu0.b32.cont [7/16] %v4226_v50, 128  ;;  %v4526_v15 = vpop.trf.xlu1  ;;  %v4559_v52 = vpop.trf.xlu2 }
 0x452   : > { %4959 = vst.msk [vmem:[%s5555_s28 + $0x228] sm:$0xff] %vm4889_vm1, %v4526_v15  ;;  %v8296_v15 = vld [vmem:[#allocation30_spill] sm:$0xff] }
 0x453   : > { %4976 = vst.msk [vmem:[%s5555_s28 + $0x2b0] sm:$0xff] %vm4889_vm1, %v4559_v52  ;;  %v2986_v29 = vrot.slane %v8296_v15, 5  ;;  %v4369_v15 = vld [vmem:[#allocation2 + $0x198] sm:$0xff] }
 0x454   : > { %4642 = vxpose.xlu2.b32.cont [10/16] %v4273_v18, 128  ;;  %v4322_v18 = vld [vmem:[#allocation2 + $0x3e8] sm:$0xff] }
 0x455   : > { %v4587_v35 = vpop.trf.xlu0  ;;  %4611 = vxpose.xlu1.b32.cont [11/16] %v4288_v59, 128  ;;  %3018 = vst [vmem:[#allocation2 + $0x628] sm:$0x38] %v2986_v29  ;;  %v2988_v59 = vrot.slane %v7093_v54, 5  ;;  %v8302_v29 = vld [vmem:[#allocation34_spill] sm:$0xff] }
 0x456   : > { %4988 = vst.msk [vmem:[%s5555_s28 + $0x310] sm:$0xff] %vm4889_vm1, %v4587_v35  ;;  %v8297_v35 = vld [vmem:[#allocation35_spill] sm:$0xff] }
 0x457   : > { %3020 = vst [vmem:[#allocation2 + $0x1e0] sm:$0x38] %v2988_v59  ;;  %v3653_v59 = vrot.slane %v7505_v25, 3 }
 0x459   : > { %4672 = vxpose.xlu0.b32.cont [8/16] %v4242_v53, 128  ;;  %v4527_v5 = vpop.trf.xlu1  ;;  %v4560_v21 = vpop.trf.xlu2  ;;  %v3111_v53 = vrot.slane %v8297_v35, 2  ;;  %v3651_v35 = vrot.slane %v8302_v29, 3  ;;  %3685 = vst [vmem:[#allocation2 + $0x38] sm:$0xe0] %v3653_v59 }
 0x45a   : > { %4960 = vst.msk [vmem:[%s5555_s28 + $0x230] sm:$0xff] %vm4889_vm1, %v4527_v5  ;;  %v4352_v5 = vld [vmem:[#allocation2 + $0x400] sm:$0xff] }
 0x45b   : > { %4977 = vst.msk [vmem:[%s5555_s28 + $0x2b8] sm:$0xff] %vm4889_vm1, %v4560_v21  ;;  %v4337_v21 = vld [vmem:[#allocation2 + $0x210] sm:$0xff] }
 0x45c   : > { %4643 = vxpose.xlu2.b32.cont [11/16] %v4289_v43, 128  ;;  %3143 = vst [vmem:[#allocation2 + $0x628] sm:$0xc0] %v3111_v53  ;;  %v3220_v43 = vrot.slane %v7418_v11, 7 }
 0x45d   : > { %v4588_v23 = vpop.trf.xlu0  ;;  %4612 = vxpose.xlu1.b32.cont [12/16] %v4304_v13, 128  ;;  %3159 = vst [vmem:[#allocation2 + $0x1e8] sm:$0x1] %v3111_v53 }
 0x45e   : > { %4989 = vst.msk [vmem:[%s5555_s28 + $0x318] sm:$0xff] %vm4889_vm1, %v4588_v23  ;;  %v3113_v23 = vrot.slane %v7372_v60, 2 }
 0x45f   : > { %3252 = vst [vmem:[#allocation2 + $0x260] sm:$0xe] %v3220_v43 }
 0x460   : > { %3145 = vst [vmem:[#allocation2 + $0x1e0] sm:$0xc0] %v3113_v23 }
 0x461   : > { %4673 = vxpose.xlu0.b32.cont [9/16] %v4258_v44, 128  ;;  %v4528_v2 = vpop.trf.xlu1  ;;  %v4561_v45 = vpop.trf.xlu2  ;;  %3161 = vst [vmem:[#allocation2 + $0x260] sm:$0x1] %v3113_v23  ;;  %v8303_v23 = vld [vmem:[#allocation38_spill] sm:$0xff] }
 0x462   : > { %4961 = vst.msk [vmem:[%s5555_s28 + $0x238] sm:$0xff] %vm4889_vm1, %v4528_v2  ;;  %v3218_v2 = vrot.slane %v6545_v41, 7  ;;  %v3421_v41 = vrot.slane %v7455_v17, 1  ;;  %v8300_v17 = vld [vmem:[#allocation36_spill] sm:$0xff] }
 0x463   : > { %4978 = vst.msk [vmem:[%s5555_s28 + $0x2c0] sm:$0xff] %vm4889_vm1, %v4561_v45 }
 0x464   : > { %4644 = vxpose.xlu2.b32.cont [12/16] %v4305_v42, 128  ;;  %3250 = vst [vmem:[#allocation2 + $0x1e8] sm:$0xe] %v3218_v2  ;;  %v8299_v42 = vld [vmem:[#allocation31_spill] sm:$0xff] }
 0x465   : > { %v4589_v6 = vpop.trf.xlu0  ;;  %4613 = vxpose.xlu1.b32.cont [13/16] %v4320_v30, 128  ;;  %v4353_v30 = vld [vmem:[#allocation2 + $0x668] sm:$0xff]  ;;  %3453 = vst [vmem:[#allocation2 + $0x260] sm:$0x80] %v3421_v41  ;;  %v2987_v11 = vrot.slane %v8299_v42, 5 }
 0x466   : > { %4990 = vst.msk [vmem:[%s5555_s28 + $0x320] sm:$0xff] %vm4889_vm1, %v4589_v6  ;;  %v8298_v6 = vld [vmem:[#allocation39_spill] sm:$0xff]  ;;  %v4069_v42 = vld.sshfl [vmem:[#allocation1 + $0x20] sm:$0xff pattern:$0x75316420] }
 0x467   : > { %v3419_v60 = vrot.slane %v8298_v6, 1  ;;  %3469 = vst [vmem:[#allocation2 + $0x38] sm:$0x3] %v3421_v41  ;;  %v3851_v6 = vrot.slane %v7011_v57, 5  ;;  %v4133_v41 = vld [vmem:[#allocation2 + $0x1e0] sm:$0xff] }
 0x468   : > { %3019 = vst [vmem:[#allocation2 + $0x370] sm:$0x38] %v2987_v11 }
 0x469   : > { %4674 = vxpose.xlu0.b32.cont [10/16] %v4274_v27, 128  ;;  %v4529_v51 = vpop.trf.xlu1  ;;  %v4562_v14 = vpop.trf.xlu2  ;;  %v4368_v27 = vld [vmem:[#allocation2 + $0x5f0] sm:$0xff]  ;;  %3451 = vst [vmem:[#allocation2 + $0x1e8] sm:$0x80] %v3419_v60 }
 0x46a   : > { %4962 = vst.msk [vmem:[%s5555_s28 + $0x240] sm:$0xff] %vm4889_vm1, %v4529_v51  ;;  %v4338_v51 = vld [vmem:[#allocation2 + $0x178] sm:$0xff] }
 0x46b   : > { %4979 = vst.msk [vmem:[%s5555_s28 + $0x2c8] sm:$0xff] %vm4889_vm1, %v4562_v14  ;;  %v4131_v14 = vld [vmem:[#allocation2 + $0x628] sm:$0xff] }
 0x46c   : > { %4645 = vxpose.xlu2.b32.cont [13/16] %v4321_v10, 128  ;;  %3467 = vst [vmem:[#allocation2 + $0x778] sm:$0x3] %v3419_v60  ;;  %v4354_v10 = vld [vmem:[#allocation2 + $0x4a8] sm:$0xff] }
 0x46d   : > { %v4590_v39 = vpop.trf.xlu0  ;;  %4614 = vxpose.xlu1.b32.cont [14/16] %v4336_v33, 128  ;;  %3683 = vst [vmem:[#allocation2 + $0x778] sm:$0xe0] %v3651_v35 }
 0x46e   : > { %4991 = vst.msk [vmem:[%s5555_s28 + $0x328] sm:$0xff] %vm4889_vm1, %v4590_v39 }
 0x46f   : > { %3883 = vst [vmem:[#allocation2 + $0x4b8] sm:$0x38] %v3851_v6 }
 0x471   : > { %4675 = vxpose.xlu0.b32.cont [11/16] %v4290_v49, 128  ;;  %v4530_v24 = vpop.trf.xlu1  ;;  %v4563_v16 = vpop.trf.xlu2 }
 0x472   : > { %4963 = vst.msk [vmem:[%s5555_s28 + $0x248] sm:$0xff] %vm4889_vm1, %v4530_v24  ;;  %v3112_v24 = vrot.slane %v8300_v17, 2 }
 0x473   : > { %4980 = vst.msk [vmem:[%s5555_s28 + $0x2d0] sm:$0xff] %vm4889_vm1, %v4563_v16 }
 0x474   : > { %4646 = vxpose.xlu2.b32.cont [14/16] %v4337_v21, 128  ;;  %3144 = vst [vmem:[#allocation2 + $0x370] sm:$0xc0] %v3112_v24  ;;  %v8304_v21 = vld [vmem:[#allocation40_spill] sm:$0xff] }
 0x475   : > { %v4591_v50 = vpop.trf.xlu0  ;;  %4615 = vxpose.xlu1.b32.cont [15/16] %v4352_v5, 128  ;;  %3160 = vst [vmem:[#allocation2 + $0x560] sm:$0x1] %v3112_v24  ;;  %v4147_v5 = vld [vmem:[#allocation2 + $0x1e8] sm:$0xff]  ;;  %v3420_v2 = vrot.slane %v8304_v21, 1  ;;  %v4149_v24 = vld [vmem:[#allocation2 + $0x260] sm:$0xff] }
 0x476   : > { %4992 = vst.msk [vmem:[%s5555_s28 + $0x330] sm:$0xff] %vm4889_vm1, %v4591_v50  ;;  %v8301_v50 = vld [vmem:[#allocation41_spill] sm:$0xff] }
 0x477   : > { %3452 = vst [vmem:[#allocation2 + $0x560] sm:$0x80] %v3420_v2 }
 0x478   : > { %3468 = vst [vmem:[#allocation2 + $0x8] sm:$0x3] %v3420_v2 }
 0x479   : > { %4676 = vxpose.xlu0.b32.cont [12/16] %v4306_v20, 128  ;;  %v4531_v52 = vpop.trf.xlu1  ;;  %v4564_v13 = vpop.trf.xlu2  ;;  %v3560_v20 = vrot.slane %v8301_v50, 6  ;;  %v4085_v50 = vrot.slane %v4069_v42, 7 }
 0x47a   : > { %4964 = vst.msk [vmem:[%s5555_s28 + $0x250] sm:$0xff] %vm4889_vm1, %v4531_v52  ;;  %v3562_v52 = vrot.slane %v7474_v26, 6  ;;  %v4370_v26 = vld [vmem:[#allocation2 + $0x578] sm:$0xff] }
 0x47b   : > { %4981 = vst.msk [vmem:[%s5555_s28 + $0x2d8] sm:$0xff] %vm4889_vm1, %v4564_v13  ;;  %v4132_v13 = vld [vmem:[#allocation2 + $0x370] sm:$0xff] }
 0x47c   : > { %4647 = vxpose.xlu2.b32.cont [15/16] %v4353_v30, 128  ;;  %3592 = vst [vmem:[#allocation2 + $0x778] sm:$0x1c] %v3560_v20  ;;  %v8305_v30 = vld [vmem:[#allocation42_spill] sm:$0xff]  ;;  %v3852_v20 = vrot.slane %v7013_v38, 5 }
 0x47d   : > { %v4592_v44 = vpop.trf.xlu0  ;;  %4616 = vxpose.xlu1.b32.end [16/16] %v4368_v27, 128  ;;  %3594 = vst [vmem:[#allocation2 + $0x38] sm:$0x1c] %v3562_v52  ;;  %v3976_v27 = vrot.slane %v7113_v4, 2  ;;  %v8306_v4 = vld [vmem:[#allocation19_spill] sm:$0xff] }
 0x47e   : > { %4993 = vst.msk [vmem:[%s5555_s28 + $0x338] sm:$0xff] %vm4889_vm1, %v4592_v44  ;;  %v3219_v44 = vrot.slane %v8303_v23, 7 }
 0x47f   : > { %4008 = vst [vmem:[#allocation2 + $0x4b8] sm:$0xc0] %v3976_v27 }
 0x480   : > { %3251 = vst [vmem:[#allocation2 + $0x560] sm:$0xe] %v3219_v44  ;;  %v4211_v44 = vld [vmem:[#allocation2 + $0x90] sm:$0xff] }
 0x481   : > { %4677 = vxpose.xlu0.b32.cont [13/16] %v4322_v18, 128  ;;  %v4532_v54 = vpop.trf.xlu1  ;;  %v4565_v39 = vpop.trf.xlu2  ;;  %4024 = vst [vmem:[#allocation2 + $0x718] sm:$0x1] %v3976_v27 }
 0x482   : > { %4965 = vst.msk [vmem:[%s5555_s28 + $0x258] sm:$0xff] %vm4889_vm1, %v4532_v54 }
 0x483   : > { %4982 = vst.msk [vmem:[%s5555_s28 + $0x2e0] sm:$0xff] %vm4889_vm1, %v4565_v39  ;;  %v4163_v60 = vld [vmem:[#allocation2 + $0x778] sm:$0xff]  ;;  %v3561_v39 = vrot.slane %v8305_v30, 6 }
 0x484   : > { %4648 = vxpose.xlu2.b32.end [16/16] %v4369_v15, 128  ;;  %v4068_v15 = vld.sshfl [vmem:[#allocation1 + $0x18] sm:$0xff pattern:$0x75316420]  ;;  %4117 = vst [vmem:[#allocation2 + $0x520] sm:$0xe] %v4085_v50  ;;  %v4165_v38 = vld [vmem:[#allocation2 + $0x38] sm:$0xff] }
 0x485   : > { %v4593_v45 = vpop.trf.xlu0  ;;  %4697 = vxpose.xlu1.b32.start [1/16] %v4131_v14, 128  ;;  %3593 = vst [vmem:[#allocation2 + $0x8] sm:$0x1c] %v3561_v39  ;;  %v4084_v29 = vrot.slane %v4068_v15, 7  ;;  %v4229_v39 = vld [vmem:[#allocation2 + $0xc8] sm:$0xff]  ;;  %v4276_v15 = vld [vmem:[#allocation2 + $0x478] sm:$0xff] }
 0x486   : > { %4994 = vst.msk [vmem:[%s5555_s28 + $0x340] sm:$0xff] %vm4889_vm1, %v4593_v45  ;;  %v3853_v45 = vrot.slane %v7545_v0, 5  ;;  %v4067_v0 = vld.sshfl [vmem:[#allocation1 + $0x10] sm:$0xff pattern:$0x75316420] }
 0x487   : > { %v4148_v57 = vld [vmem:[#allocation2 + $0x560] sm:$0xff]  ;;  %v4083_v17 = vrot.slane %v4067_v0, 7  ;;  %3884 = vst [vmem:[#allocation2 + $0x438] sm:$0x38] %v3852_v20  ;;  %v4261_v20 = vld [vmem:[#allocation2 + $0x138] sm:$0xff] }
 0x488   : > { %3885 = vst [vmem:[#allocation2 + $0x3b0] sm:$0x38] %v3853_v45  ;;  %v4243_v45 = vld [vmem:[#allocation2 + $0x6e8] sm:$0xff] }
 0x489   : > { %4678 = vxpose.xlu0.b32.cont [14/16] %v4338_v51, 128  ;;  %v4533_v49 = vpop.trf.xlu1  ;;  %v4566_v53 = vpop.trf.xlu2  ;;  %v3978_v51 = vrot.slane %v7560_v8, 2  ;;  %4115 = vst [vmem:[#allocation2 + $0x718] sm:$0xe] %v4083_v17  ;;  %v4260_v17 = vld [vmem:[#allocation2 + $0x378] sm:$0xff] }
 0x48a   : > { %4966 = vst.msk [vmem:[%s5555_s28 + $0x260] sm:$0xff] %vm4889_vm1, %v4533_v49  ;;  %v3652_v49 = vrot.slane %v8306_v4, 3  ;;  %v4259_v4 = vld [vmem:[#allocation2 + $0x158] sm:$0xff] }
 0x48b   : > { %4983 = vst.msk [vmem:[%s5555_s28 + $0x2e8] sm:$0xff] %vm4889_vm1, %v4566_v53 }
 0x48c   : > { %4729 = vxpose.xlu2.b32.start [1/16] %v4132_v13, 128  ;;  %4010 = vst [vmem:[#allocation2 + $0x3b0] sm:$0xc0] %v3978_v51 }
 0x48d   : > { %v4594_v33 = vpop.trf.xlu0  ;;  %4698 = vxpose.xlu1.b32.cont [2/16] %v4147_v5, 128  ;;  %4026 = vst [vmem:[#allocation2 + $0x520] sm:$0x1] %v3978_v51 }
 0x48e   : > { %4995 = vst.msk [vmem:[%s5555_s28 + $0x348] sm:$0xff] %vm4889_vm1, %v4594_v33  ;;  %v4179_v33 = vld [vmem:[#allocation2 + $0x4b8] sm:$0xff] }
 0x48f   : > { %3684 = vst [vmem:[#allocation2 + $0x8] sm:$0xe0] %v3652_v49  ;;  %v4244_v49 = vld [vmem:[#allocation2 + $0x510] sm:$0xff] }
 0x490   : > { %4116 = vst [vmem:[#allocation2 + $0x698] sm:$0xe] %v4084_v29 }
 0x491   : > { %4679 = vxpose.xlu0.b32.cont [15/16] %v4354_v10, 128  ;;  %v4534_v16 = vpop.trf.xlu1  ;;  %v4567_v25 = vpop.trf.xlu2  ;;  %v3977_v10 = vrot.slane %v7115_v34, 2 }
 0x492   : > { %4967 = vst.msk [vmem:[%s5555_s28 + $0x268] sm:$0xff] %vm4889_vm1, %v4534_v16  ;;  %v4195_v16 = vld [vmem:[#allocation2 + $0x718] sm:$0xff] }
 0x493   : > { %4984 = vst.msk [vmem:[%s5555_s28 + $0x2f0] sm:$0xff] %vm4889_vm1, %v4567_v25  ;;  %v4181_v23 = vld [vmem:[#allocation2 + $0x3b0] sm:$0xff]  ;;  %v4227_v25 = vld [vmem:[#allocation2 + $0x5f8] sm:$0xff] }
 0x494   : > { %4730 = vxpose.xlu2.b32.cont [2/16] %v4148_v57, 128  ;;  %4009 = vst [vmem:[#allocation2 + $0x438] sm:$0xc0] %v3977_v10  ;;  %v4197_v13 = vld [vmem:[#allocation2 + $0x520] sm:$0xff] }
 0x495   : > { %v4595_v18 = vpop.trf.xlu0  ;;  %4699 = vxpose.xlu1.b32.cont [3/16] %v4163_v60, 128  ;;  %4025 = vst [vmem:[#allocation2 + $0x698] sm:$0x1] %v3977_v10  ;;  %v4291_v10 = vld [vmem:[#allocation2 + $0x268] sm:$0xff] }
 0x496   : > { %4996 = vst.msk [vmem:[%s5555_s28 + $0x350] sm:$0xff] %vm4889_vm1, %v4595_v18  ;;  %v4164_v35 = vld [vmem:[#allocation2 + $0x8] sm:$0xff] }
 0x499   : > { %4680 = vxpose.xlu0.b32.end [16/16] %v4370_v26, 128  ;;  %v4535_v54 = vpop.trf.xlu1  ;;  %v4568_v11 = vpop.trf.xlu2 }
 0x49a   : > { %4968 = vst.msk [vmem:[%s5555_s28 + $0x270] sm:$0xff] %vm4889_vm1, %v4535_v54  ;;  %v4212_v54 = vld [vmem:[#allocation2 + $0x568] sm:$0xff] }
 0x49b   : > { %4985 = vst.msk [vmem:[%s5555_s28 + $0x2f8] sm:$0xff] %vm4889_vm1, %v4568_v11  ;;  %v4180_v52 = vld [vmem:[#allocation2 + $0x438] sm:$0xff] }
 0x49c   : > { %4731 = vxpose.xlu2.b32.cont [3/16] %v4164_v35, 128  ;;  %v4196_v18 = vld [vmem:[#allocation2 + $0x698] sm:$0xff] }
 0x49d   : > { %v4596_v43 = vpop.trf.xlu0  ;;  %4700 = vxpose.xlu1.b32.cont [4/16] %v4179_v33, 128 }
 0x49e   : > { %4997 = vst.msk [vmem:[%s5555_s28 + $0x358] sm:$0xff] %vm4889_vm1, %v4596_v43  ;;  %v4213_v43 = vld [vmem:[#allocation2 + $0x338] sm:$0xff] }
 0x4a1   : > { %4761 = vxpose.xlu0.b32.start [1/16] %v4133_v41, 128  ;;  %v4536_v14 = vpop.trf.xlu1  ;;  %v4228_v41 = vld [vmem:[#allocation2 + $0x4e8] sm:$0xff] }
 0x4a2   : > { %4969 = vst.msk [vmem:[%s5555_s28 + $0x278] sm:$0xff] %vm4889_vm1, %v4536_v14  ;;  %v4275_v14 = vld [vmem:[#allocation2 + $0x588] sm:$0xff] }
 0x4a4   : > { %4732 = vxpose.xlu2.b32.cont [4/16] %v4180_v52, 128 }
 0x4a5   : > { %v4597_v8 = vpop.trf.xlu0  ;;  %4701 = vxpose.xlu1.b32.cont [5/16] %v4195_v16, 128  ;;  %v4649_v5 = vpop.trf.xlu2  ;;  %v4307_v16 = vld [vmem:[#allocation2 + $0x3a0] sm:$0xff] }
 0x4a6   : > { %4998 = vst.msk [vmem:[%s5555_s28 + $0x360] sm:$0xff] %vm4889_vm1, %v4597_v8  ;;  %v4245_v8 = vld [vmem:[#allocation2 + $0x238] sm:$0xff] }
 0x4a7   : > { %5018 = vst.msk [vmem:[%s5555_s28 + $0x400] sm:$0xff] %vm4889_vm1, %v4649_v5 }
 0x4a9   : > { %4762 = vxpose.xlu0.b32.cont [2/16] %v4149_v24, 128  ;;  %v4617_v34 = vpop.trf.xlu1 }
 0x4aa   : > { %5002 = vst.msk [vmem:[%s5555_s28 + $0x380] sm:$0xff] %vm4889_vm1, %v4617_v34  ;;  %v4292_v34 = vld [vmem:[#allocation2] sm:$0xff] }
 0x4ac   : > { %4733 = vxpose.xlu2.b32.cont [5/16] %v4196_v18, 128  ;;  %v4308_v18 = vld [vmem:[#allocation2 + $0x7f0] sm:$0xff] }
 0x4ad   : > { %v4598_v53 = vpop.trf.xlu0  ;;  %4702 = vxpose.xlu1.b32.cont [6/16] %v4211_v44, 128  ;;  %v4650_v2 = vpop.trf.xlu2  ;;  %v4323_v44 = vld [vmem:[#allocation2 + $0xd0] sm:$0xff] }
 0x4ae   : > { %4999 = vst.msk [vmem:[%s5555_s28 + $0x368] sm:$0xff] %vm4889_vm1, %v4598_v53 }
 0x4af   : > { %5019 = vst.msk [vmem:[%s5555_s28 + $0x408] sm:$0xff] %vm4889_vm1, %v4650_v2 }
 0x4b1   : > { %4763 = vxpose.xlu0.b32.cont [3/16] %v4165_v38, 128  ;;  %v4618_v21 = vpop.trf.xlu1  ;;  %v4277_v38 = vld [vmem:[#allocation2 + $0x678] sm:$0xff] }
 0x4b2   : > { %5003 = vst.msk [vmem:[%s5555_s28 + $0x388] sm:$0xff] %vm4889_vm1, %v4618_v21 }
 0x4b4   : > { %4734 = vxpose.xlu2.b32.cont [6/16] %v4212_v54, 128  ;;  %v2989_v54 = vrot.slane %v7097_v61, 5  ;;  %v4325_v61 = vld [vmem:[#allocation2 + $0x130] sm:$0xff] }
 0x4b5   : > { %v4599_v59 = vpop.trf.xlu0  ;;  %4703 = vxpose.xlu1.b32.cont [7/16] %v4227_v25, 128  ;;  %v4651_v60 = vpop.trf.xlu2  ;;  %v4339_v25 = vld [vmem:[#allocation2 + $0x1a8] sm:$0xff] }
 0x4b6   : > { %5000 = vst.msk [vmem:[%s5555_s28 + $0x370] sm:$0xff] %vm4889_vm1, %v4599_v59 }
 0x4b7   : > { %5020 = vst.msk [vmem:[%s5555_s28 + $0x410] sm:$0xff] %vm4889_vm1, %v4651_v60  ;;  %v4324_v60 = vld [vmem:[#allocation2 + $0x88] sm:$0xff] }
 0x4b8   : > { %3021 = vst [vmem:[#allocation2 + $0x220] sm:$0x38] %v2989_v54 }
 0x4b9   : > { %4764 = vxpose.xlu0.b32.cont [4/16] %v4181_v23, 128  ;;  %v4619_v6 = vpop.trf.xlu1  ;;  %v4293_v23 = vld [vmem:[#allocation2 + $0x5a8] sm:$0xff] }
 0x4ba   : > { %5004 = vst.msk [vmem:[%s5555_s28 + $0x390] sm:$0xff] %vm4889_vm1, %v4619_v6  ;;  %v3114_v6 = vrot.slane %v7374_v32, 2  ;;  %v4355_v32 = vld [vmem:[#allocation2 + $0x3d0] sm:$0xff] }
 0x4bc   : > { %4735 = vxpose.xlu2.b32.cont [7/16] %v4228_v41, 128  ;;  %3146 = vst [vmem:[#allocation2 + $0x220] sm:$0xc0] %v3114_v6  ;;  %v3116_v41 = vrot.slane %v7429_v22, 2  ;;  %v4340_v22 = vld [vmem:[#allocation2 + $0x730] sm:$0xff] }
 0x4bd   : > { %v4600_v26 = vpop.trf.xlu0  ;;  %4704 = vxpose.xlu1.b32.cont [8/16] %v4243_v45, 128  ;;  %v4652_v57 = vpop.trf.xlu2  ;;  %v2991_v45 = vrot.slane %v7411_v40, 5  ;;  %3162 = vst [vmem:[#allocation2 + $0x410] sm:$0x1] %v3114_v6  ;;  %v3422_v40 = vrot.slane %v7457_v47, 1  ;;  %v4341_v47 = vld [vmem:[#allocation2 + $0x790] sm:$0xff] }
 0x4be   : > { %5001 = vst.msk [vmem:[%s5555_s28 + $0x378] sm:$0xff] %vm4889_vm1, %v4600_v26 }
 0x4bf   : > { %5021 = vst.msk [vmem:[%s5555_s28 + $0x418] sm:$0xff] %vm4889_vm1, %v4652_v57  ;;  %v3221_v57 = vrot.slane %v7420_v37, 7  ;;  %v3424_v37 = vrot.slane %v7495_v1, 1  ;;  %v3115_v1 = vrot.slane %v7427_v58, 2  ;;  %v3565_v58 = vrot.slane %v7517_v3, 6  ;;  %v4373_v3 = vld [vmem:[#allocation2 + $0x128] sm:$0xff] }
 0x4c0   : > { %3023 = vst [vmem:[#allocation2 + $0x288] sm:$0x38] %v2991_v45 }
 0x4c1   : > { %4765 = vxpose.xlu0.b32.cont [5/16] %v4197_v13, 128  ;;  %v4620_v51 = vpop.trf.xlu1  ;;  %v4309_v13 = vld [vmem:[#allocation2 + $0x70] sm:$0xff]  ;;  %3148 = vst [vmem:[#allocation2 + $0x288] sm:$0xc0] %v3116_v41 }
 0x4c2   : > { %5005 = vst.msk [vmem:[%s5555_s28 + $0x398] sm:$0xff] %vm4889_vm1, %v4620_v51 }
 0x4c3   : > { %3164 = vst [vmem:[#allocation2 + $0x148] sm:$0x1] %v3116_v41  ;;  %v3980_v41 = vrot.slane %v7597_v31, 2 }
 0x4c4   : > { %4736 = vxpose.xlu2.b32.cont [8/16] %v4244_v49, 128  ;;  %3253 = vst [vmem:[#allocation2 + $0x410] sm:$0xe] %v3221_v57 }
 0x4c5   : > { %v4681_v27 = vpop.trf.xlu0  ;;  %4705 = vxpose.xlu1.b32.cont [9/16] %v4259_v4, 128  ;;  %v4653_v42 = vpop.trf.xlu2  ;;  %v3223_v4 = vrot.slane %v7453_v63, 7  ;;  %3454 = vst [vmem:[#allocation2 + $0x410] sm:$0x80] %v3422_v40  ;;  %v4356_v63 = vld [vmem:[#allocation2 + $0x710] sm:$0xff] }
 0x4c6   : > { %5034 = vst.msk [vmem:[%s5555_s28 + $0x480] sm:$0xff] %vm4889_vm1, %v4681_v27 }
 0x4c7   : > { %5022 = vst.msk [vmem:[%s5555_s28 + $0x420] sm:$0xff] %vm4889_vm1, %v4653_v42  ;;  %v2990_v42 = vrot.slane %v7409_v62, 5  ;;  %v4357_v62 = vld [vmem:[#allocation2 + $0x150] sm:$0xff] }
 0x4c8   : > { %3470 = vst [vmem:[#allocation2 + $0x6b8] sm:$0x3] %v3422_v40 }
 0x4c9   : > { %4766 = vxpose.xlu0.b32.cont [6/16] %v4213_v43, 128  ;;  %v4621_v0 = vpop.trf.xlu1  ;;  %3255 = vst [vmem:[#allocation2 + $0x148] sm:$0xe] %v3223_v4  ;;  %v4214_v4 = vld [vmem:[#allocation2 + $0x2c0] sm:$0xff] }
 0x4ca   : > { %5006 = vst.msk [vmem:[%s5555_s28 + $0x3a0] sm:$0xff] %vm4889_vm1, %v4621_v0  ;;  %v4371_v0 = vld [vmem:[#allocation2 + $0x360] sm:$0xff] }
 0x4cb   : > { %3456 = vst [vmem:[#allocation2 + $0x148] sm:$0x80] %v3424_v37 }
 0x4cc   : > { %4737 = vxpose.xlu2.b32.cont [9/16] %v4260_v17, 128  ;;  %3472 = vst [vmem:[#allocation2 + $0x3f0] sm:$0x3] %v3424_v37  ;;  %v3563_v17 = vrot.slane %v7476_v55, 6 }
 0x4cd   : > { %v4682_v30 = vpop.trf.xlu0  ;;  %4706 = vxpose.xlu1.b32.cont [10/16] %v4275_v14, 128  ;;  %v4654_v33 = vpop.trf.xlu2  ;;  %3022 = vst [vmem:[#allocation2 + $0x508] sm:$0x38] %v2990_v42 }
 0x4ce   : > { %5035 = vst.msk [vmem:[%s5555_s28 + $0x488] sm:$0xff] %vm4889_vm1, %v4682_v30 }
 0x4cf   : > { %5023 = vst.msk [vmem:[%s5555_s28 + $0x428] sm:$0xff] %vm4889_vm1, %v4654_v33  ;;  %v3654_v33 = vrot.slane %v7507_v12, 3  ;;  %v3222_v12 = vrot.slane %v7449_v48, 7 }
 0x4d0   : > { %3147 = vst [vmem:[#allocation2 + $0x508] sm:$0xc0] %v3115_v1 }
 0x4d1   : > { %4767 = vxpose.xlu0.b32.cont [7/16] %v4229_v39, 128  ;;  %v4622_v24 = vpop.trf.xlu1  ;;  %3163 = vst [vmem:[#allocation2 + $0x6a0] sm:$0x1] %v3115_v1 }
 0x4d2   : > { %5007 = vst.msk [vmem:[%s5555_s28 + $0x3a8] sm:$0xff] %vm4889_vm1, %v4622_v24  ;;  %v4134_v24 = vld [vmem:[#allocation2 + $0x220] sm:$0xff] }
 0x4d3   : > { %3595 = vst [vmem:[#allocation2 + $0x6b8] sm:$0x1c] %v3563_v17 }
 0x4d4   : > { %4738 = vxpose.xlu2.b32.cont [10/16] %v4276_v15, 128  ;;  %3686 = vst [vmem:[#allocation2 + $0x6b8] sm:$0xe0] %v3654_v33  ;;  %v4231_v33 = vld [vmem:[#allocation2 + $0x7e8] sm:$0xff] }
 0x4d5   : > { %v4683_v11 = vpop.trf.xlu0  ;;  %4707 = vxpose.xlu1.b32.cont [11/16] %v4291_v10, 128  ;;  %v4655_v35 = vpop.trf.xlu2  ;;  %v3656_v10 = vrot.slane %v7539_v19, 3  ;;  %3597 = vst [vmem:[#allocation2 + $0x3f0] sm:$0x1c] %v3565_v58  ;;  %v3854_v19 = vrot.slane %v7547_v46, 5 }
 0x4d6   : > { %5036 = vst.msk [vmem:[%s5555_s28 + $0x490] sm:$0xff] %vm4889_vm1, %v4683_v11 }
 0x4d7   : > { %5024 = vst.msk [vmem:[%s5555_s28 + $0x430] sm:$0xff] %vm4889_vm1, %v4655_v35  ;;  %v4150_v35 = vld [vmem:[#allocation2 + $0x410] sm:$0xff]  ;;  %v4135_v48 = vld [vmem:[#allocation2 + $0x508] sm:$0xff] }
 0x4d8   : > { %3688 = vst [vmem:[#allocation2 + $0x3f0] sm:$0xe0] %v3656_v10 }
 0x4d9   : > { %4768 = vxpose.xlu0.b32.cont [8/16] %v4245_v8, 128  ;;  %v4623_v29 = vpop.trf.xlu1  ;;  %3254 = vst [vmem:[#allocation2 + $0x6a0] sm:$0xe] %v3222_v12  ;;  %v4247_v12 = vld [vmem:[#allocation2 + $0x250] sm:$0xff] }
 0x4da   : > { %5008 = vst.msk [vmem:[%s5555_s28 + $0x3b0] sm:$0xff] %vm4889_vm1, %v4623_v29  ;;  %v3423_v29 = vrot.slane %v7493_v7, 1  ;;  %v3979_v7 = vrot.slane %v7562_v9, 2 }
 0x4db   : > { %3886 = vst [vmem:[#allocation2 + $0x7e0] sm:$0x38] %v3854_v19  ;;  %v4166_v46 = vld [vmem:[#allocation2 + $0x6b8] sm:$0xff] }
 0x4dc   : > { %4739 = vxpose.xlu2.b32.cont [11/16] %v4292_v34, 128  ;;  %3455 = vst [vmem:[#allocation2 + $0x6a0] sm:$0x80] %v3423_v29  ;;  %v3856_v34 = vrot.slane %v7576_v28, 5 }
 0x4dd   : > { %v4684_v50 = vpop.trf.xlu0  ;;  %4708 = vxpose.xlu1.b32.cont [12/16] %v4307_v16, 128  ;;  %v4656_v5 = vpop.trf.xlu2  ;;  %3471 = vst [vmem:[#allocation2 + $0x498] sm:$0x3] %v3423_v29  ;;  %v4248_v29 = vld [vmem:[#allocation2 + $0x590] sm:$0xff] }
 0x4de   : > { %5037 = vst.msk [vmem:[%s5555_s28 + $0x498] sm:$0xff] %vm4889_vm1, %v4684_v50  ;;  %v4372_v50 = vld [vmem:[#allocation2 + $0x460] sm:$0xff] }
 0x4df   : > { %5025 = vst.msk [vmem:[%s5555_s28 + $0x438] sm:$0xff] %vm4889_vm1, %v4656_v5  ;;  %v3981_v5 = vrot.slane %v7599_v36, 2 }
 0x4e0   : > { %4011 = vst [vmem:[#allocation2 + $0x7e0] sm:$0xc0] %v3979_v7 }
 0x4e1   : > { %4769 = vxpose.xlu0.b32.cont [9/16] %v4261_v20, 128  ;;  %v4624_v52 = vpop.trf.xlu1  ;;  %4027 = vst [vmem:[#allocation2 + $0x750] sm:$0x1] %v3979_v7 }
 0x4e2   : > { %5009 = vst.msk [vmem:[%s5555_s28 + $0x3b8] sm:$0xff] %vm4889_vm1, %v4624_v52  ;;  %v4136_v52 = vld [vmem:[#allocation2 + $0x288] sm:$0xff] }
 0x4e3   : > { %3888 = vst [vmem:[#allocation2 + $0x350] sm:$0x38] %v3856_v34  ;;  %v4151_v9 = vld [vmem:[#allocation2 + $0x6a0] sm:$0xff] }
 0x4e4   : > { %4740 = vxpose.xlu2.b32.cont [12/16] %v4308_v18, 128  ;;  %4013 = vst [vmem:[#allocation2 + $0x350] sm:$0xc0] %v3981_v5 }
 0x4e5   : > { %v4685_v53 = vpop.trf.xlu0  ;;  %4709 = vxpose.xlu1.b32.cont [13/16] %v4323_v44, 128  ;;  %v4657_v2 = vpop.trf.xlu2  ;;  %v8307_v44 = vld [vmem:[#allocation22_spill] sm:$0xff]  ;;  %4029 = vst [vmem:[#allocation2 + $0x120] sm:$0x1] %v3981_v5  ;;  %v4280_v5 = vld [vmem:[#allocation2 + $0x1c0] sm:$0xff] }
 0x4e6   : > { %5038 = vst.msk [vmem:[%s5555_s28 + $0x4a0] sm:$0xff] %vm4889_vm1, %v4685_v53  ;;  %v3564_v18 = vrot.slane %v8307_v44, 6 }
 0x4e7   : > { %5026 = vst.msk [vmem:[%s5555_s28 + $0x440] sm:$0xff] %vm4889_vm1, %v4657_v2  ;;  %v8308_v2 = vld [vmem:[#allocation37_spill] sm:$0xff] }
 0x4e8   : > { %v3655_v36 = vrot.slane %v8308_v2, 3  ;;  %v4182_v54 = vld [vmem:[#allocation2 + $0x7e0] sm:$0xff]  ;;  %3596 = vst [vmem:[#allocation2 + $0x498] sm:$0x1c] %v3564_v18  ;;  %v4296_v18 = vld [vmem:[#allocation2 + $0x358] sm:$0xff] }
 0x4e9   : > { %4770 = vxpose.xlu0.b32.cont [10/16] %v4277_v38, 128  ;;  %v4625_v21 = vpop.trf.xlu1  ;;  %4012 = vst [vmem:[#allocation2 + $0x780] sm:$0xc0] %v3980_v41  ;;  %v4326_v2 = vld [vmem:[#allocation2 + $0x58] sm:$0xff] }
 0x4ea   : > { %5010 = vst.msk [vmem:[%s5555_s28 + $0x3c0] sm:$0xff] %vm4889_vm1, %v4625_v21  ;;  %v4072_v21 = vld.sshfl [vmem:[#allocation1 + $0x38] sm:$0xff pattern:$0x75316420] }
 0x4eb   : > { %v4088_v6 = vrot.slane %v4072_v21, 7  ;;  %3687 = vst [vmem:[#allocation2 + $0x498] sm:$0xe0] %v3655_v36 }
 0x4ec   : > { %4741 = vxpose.xlu2.b32.cont [13/16] %v4324_v60, 128  ;;  %v3855_v60 = vrot.slane %v7574_v56, 5  ;;  %4028 = vst [vmem:[#allocation2 + $0x708] sm:$0x1] %v3980_v41 }
 0x4ed   : > { %v4686_v59 = vpop.trf.xlu0  ;;  %4710 = vxpose.xlu1.b32.cont [14/16] %v4339_v25, 128  ;;  %v4658_v43 = vpop.trf.xlu2  ;;  %v4152_v25 = vld [vmem:[#allocation2 + $0x148] sm:$0xff]  ;;  %4120 = vst [vmem:[#allocation2 + $0x120] sm:$0xe] %v4088_v6  ;;  %v4342_v6 = vld [vmem:[#allocation2 + $0x60] sm:$0xff] }
 0x4ee   : > { %5039 = vst.msk [vmem:[%s5555_s28 + $0x4a8] sm:$0xff] %vm4889_vm1, %v4686_v59 }
 0x4ef   : > { %5027 = vst.msk [vmem:[%s5555_s28 + $0x448] sm:$0xff] %vm4889_vm1, %v4658_v43  ;;  %v4071_v43 = vld.sshfl [vmem:[#allocation1 + $0x30] sm:$0xff pattern:$0x75316420] }
 0x4f0   : > { %3887 = vst [vmem:[#allocation2 + $0x780] sm:$0x38] %v3855_v60 }
 0x4f1   : > { %4771 = vxpose.xlu0.b32.cont [11/16] %v4293_v23, 128  ;;  %v4626_v27 = vpop.trf.xlu1  ;;  %v4070_v23 = vld.sshfl [vmem:[#allocation1 + $0x28] sm:$0xff pattern:$0x75316420] }
 0x4f2   : > { %5011 = vst.msk [vmem:[%s5555_s28 + $0x3c8] sm:$0xff] %vm4889_vm1, %v4626_v27  ;;  %v4167_v57 = vld [vmem:[#allocation2 + $0x498] sm:$0xff] }
 0x4f4   : > { %4742 = vxpose.xlu2.b32.cont [14/16] %v4340_v22, 128  ;;  %v4184_v22 = vld [vmem:[#allocation2 + $0x350] sm:$0xff] }
 0x4f5   : > { %v4687_v26 = vpop.trf.xlu0  ;;  %4711 = vxpose.xlu1.b32.cont [15/16] %v4355_v32, 128  ;;  %v4659_v39 = vpop.trf.xlu2  ;;  %v4168_v32 = vld [vmem:[#allocation2 + $0x3f0] sm:$0xff] }
 0x4f6   : > { %5040 = vst.msk [vmem:[%s5555_s28 + $0x4b0] sm:$0xff] %vm4889_vm1, %v4687_v26 }
 0x4f7   : > { %5028 = vst.msk [vmem:[%s5555_s28 + $0x450] sm:$0xff] %vm4889_vm1, %v4659_v39 }
 0x4f9   : > { %4772 = vxpose.xlu0.b32.cont [12/16] %v4309_v13, 128  ;;  %v4627_v30 = vpop.trf.xlu1  ;;  %v4086_v13 = vrot.slane %v4070_v23, 7 }
 0x4fa   : > { %5012 = vst.msk [vmem:[%s5555_s28 + $0x3d0] sm:$0xff] %vm4889_vm1, %v4627_v30  ;;  %v4183_v30 = vld [vmem:[#allocation2 + $0x780] sm:$0xff] }
 0x4fb   : > { %4118 = vst [vmem:[#allocation2 + $0x750] sm:$0xe] %v4086_v13 }
 0x4fc   : > { %4743 = vxpose.xlu2.b32.cont [15/16] %v4356_v63, 128  ;;  %v4230_v63 = vld [vmem:[#allocation2 + $0x7c0] sm:$0xff] }
 0x4fd   : > { %v4688_v51 = vpop.trf.xlu0  ;;  %4712 = vxpose.xlu1.b32.end [16/16] %v4371_v0, 128  ;;  %v4660_v8 = vpop.trf.xlu2  ;;  %v4200_v0 = vld [vmem:[#allocation2 + $0x120] sm:$0xff] }
 0x4fe   : > { %5041 = vst.msk [vmem:[%s5555_s28 + $0x4b8] sm:$0xff] %vm4889_vm1, %v4688_v51 }
 0x4ff   : > { %5029 = vst.msk [vmem:[%s5555_s28 + $0x458] sm:$0xff] %vm4889_vm1, %v4660_v8  ;;  %v4215_v8 = vld [vmem:[#allocation2 + $0x3c0] sm:$0xff] }
 0x501   : > { %4773 = vxpose.xlu0.b32.cont [13/16] %v4325_v61, 128  ;;  %v4628_v11 = vpop.trf.xlu1  ;;  %v4087_v61 = vrot.slane %v4071_v43, 7 }
 0x502   : > { %5013 = vst.msk [vmem:[%s5555_s28 + $0x3d8] sm:$0xff] %vm4889_vm1, %v4628_v11  ;;  %v4198_v56 = vld [vmem:[#allocation2 + $0x750] sm:$0xff] }
 0x503   : > { %4119 = vst [vmem:[#allocation2 + $0x708] sm:$0xe] %v4087_v61 }
 0x504   : > { %4744 = vxpose.xlu2.b32.end [16/16] %v4372_v50, 128  ;;  %v4232_v50 = vld [vmem:[#allocation2 + $0x7f8] sm:$0xff] }
 0x505   : > { %v4689_v49 = vpop.trf.xlu0  ;;  %4793 = vxpose.xlu1.b32.start [1/16] %v4134_v24, 128  ;;  %v4661_v55 = vpop.trf.xlu2 }
 0x506   : > { %5042 = vst.msk [vmem:[%s5555_s28 + $0x4c0] sm:$0xff] %vm4889_vm1, %v4689_v49 }
 0x507   : > { %5030 = vst.msk [vmem:[%s5555_s28 + $0x460] sm:$0xff] %vm4889_vm1, %v4661_v55  ;;  %v4262_v55 = vld [vmem:[#allocation2 + $0x798] sm:$0xff] }
 0x509   : > { %4774 = vxpose.xlu0.b32.cont [14/16] %v4341_v47, 128  ;;  %v4629_v20 = vpop.trf.xlu1 }
 0x50a   : > { %5014 = vst.msk [vmem:[%s5555_s28 + $0x3e0] sm:$0xff] %vm4889_vm1, %v4629_v20  ;;  %v4199_v37 = vld [vmem:[#allocation2 + $0x708] sm:$0xff] }
 0x50c   : > { %4825 = vxpose.xlu2.b32.start [1/16] %v4135_v48, 128  ;;  %v4263_v48 = vld [vmem:[#allocation2 + $0x1d8] sm:$0xff] }
 0x50d   : > { %v4690_v14 = vpop.trf.xlu0  ;;  %4794 = vxpose.xlu1.b32.cont [2/16] %v4150_v35, 128  ;;  %v4662_v38 = vpop.trf.xlu2  ;;  %v4278_v35 = vld [vmem:[#allocation2 + $0x4c0] sm:$0xff] }
 0x50e   : > { %5043 = vst.msk [vmem:[%s5555_s28 + $0x4c8] sm:$0xff] %vm4889_vm1, %v4690_v14  ;;  %v4216_v14 = vld [vmem:[#allocation2 + $0x480] sm:$0xff] }
 0x50f   : > { %5031 = vst.msk [vmem:[%s5555_s28 + $0x468] sm:$0xff] %vm4889_vm1, %v4662_v38  ;;  %v4264_v38 = vld [vmem:[#allocation2 + $0xd8] sm:$0xff] }
 0x511   : > { %4775 = vxpose.xlu0.b32.cont [15/16] %v4357_v62, 128  ;;  %v4630_v53 = vpop.trf.xlu1  ;;  %v4246_v62 = vld [vmem:[#allocation2 + $0x640] sm:$0xff] }
 0x512   : > { %5015 = vst.msk [vmem:[%s5555_s28 + $0x3e8] sm:$0xff] %vm4889_vm1, %v4630_v53 }
 0x514   : > { %4826 = vxpose.xlu2.b32.cont [2/16] %v4151_v9, 128 }
 0x515   : > { %v4691_v15 = vpop.trf.xlu0  ;;  %4795 = vxpose.xlu1.b32.cont [3/16] %v4166_v46, 128  ;;  %v4663_v28 = vpop.trf.xlu2 }
 0x516   : > { %5044 = vst.msk [vmem:[%s5555_s28 + $0x4d0] sm:$0xff] %vm4889_vm1, %v4691_v15 }
 0x517   : > { %5032 = vst.msk [vmem:[%s5555_s28 + $0x470] sm:$0xff] %vm4889_vm1, %v4663_v28  ;;  %v4295_v28 = vld [vmem:[#allocation2 + $0x30] sm:$0xff] }
 0x519   : > { %4776 = vxpose.xlu0.b32.end [16/16] %v4373_v3, 128  ;;  %v4631_v59 = vpop.trf.xlu1 }
 0x51a   : > { %5016 = vst.msk [vmem:[%s5555_s28 + $0x3f0] sm:$0xff] %vm4889_vm1, %v4631_v59  ;;  %v4310_v59 = vld [vmem:[#allocation2 + $0x440] sm:$0xff] }
 0x51c   : > { %4827 = vxpose.xlu2.b32.cont [3/16] %v4167_v57, 128 }
 0x51d   : > { %v4692_v16 = vpop.trf.xlu0  ;;  %4796 = vxpose.xlu1.b32.cont [4/16] %v4182_v54, 128  ;;  %v4664_v45 = vpop.trf.xlu2 }
 0x51e   : > { %5045 = vst.msk [vmem:[%s5555_s28 + $0x4d8] sm:$0xff] %vm4889_vm1, %v4692_v16  ;;  %v4294_v16 = vld [vmem:[#allocation2 + $0x2b0] sm:$0xff] }
 0x51f   : > { %5033 = vst.msk [vmem:[%s5555_s28 + $0x478] sm:$0xff] %vm4889_vm1, %v4664_v45  ;;  %v4328_v45 = vld [vmem:[#allocation2 + $0x3b8] sm:$0xff] }
 0x521   : > { %4857 = vxpose.xlu0.b32.start [1/16] %v4136_v52, 128  ;;  %v4632_v27 = vpop.trf.xlu1  ;;  %v4279_v52 = vld [vmem:[#allocation2 + $0x3c8] sm:$0xff] }
 0x522   : > { %5017 = vst.msk [vmem:[%s5555_s28 + $0x3f8] sm:$0xff] %vm4889_vm1, %v4632_v27  ;;  %v4327_v27 = vld [vmem:[#allocation2 + $0x658] sm:$0xff] }
 0x524   : > { %4828 = vxpose.xlu2.b32.cont [4/16] %v4183_v30, 128  ;;  %v4359_v30 = vld [vmem:[#allocation2 + $0x228] sm:$0xff] }
 0x525   : > { %v4693_v26 = vpop.trf.xlu0  ;;  %4797 = vxpose.xlu1.b32.cont [5/16] %v4198_v56, 128  ;;  %v4745_v39 = vpop.trf.xlu2  ;;  %v4344_v56 = vld [vmem:[#allocation2 + $0x100] sm:$0xff] }
 0x526   : > { %5046 = vst.msk [vmem:[%s5555_s28 + $0x4e0] sm:$0xff] %vm4889_vm1, %v4693_v26  ;;  %v4311_v26 = vld [vmem:[#allocation2 + $0x318] sm:$0xff] }
 0x527   : > { %5066 = vst.msk [vmem:[%s5555_s28 + $0x580] sm:$0xff] %vm4889_vm1, %v4745_v39 }
 0x529   : > { %4858 = vxpose.xlu0.b32.cont [2/16] %v4152_v25, 128  ;;  %v4713_v40 = vpop.trf.xlu1  ;;  %v4312_v25 = vld [vmem:[#allocation2 + $0x468] sm:$0xff] }
 0x52a   : > { %5050 = vst.msk [vmem:[%s5555_s28 + $0x500] sm:$0xff] %vm4889_vm1, %v4713_v40  ;;  %v4374_v40 = vld [vmem:[#allocation2 + $0x488] sm:$0xff] }
 0x52c   : > { %4829 = vxpose.xlu2.b32.cont [5/16] %v4199_v37, 128 }
 0x52d   : > { %v4694_v51 = vpop.trf.xlu0  ;;  %4798 = vxpose.xlu1.b32.cont [6/16] %v4214_v4, 128  ;;  %v4746_v42 = vpop.trf.xlu2  ;;  %v4360_v4 = vld [vmem:[#allocation2 + $0x160] sm:$0xff] }
 0x52e   : > { %5047 = vst.msk [vmem:[%s5555_s28 + $0x4e8] sm:$0xff] %vm4889_vm1, %v4694_v51  ;;  %v4358_v51 = vld [vmem:[#allocation2 + $0x330] sm:$0xff] }
 0x52f   : > { %5067 = vst.msk [vmem:[%s5555_s28 + $0x588] sm:$0xff] %vm4889_vm1, %v4746_v42  ;;  %v4376_v42 = vld [vmem:[#allocation2 + $0x608] sm:$0xff] }
 0x531   : > { %4859 = vxpose.xlu0.b32.cont [3/16] %v4168_v32, 128  ;;  %v4714_v47 = vpop.trf.xlu1  ;;  %v4343_v32 = vld [vmem:[#allocation2 + $0x558] sm:$0xff] }
 0x532   : > { %5051 = vst.msk [vmem:[%s5555_s28 + $0x508] sm:$0xff] %vm4889_vm1, %v4714_v47  ;;  %v4375_v47 = vld [vmem:[#allocation2 + $0x388] sm:$0xff] }
 0x534   : > { %4830 = vxpose.xlu2.b32.cont [6/16] %v4215_v8, 128 }
 0x535   : > { %v4695_v31 = vpop.trf.xlu0  ;;  %4799 = vxpose.xlu1.b32.cont [7/16] %v4230_v63, 128  ;;  %v4747_v17 = vpop.trf.xlu2 }
 0x536   : > { %5048 = vst.msk [vmem:[%s5555_s28 + $0x4f0] sm:$0xff] %vm4889_vm1, %v4695_v31 }
 0x537   : > { %5068 = vst.msk [vmem:[%s5555_s28 + $0x590] sm:$0xff] %vm4889_vm1, %v4747_v17 }
 0x539   : > { %4860 = vxpose.xlu0.b32.cont [4/16] %v4184_v22, 128  ;;  %v4715_v1 = vpop.trf.xlu1 }
 0x53a   : > { %5052 = vst.msk [vmem:[%s5555_s28 + $0x510] sm:$0xff] %vm4889_vm1, %v4715_v1 }
 0x53c   : > { %4831 = vxpose.xlu2.b32.cont [7/16] %v4231_v33, 128 }
 0x53d   : > { %v4696_v49 = vpop.trf.xlu0  ;;  %4800 = vxpose.xlu1.b32.cont [8/16] %v4246_v62, 128  ;;  %v4748_v20 = vpop.trf.xlu2 }
 0x53e   : > { %5049 = vst.msk [vmem:[%s5555_s28 + $0x4f8] sm:$0xff] %vm4889_vm1, %v4696_v49 }
 0x53f   : > { %5069 = vst.msk [vmem:[%s5555_s28 + $0x598] sm:$0xff] %vm4889_vm1, %v4748_v20 }
 0x541   : > { %4861 = vxpose.xlu0.b32.cont [5/16] %v4200_v0, 128  ;;  %v4716_v58 = vpop.trf.xlu1 }
 0x542   : > { %5053 = vst.msk [vmem:[%s5555_s28 + $0x518] sm:$0xff] %vm4889_vm1, %v4716_v58 }
 0x544   : > { %4832 = vxpose.xlu2.b32.cont [8/16] %v4247_v12, 128 }
 0x545   : > { %v4777_v11 = vpop.trf.xlu0  ;;  %4801 = vxpose.xlu1.b32.cont [9/16] %v4262_v55, 128  ;;  %v4749_v3 = vpop.trf.xlu2 }
 0x546   : > { %5082 = vst.msk [vmem:[%s5555_s28 + $0x600] sm:$0xff] %vm4889_vm1, %v4777_v11 }
 0x547   : > { %5070 = vst.msk [vmem:[%s5555_s28 + $0x5a0] sm:$0xff] %vm4889_vm1, %v4749_v3 }
 0x549   : > { %4862 = vxpose.xlu0.b32.cont [6/16] %v4216_v14, 128  ;;  %v4717_v15 = vpop.trf.xlu1 }
 0x54a   : > { %5054 = vst.msk [vmem:[%s5555_s28 + $0x520] sm:$0xff] %vm4889_vm1, %v4717_v15 }
 0x54c   : > { %4833 = vxpose.xlu2.b32.cont [9/16] %v4263_v48, 128 }
 0x54d   : > { %v4778_v24 = vpop.trf.xlu0  ;;  %4802 = vxpose.xlu1.b32.cont [10/16] %v4278_v35, 128  ;;  %v4750_v7 = vpop.trf.xlu2 }
 0x54e   : > { %5083 = vst.msk [vmem:[%s5555_s28 + $0x608] sm:$0xff] %vm4889_vm1, %v4778_v24 }
 0x54f   : > { %5071 = vst.msk [vmem:[%s5555_s28 + $0x5a8] sm:$0xff] %vm4889_vm1, %v4750_v7 }
 0x551   : > { %4863 = vxpose.xlu0.b32.cont [7/16] %v4232_v50, 128  ;;  %v4718_v53 = vpop.trf.xlu1 }
 0x552   : > { %5055 = vst.msk [vmem:[%s5555_s28 + $0x528] sm:$0xff] %vm4889_vm1, %v4718_v53 }
 0x554   : > { %4834 = vxpose.xlu2.b32.cont [10/16] %v4279_v52, 128 }
 0x555   : > { %v4779_v10 = vpop.trf.xlu0  ;;  %4803 = vxpose.xlu1.b32.cont [11/16] %v4294_v16, 128  ;;  %v4751_v9 = vpop.trf.xlu2 }
 0x556   : > { %5084 = vst.msk [vmem:[%s5555_s28 + $0x610] sm:$0xff] %vm4889_vm1, %v4779_v10 }
 0x557   : > { %5072 = vst.msk [vmem:[%s5555_s28 + $0x5b0] sm:$0xff] %vm4889_vm1, %v4751_v9 }
 0x559   : > { %4864 = vxpose.xlu0.b32.cont [8/16] %v4248_v29, 128  ;;  %v4719_v46 = vpop.trf.xlu1 }
 0x55a   : > { %5056 = vst.msk [vmem:[%s5555_s28 + $0x530] sm:$0xff] %vm4889_vm1, %v4719_v46 }
 0x55c   : > { %4835 = vxpose.xlu2.b32.cont [11/16] %v4295_v28, 128 }
 0x55d   : > { %v4780_v19 = vpop.trf.xlu0  ;;  %4804 = vxpose.xlu1.b32.cont [12/16] %v4310_v59, 128  ;;  %v4752_v21 = vpop.trf.xlu2 }
 0x55e   : > { %5085 = vst.msk [vmem:[%s5555_s28 + $0x618] sm:$0xff] %vm4889_vm1, %v4780_v19 }
 0x55f   : > { %5073 = vst.msk [vmem:[%s5555_s28 + $0x5b8] sm:$0xff] %vm4889_vm1, %v4752_v21 }
 0x561   : > { %4865 = vxpose.xlu0.b32.cont [9/16] %v4264_v38, 128  ;;  %v4720_v44 = vpop.trf.xlu1 }
 0x562   : > { %5057 = vst.msk [vmem:[%s5555_s28 + $0x538] sm:$0xff] %vm4889_vm1, %v4720_v44 }
 0x564   : > { %4836 = vxpose.xlu2.b32.cont [12/16] %v4311_v26, 128 }
 0x565   : > { %v4781_v34 = vpop.trf.xlu0  ;;  %4805 = vxpose.xlu1.b32.cont [13/16] %v4326_v2, 128  ;;  %v4753_v54 = vpop.trf.xlu2 }
 0x566   : > { %5086 = vst.msk [vmem:[%s5555_s28 + $0x620] sm:$0xff] %vm4889_vm1, %v4781_v34 }
 0x567   : > { %5074 = vst.msk [vmem:[%s5555_s28 + $0x5c0] sm:$0xff] %vm4889_vm1, %v4753_v54 }
 0x569   : > { %4866 = vxpose.xlu0.b32.cont [10/16] %v4280_v5, 128  ;;  %v4721_v13 = vpop.trf.xlu1 }
 0x56a   : > { %5058 = vst.msk [vmem:[%s5555_s28 + $0x540] sm:$0xff] %vm4889_vm1, %v4721_v13 }
 0x56c   : > { %4837 = vxpose.xlu2.b32.cont [13/16] %v4327_v27, 128 }
 0x56d   : > { %v4782_v23 = vpop.trf.xlu0  ;;  %4806 = vxpose.xlu1.b32.cont [14/16] %v4342_v6, 128  ;;  %v4754_v41 = vpop.trf.xlu2 }
 0x56e   : > { %5087 = vst.msk [vmem:[%s5555_s28 + $0x628] sm:$0xff] %vm4889_vm1, %v4782_v23 }
 0x56f   : > { %5075 = vst.msk [vmem:[%s5555_s28 + $0x5c8] sm:$0xff] %vm4889_vm1, %v4754_v41 }
 0x571   : > { %4867 = vxpose.xlu0.b32.cont [11/16] %v4296_v18, 128  ;;  %v4722_v43 = vpop.trf.xlu1 }
 0x572   : > { %5059 = vst.msk [vmem:[%s5555_s28 + $0x548] sm:$0xff] %vm4889_vm1, %v4722_v43 }
 0x574   : > { %4838 = vxpose.xlu2.b32.cont [14/16] %v4343_v32, 128 }
 0x575   : > { %v4783_v36 = vpop.trf.xlu0  ;;  %4807 = vxpose.xlu1.b32.cont [15/16] %v4358_v51, 128  ;;  %v4755_v31 = vpop.trf.xlu2 }
 0x576   : > { %5088 = vst.msk [vmem:[%s5555_s28 + $0x630] sm:$0xff] %vm4889_vm1, %v4783_v36 }
 0x577   : > { %5076 = vst.msk [vmem:[%s5555_s28 + $0x5d0] sm:$0xff] %vm4889_vm1, %v4755_v31 }
 0x579   : > { %4868 = vxpose.xlu0.b32.cont [12/16] %v4312_v25, 128  ;;  %v4723_v57 = vpop.trf.xlu1 }
 0x57a   : > { %5060 = vst.msk [vmem:[%s5555_s28 + $0x550] sm:$0xff] %vm4889_vm1, %v4723_v57 }
 0x57c   : > { %4839 = vxpose.xlu2.b32.cont [15/16] %v4359_v30, 128 }
 0x57d   : > { %v4784_v60 = vpop.trf.xlu0  ;;  %4808 = vxpose.xlu1.b32.end [16/16] %v4374_v40, 128  ;;  %v4756_v49 = vpop.trf.xlu2 }
 0x57e   : > { %5089 = vst.msk [vmem:[%s5555_s28 + $0x638] sm:$0xff] %vm4889_vm1, %v4784_v60 }
 0x57f   : > { %5077 = vst.msk [vmem:[%s5555_s28 + $0x5d8] sm:$0xff] %vm4889_vm1, %v4756_v49 }
 0x581   : > { %4869 = vxpose.xlu0.b32.cont [13/16] %v4328_v45, 128  ;;  %v4724_v39 = vpop.trf.xlu1 }
 0x582   : > { %5061 = vst.msk [vmem:[%s5555_s28 + $0x558] sm:$0xff] %vm4889_vm1, %v4724_v39 }
 0x584   : > { %4840 = vxpose.xlu2.b32.end [16/16] %v4375_v47, 128 }
 0x585   : > { %v4785_v61 = vpop.trf.xlu0  ;;  %v4757_v63 = vpop.trf.xlu2 }
 0x586   : > { %5090 = vst.msk [vmem:[%s5555_s28 + $0x640] sm:$0xff] %vm4889_vm1, %v4785_v61 }
 0x587   : > { %5078 = vst.msk [vmem:[%s5555_s28 + $0x5e0] sm:$0xff] %vm4889_vm1, %v4757_v63 }
 0x589   : > { %4870 = vxpose.xlu0.b32.cont [14/16] %v4344_v56, 128  ;;  %v4725_v0 = vpop.trf.xlu1 }
 0x58a   : > { %5062 = vst.msk [vmem:[%s5555_s28 + $0x560] sm:$0xff] %vm4889_vm1, %v4725_v0 }
 0x58d   : > { %v4786_v22 = vpop.trf.xlu0  ;;  %v4758_v1 = vpop.trf.xlu2 }
 0x58e   : > { %5091 = vst.msk [vmem:[%s5555_s28 + $0x648] sm:$0xff] %vm4889_vm1, %v4786_v22 }
 0x58f   : > { %5079 = vst.msk [vmem:[%s5555_s28 + $0x5e8] sm:$0xff] %vm4889_vm1, %v4758_v1 }
 0x591   : > { %4871 = vxpose.xlu0.b32.cont [15/16] %v4360_v4, 128  ;;  %v4726_v8 = vpop.trf.xlu1 }
 0x592   : > { %5063 = vst.msk [vmem:[%s5555_s28 + $0x568] sm:$0xff] %vm4889_vm1, %v4726_v8 }
 0x595   : > { %v4787_v37 = vpop.trf.xlu0  ;;  %v4759_v62 = vpop.trf.xlu2 }
 0x596   : > { %5092 = vst.msk [vmem:[%s5555_s28 + $0x650] sm:$0xff] %vm4889_vm1, %v4787_v37 }
 0x597   : > { %5080 = vst.msk [vmem:[%s5555_s28 + $0x5f0] sm:$0xff] %vm4889_vm1, %v4759_v62 }
 0x599   : > { %4872 = vxpose.xlu0.b32.end [16/16] %v4376_v42, 128  ;;  %v4727_v17 = vpop.trf.xlu1 }
 0x59a   : > { %5064 = vst.msk [vmem:[%s5555_s28 + $0x570] sm:$0xff] %vm4889_vm1, %v4727_v17 }
 0x59d   : > { %v4788_v11 = vpop.trf.xlu0  ;;  %v4760_v58 = vpop.trf.xlu2 }
 0x59e   : > { %5093 = vst.msk [vmem:[%s5555_s28 + $0x658] sm:$0xff] %vm4889_vm1, %v4788_v11 }
 0x59f   : > { %5081 = vst.msk [vmem:[%s5555_s28 + $0x5f8] sm:$0xff] %vm4889_vm1, %v4760_v58 }
 0x5a1   : > { %v4728_v33 = vpop.trf.xlu1 }
 0x5a2   : > { %5065 = vst.msk [vmem:[%s5555_s28 + $0x578] sm:$0xff] %vm4889_vm1, %v4728_v33 }
 0x5a5   : > { %v4789_v14 = vpop.trf.xlu0  ;;  %v4841_v55 = vpop.trf.xlu2 }
 0x5a6   : > { %5094 = vst.msk [vmem:[%s5555_s28 + $0x660] sm:$0xff] %vm4889_vm1, %v4789_v14 }
 0x5a7   : > { %5114 = vst.msk [vmem:[%s5555_s28 + $0x700] sm:$0xff] %vm4889_vm1, %v4841_v55 }
 0x5a9   : > { %v4809_v20 = vpop.trf.xlu1 }
 0x5aa   : > { %5098 = vst.msk [vmem:[%s5555_s28 + $0x680] sm:$0xff] %vm4889_vm1, %v4809_v20 }
 0x5ad   : > { %v4790_v24 = vpop.trf.xlu0  ;;  %v4842_v15 = vpop.trf.xlu2 }
 0x5ae   : > { %5095 = vst.msk [vmem:[%s5555_s28 + $0x668] sm:$0xff] %vm4889_vm1, %v4790_v24 }
 0x5af   : > { %5115 = vst.msk [vmem:[%s5555_s28 + $0x708] sm:$0xff] %vm4889_vm1, %v4842_v15 }
 0x5b1   : > { %v4810_v12 = vpop.trf.xlu1 }
 0x5b2   : > { %5099 = vst.msk [vmem:[%s5555_s28 + $0x688] sm:$0xff] %vm4889_vm1, %v4810_v12 }
 0x5b5   : > { %v4791_v50 = vpop.trf.xlu0  ;;  %v4843_v35 = vpop.trf.xlu2 }
 0x5b6   : > { %5096 = vst.msk [vmem:[%s5555_s28 + $0x670] sm:$0xff] %vm4889_vm1, %v4791_v50 }
 0x5b7   : > { %5116 = vst.msk [vmem:[%s5555_s28 + $0x710] sm:$0xff] %vm4889_vm1, %v4843_v35 }
 0x5b9   : > { %v4811_v3 = vpop.trf.xlu1 }
 0x5ba   : > { %5100 = vst.msk [vmem:[%s5555_s28 + $0x690] sm:$0xff] %vm4889_vm1, %v4811_v3 }
 0x5bd   : > { %v4792_v10 = vpop.trf.xlu0  ;;  %v4844_v53 = vpop.trf.xlu2 }
 0x5be   : > { %5097 = vst.msk [vmem:[%s5555_s28 + $0x678] sm:$0xff] %vm4889_vm1, %v4792_v10 }
 0x5bf   : > { %5117 = vst.msk [vmem:[%s5555_s28 + $0x718] sm:$0xff] %vm4889_vm1, %v4844_v53 }
 0x5c1   : > { %v4812_v48 = vpop.trf.xlu1 }
 0x5c2   : > { %5101 = vst.msk [vmem:[%s5555_s28 + $0x698] sm:$0xff] %vm4889_vm1, %v4812_v48 }
 0x5c5   : > { %v4873_v29 = vpop.trf.xlu0  ;;  %v4845_v16 = vpop.trf.xlu2 }
 0x5c6   : > { %5130 = vst.msk [vmem:[%s5555_s28 + $0x780] sm:$0xff] %vm4889_vm1, %v4873_v29 }
 0x5c7   : > { %5118 = vst.msk [vmem:[%s5555_s28 + $0x720] sm:$0xff] %vm4889_vm1, %v4845_v16 }
 0x5c9   : > { %v4813_v7 = vpop.trf.xlu1 }
 0x5ca   : > { %5102 = vst.msk [vmem:[%s5555_s28 + $0x6a0] sm:$0xff] %vm4889_vm1, %v4813_v7 }
 0x5cd   : > { %v4874_v19 = vpop.trf.xlu0  ;;  %v4846_v46 = vpop.trf.xlu2 }
 0x5ce   : > { %5131 = vst.msk [vmem:[%s5555_s28 + $0x788] sm:$0xff] %vm4889_vm1, %v4874_v19 }
 0x5cf   : > { %5119 = vst.msk [vmem:[%s5555_s28 + $0x728] sm:$0xff] %vm4889_vm1, %v4846_v46 }
 0x5d1   : > { %v4814_v52 = vpop.trf.xlu1 }
 0x5d2   : > { %5103 = vst.msk [vmem:[%s5555_s28 + $0x6a8] sm:$0xff] %vm4889_vm1, %v4814_v52 }
 0x5d5   : > { %v4875_v38 = vpop.trf.xlu0  ;;  %v4847_v59 = vpop.trf.xlu2 }
 0x5d6   : > { %5132 = vst.msk [vmem:[%s5555_s28 + $0x790] sm:$0xff] %vm4889_vm1, %v4875_v38 }
 0x5d7   : > { %5120 = vst.msk [vmem:[%s5555_s28 + $0x730] sm:$0xff] %vm4889_vm1, %v4847_v59 }
 0x5d9   : > { %v4815_v9 = vpop.trf.xlu1 }
 0x5da   : > { %5104 = vst.msk [vmem:[%s5555_s28 + $0x6b0] sm:$0xff] %vm4889_vm1, %v4815_v9 }
 0x5dd   : > { %v4876_v34 = vpop.trf.xlu0  ;;  %v4848_v44 = vpop.trf.xlu2 }
 0x5de   : > { %5133 = vst.msk [vmem:[%s5555_s28 + $0x798] sm:$0xff] %vm4889_vm1, %v4876_v34 }
 0x5df   : > { %5121 = vst.msk [vmem:[%s5555_s28 + $0x738] sm:$0xff] %vm4889_vm1, %v4848_v44 }
 0x5e1   : > { %v4816_v28 = vpop.trf.xlu1 }
 0x5e2   : > { %5105 = vst.msk [vmem:[%s5555_s28 + $0x6b8] sm:$0xff] %vm4889_vm1, %v4816_v28 }
 0x5e5   : > { %v4877_v5 = vpop.trf.xlu0  ;;  %v4849_v2 = vpop.trf.xlu2 }
 0x5e6   : > { %5134 = vst.msk [vmem:[%s5555_s28 + $0x7a0] sm:$0xff] %vm4889_vm1, %v4877_v5 }
 0x5e7   : > { %5122 = vst.msk [vmem:[%s5555_s28 + $0x740] sm:$0xff] %vm4889_vm1, %v4849_v2 }
 0x5e9   : > { %v4817_v21 = vpop.trf.xlu1 }
 0x5ea   : > { %5106 = vst.msk [vmem:[%s5555_s28 + $0x6c0] sm:$0xff] %vm4889_vm1, %v4817_v21 }
 0x5ed   : > { %v4878_v23 = vpop.trf.xlu0  ;;  %v4850_v13 = vpop.trf.xlu2 }
 0x5ee   : > { %5135 = vst.msk [vmem:[%s5555_s28 + $0x7a8] sm:$0xff] %vm4889_vm1, %v4878_v23 }
 0x5ef   : > { %5123 = vst.msk [vmem:[%s5555_s28 + $0x748] sm:$0xff] %vm4889_vm1, %v4850_v13 }
 0x5f1   : > { %v4818_v26 = vpop.trf.xlu1 }
 0x5f2   : > { %5107 = vst.msk [vmem:[%s5555_s28 + $0x6c8] sm:$0xff] %vm4889_vm1, %v4818_v26 }
 0x5f5   : > { %v4879_v18 = vpop.trf.xlu0  ;;  %v4851_v6 = vpop.trf.xlu2 }
 0x5f6   : > { %5136 = vst.msk [vmem:[%s5555_s28 + $0x7b0] sm:$0xff] %vm4889_vm1, %v4879_v18 }
 0x5f7   : > { %5124 = vst.msk [vmem:[%s5555_s28 + $0x750] sm:$0xff] %vm4889_vm1, %v4851_v6 }
 0x5f9   : > { %v4819_v54 = vpop.trf.xlu1 }
 0x5fa   : > { %5108 = vst.msk [vmem:[%s5555_s28 + $0x6d0] sm:$0xff] %vm4889_vm1, %v4819_v54 }
 0x5fd   : > { %v4880_v36 = vpop.trf.xlu0  ;;  %v4852_v43 = vpop.trf.xlu2 }
 0x5fe   : > { %5137 = vst.msk [vmem:[%s5555_s28 + $0x7b8] sm:$0xff] %vm4889_vm1, %v4880_v36 }
 0x5ff   : > { %5125 = vst.msk [vmem:[%s5555_s28 + $0x758] sm:$0xff] %vm4889_vm1, %v4852_v43 }
 0x601   : > { %v4820_v27 = vpop.trf.xlu1 }
 0x602   : > { %5109 = vst.msk [vmem:[%s5555_s28 + $0x6d8] sm:$0xff] %vm4889_vm1, %v4820_v27 }
 0x605   : > { %v4881_v25 = vpop.trf.xlu0  ;;  %v4853_v51 = vpop.trf.xlu2 }
 0x606   : > { %5138 = vst.msk [vmem:[%s5555_s28 + $0x7c0] sm:$0xff] %vm4889_vm1, %v4881_v25 }
 0x607   : > { %5126 = vst.msk [vmem:[%s5555_s28 + $0x760] sm:$0xff] %vm4889_vm1, %v4853_v51 }
 0x609   : > { %v4821_v41 = vpop.trf.xlu1 }
 0x60a   : > { %5110 = vst.msk [vmem:[%s5555_s28 + $0x6e0] sm:$0xff] %vm4889_vm1, %v4821_v41 }
 0x60d   : > { %v4882_v60 = vpop.trf.xlu0  ;;  %v4854_v57 = vpop.trf.xlu2 }
 0x60e   : > { %5139 = vst.msk [vmem:[%s5555_s28 + $0x7c8] sm:$0xff] %vm4889_vm1, %v4882_v60 }
 0x60f   : > { %5127 = vst.msk [vmem:[%s5555_s28 + $0x768] sm:$0xff] %vm4889_vm1, %v4854_v57 }
 0x611   : > { %v4822_v32 = vpop.trf.xlu1 }
 0x612   : > { %5111 = vst.msk [vmem:[%s5555_s28 + $0x6e8] sm:$0xff] %vm4889_vm1, %v4822_v32 }
 0x615   : > { %v4883_v45 = vpop.trf.xlu0  ;;  %v4855_v40 = vpop.trf.xlu2 }
 0x616   : > { %5140 = vst.msk [vmem:[%s5555_s28 + $0x7d0] sm:$0xff] %vm4889_vm1, %v4883_v45 }
 0x617   : > { %5128 = vst.msk [vmem:[%s5555_s28 + $0x770] sm:$0xff] %vm4889_vm1, %v4855_v40 }
 0x619   : > { %v4823_v31 = vpop.trf.xlu1 }
 0x61a   : > { %5112 = vst.msk [vmem:[%s5555_s28 + $0x6f0] sm:$0xff] %vm4889_vm1, %v4823_v31 }
 0x61d   : > { %v4884_v61 = vpop.trf.xlu0  ;;  %v4856_v39 = vpop.trf.xlu2 }
 0x61e   : > { %5141 = vst.msk [vmem:[%s5555_s28 + $0x7d8] sm:$0xff] %vm4889_vm1, %v4884_v61 }
 0x61f   : > { %5129 = vst.msk [vmem:[%s5555_s28 + $0x778] sm:$0xff] %vm4889_vm1, %v4856_v39 }
 0x621   : > { %v4824_v30 = vpop.trf.xlu1 }
 0x622   : > { %5113 = vst.msk [vmem:[%s5555_s28 + $0x6f8] sm:$0xff] %vm4889_vm1, %v4824_v30 }
 0x625   : > { %v4885_v56 = vpop.trf.xlu0 }
 0x626   : > { %5142 = vst.msk [vmem:[%s5555_s28 + $0x7e0] sm:$0xff] %vm4889_vm1, %v4885_v56 }
 0x62d   : > { %v4886_v22 = vpop.trf.xlu0 }
 0x62e   : > { %5143 = vst.msk [vmem:[%s5555_s28 + $0x7e8] sm:$0xff] %vm4889_vm1, %v4886_v22 }
 0x635   : > { %v4887_v4 = vpop.trf.xlu0 }
 0x636   : > { %5144 = vst.msk [vmem:[%s5555_s28 + $0x7f0] sm:$0xff] %vm4889_vm1, %v4887_v4 }
 0x63d   : > { %v4888_v49 = vpop.trf.xlu0 }
 0x63e   : > { %5145 = vst.msk [vmem:[%s5555_s28 + $0x7f8] sm:$0xff] %vm4889_vm1, %v4888_v49 }
 0x63f PF: > { %p13_p1 = scmp.ge.s32.totalorder %s5505_s19, 5   ;;  %s8309_s9 = smov %s5429_s10 }
 0x640   : > { %s8310_s10 = smov %s5433_s11  ;;  %s8311_s11 = smov %s5515_s23 }
 0x641   : > { %s8312_s12 = smov %s5505_s19  ;;  %15 = sbr.rel (!%p13_p1) target bundleno = 4 (0x4), region = 114 }
 0x646   :  { %5168 = vsyncpa [#allocation4], 1 }
 0x647   :  { %5170 = vsyncpa [#allocation4 + $0x1], 1 }
 0x648   :  { %5171 = vsyncpa [#allocation5], 1 }
 0x649   :  { %5173 = vsyncpa [#allocation5 + $0x1], 1 }

</bundles_post_ra>
